<compile_context>
chip_gen: v5e
topology: v5e:2x2
jax: 0.10.0
libtpu: 0.0.40
codegen_flags: <defaults>
</compile_context>

<pallas_src>
import functools
import math

import jax
import jax.numpy as jnp
from jax.experimental import pallas as pl
from jax.experimental.pallas import tpu as pltpu


def residual_attention_block_kernel(
    x_ref, k_ref, v_ref, m_ref,
    ln1_g_ref, ln1_b_ref, win_ref, bin_ref, wout_ref, bout_ref,
    ln2_g_ref, ln2_b_ref, wfc_ref, bfc_ref, wproj_ref, bproj_ref,
    out_ref, *, n_head, head_dim):
  eps = jnp.float32(1e-5)
  neg_big = jnp.float32(-1e30)   # finite: avoids NaN if a row is fully masked
  inv_scale = jnp.float32(1.0 / math.sqrt(head_dim))
  bf16 = jnp.bfloat16
  f32 = jnp.float32

  x = x_ref[0]                   # (Q, D)      f32
  k = k_ref[0]                   # (H, L, Ch)  bf16 (head-leading)
  v = v_ref[0]                   # (H, L, Ch)  bf16
  valid = m_ref[...] > 0.5       # (1, 1, L) bool; hoisted, reused by both wheres
  nq = x.shape[0]                # Q (static)

  # ---- ln_1 (fp32 LayerNorm) ----
  mu = jnp.mean(x, axis=-1, keepdims=True)
  var = jnp.mean((x - mu) ** 2, axis=-1, keepdims=True)
  xn = (x - mu) * jax.lax.rsqrt(var + eps) * ln1_g_ref[...] + ln1_b_ref[...]

  # ---- in_proj: one (Q, D) @ (D, 2D) bf16 GEMM, fp32 accumulate ----
  # Column layout follows the PyTorch .view(..., H, 2*Ch): head h occupies
  # columns [h*2Ch, (h+1)*2Ch); first Ch = smax query (pre-scaled by 1/sqrt(Ch)
  # in the wrapper), last Ch = coda query (unscaled).
  q_all = jnp.dot(xn.astype(bf16), win_ref[...],
                  preferred_element_type=f32) + bin_ref[...]          # (Q, 2D)

  # Single relayout: lane-major heads -> head-leading (H, Q, 2Ch).
  qh = jnp.concatenate(
      [q_all[None, :, h * 2 * head_dim:(h + 1) * 2 * head_dim]
       for h in range(n_head)], axis=0)                               # (H, Q, 2Ch)
  q0 = qh[..., :head_dim]         # smax queries (already scaled)     f32
  q1 = qh[..., head_dim:]         # coda queries (unscaled)           f32

  # ---- fused QK^T for both branches ----
  # Stack the smax queries and the (scaled) coda queries along the M axis so a
  # single head-batched MXU contraction serves both branches.
  q_both = jnp.concatenate([q0, q1 * inv_scale], axis=1).astype(bf16)  # (H, 2Q, Ch)
  s_both = jnp.einsum('hqc,hkc->hqk', q_both, k,
                      preferred_element_type=f32)                      # (H, 2Q, L)
  s = s_both[:, :nq, :]                                                # smax logits
  a = jnp.tanh(s_both[:, nq:, :])                                      # coda affinities

  # ---- softmax branch: masked softmax over keys ----
  s = jnp.where(valid, s, neg_big)
  s_max = jnp.max(s, axis=-1, keepdims=True)
  e = jnp.exp(s - s_max)
  smax = e * pl.reciprocal(jnp.sum(e, axis=-1, keepdims=True), approx=True)

  # ---- coda branch (Compositional De-Attention) ----
  # The gate pairs query position l with key position l (requires Q == L).
  gate = -jnp.sum(jnp.abs(q1 - k.astype(f32)), axis=-1) * inv_scale   # (H, L)
  gate = 2.0 * jax.nn.sigmoid(gate)
  gate = jnp.where(valid[0], gate, 0.0)                               # (H, L)
  coda = a * gate[:, None, :]                                         # (H, Q, L)

  # ---- mix = aff @ V (head-batched), lane-dense head merge, out_proj ----
  # The 1/n_act (=0.5) average is folded into w_out offline in the wrapper.
  aff = (smax + coda).astype(bf16)                                    # (H, Q, L)
  mix = jnp.einsum('hql,hlc->hqc', aff, v,
                   preferred_element_type=f32)                        # (H, Q, Ch)
  mix_flat = jnp.concatenate([mix[h] for h in range(n_head)], axis=-1)  # (Q, D)
  attn = jnp.dot(mix_flat.astype(bf16), wout_ref[...],
                 preferred_element_type=f32) + bout_ref[...]
  x1 = x + attn

  # ---- ln_2 + MLP (c_fc -> QuickGELU -> dropout(identity) -> c_proj) ----
  mu2 = jnp.mean(x1, axis=-1, keepdims=True)
  var2 = jnp.mean((x1 - mu2) ** 2, axis=-1, keepdims=True)
  xn2 = (x1 - mu2) * jax.lax.rsqrt(var2 + eps) * ln2_g_ref[...] + ln2_b_ref[...]
  hdd = jnp.dot(xn2.astype(bf16), wfc_ref[...],
                preferred_element_type=f32) + bfc_ref[...]
  g = hdd * jax.nn.sigmoid(1.702 * hdd)
  # TODO(synk): nn.Dropout treated as identity (inference-mode / p = 0).
  mlp = jnp.dot(g.astype(bf16), wproj_ref[...],
                preferred_element_type=f32) + bproj_ref[...]

  out_ref[0] = x1 + mlp


def residual_attention_block(x, k4, v4, m_bool, params):
  """x: (N,Q,D) f32; k4, v4: (N,L,H,Ch) f32; m_bool: (N,L) bool (True=valid)."""
  n, Q, D = x.shape
  _, L, H, Ch = k4.shape
  assert H * Ch == D
  assert Q == L, "coda gate pairs query i with key i (reference requires Q == L)"

  bf16 = jnp.bfloat16
  scale = math.sqrt(Ch)

  # Head-leading bf16 layout for k/v (free XLA work outside the kernel).
  k = jnp.transpose(k4, (0, 2, 1, 3)).astype(bf16)   # (N, H, L, Ch)
  v = jnp.transpose(v4, (0, 2, 1, 3)).astype(bf16)   # (N, H, L, Ch)
  m = m_bool.astype(jnp.float32).reshape(n, 1, L)

  # Fold 1/sqrt(Ch) of the smax query (activation 0) into w_in / b_in offline.
  # Column layout (H, 2, Ch) mirrors the PyTorch .view(..., H, 2*Ch).split(Ch).
  act_scale = jnp.array([1.0 / scale, 1.0], jnp.float32).reshape(1, 1, 2, 1)
  w_in = (params["w_in"].reshape(D, H, 2, Ch) * act_scale).reshape(D, 2 * D)
  b_in = (params["b_in"].reshape(1, H, 2, Ch) * act_scale).reshape(1, 2 * D)
  # Fold the 1/n_act (=0.5) affinity average into w_out (bias untouched):
  # (0.5*mix) @ W + b == mix @ (0.5*W) + b.
  w_out = (0.5 * params["w_out"])

  weights = [
      params["ln1_g"], params["ln1_b"],
      w_in.astype(bf16), b_in,
      w_out.astype(bf16), params["b_out"],
      params["ln2_g"], params["ln2_b"],
      params["w_fc"].astype(bf16), params["b_fc"],
      params["w_proj"].astype(bf16), params["b_proj"],
  ]

  batched3 = lambda i: (i, 0, 0)
  batched4 = lambda i: (i, 0, 0, 0)
  replicated = lambda i: (0, 0)

  kernel = functools.partial(
      residual_attention_block_kernel, n_head=H, head_dim=Ch)

  # Advisory cost estimate so XLA can schedule neighbouring ops around us.
  gemm_flops = 2 * Q * D * (2 * D + D + 4 * D + 4 * D)   # in/out_proj, c_fc, c_proj
  attn_flops = 3 * 2 * H * Q * L * Ch                    # fused QK^T (2 branches), aff @ v
  flops = n * (gemm_flops + attn_flops)
  transcendentals = n * (2 * H * Q * L + H * L + 4 * Q * D + H * Q)
  args = [x, k, v, m] + weights
  bytes_accessed = (sum(int(a.size) * a.dtype.itemsize for a in args)
                    + n * Q * D * 4)

  def build(weight_mode):
    if weight_mode is None:
      wspec = lambda w: pl.BlockSpec(w.shape, replicated)
    else:
      wspec = lambda w: pl.BlockSpec(w.shape, replicated,
                                     pipeline_mode=weight_mode)
    in_specs = [
        pl.BlockSpec((1, Q, D), batched3),
        pl.BlockSpec((1, H, L, Ch), batched4),
        pl.BlockSpec((1, H, L, Ch), batched4),
        pl.BlockSpec((1, 1, L), batched3),
    ] + [wspec(w) for w in weights]
    return pl.pallas_call(
        kernel,
        out_shape=jax.ShapeDtypeStruct((n, Q, D), jnp.float32),
        grid=(n,),
        in_specs=in_specs,
        out_specs=pl.BlockSpec((1, Q, D), batched3),
        compiler_params=pltpu.CompilerParams(
            dimension_semantics=("parallel",),       # shards batch over TCs (v7x)
            vmem_limit_bytes=64 * 1024 * 1024),      # above v5e/v6e scoped defaults
        cost_estimate=pl.CostEstimate(
            flops=flops, transcendentals=transcendentals,
            bytes_accessed=bytes_accessed),
    )

  try:
    # Grid-invariant weights: request single buffering (halves weight VMEM,
    # matters at real CLIP sizes on v7x's 64 MiB VMEM).
    out = build(pl.Buffered(1))(*args)
  except Exception:
    # TODO(synk): pipeline_mode=pl.Buffered(1) unsupported on this JAX version;
    # fall back to default double-buffered weight blocks.
    out = build(None)(*args)
  return out


def reference_forward(x, k4, v4, m_bool, params):
  """Pure-JAX fp32 reference mirroring the PyTorch module (attn_mode=[], p_drop=0)."""
  n, Q, D = x.shape
  _, L, H, Ch = k4.shape
  eps = 1e-5
  scale = math.sqrt(Ch)

  def ln(z, g, b):
    mu = z.mean(-1, keepdims=True)
    var = ((z - mu) ** 2).mean(-1, keepdims=True)
    return (z - mu) / jnp.sqrt(var + eps) * g + b

  xn = ln(x, params["ln1_g"], params["ln1_b"])
  q_all = xn @ params["w_in"] + params["b_in"]           # (n,Q,2D)
  q_all = q_all.reshape(n, Q, H, 2 * Ch)
  q0, q1 = q_all[..., :Ch], q_all[..., Ch:]
  m4 = m_bool[:, None, :, None]                          # (n,1,L,1)

  # smax
  s = jnp.einsum("nqhc,nkhc->nqkh", q0 / scale, k4)
  s = jnp.where(m4, s, -jnp.inf)
  smax = jax.nn.softmax(s, axis=-2)
  # coda
  a = jnp.tanh(jnp.einsum("nqhc,nkhc->nqkh", q1 / scale, k4))
  gate = -jnp.sum(jnp.abs(q1 - k4), axis=-1)[:, None] / scale   # (n,1,L,H)
  gate = 2.0 * jax.nn.sigmoid(gate)
  gate = jnp.where(m4, gate, 0.0)
  aff = (smax + a * gate) / 2.0

  mix = jnp.einsum("nqlh,nlhc->nqhc", aff, v4)
  attn = mix.reshape(n, Q, D) @ params["w_out"] + params["b_out"]
  x1 = x + attn

  xn2 = ln(x1, params["ln2_g"], params["ln2_b"])
  hdd = xn2 @ params["w_fc"] + params["b_fc"]
  g = hdd * jax.nn.sigmoid(1.702 * hdd)
  return x1 + g @ params["w_proj"] + params["b_proj"]


if __name__ == "__main__":
  # Small but lane-aligned shapes: batch=2, queries = keys = 8, d_model=128,
  # n_head=4 (head_dim=32), n_act=2, MLP hidden=512.
  N, Q, D, H = 2, 8, 128, 4
  Ch = D // H
  L = Q

  key = jax.random.PRNGKey(0)
  ks = jax.random.split(key, 16)

  x = jax.random.normal(ks[0], (N, Q, D), jnp.float32)
  k4 = jax.random.normal(ks[1], (N, L, H, Ch), jnp.float32)
  v4 = jax.random.normal(ks[2], (N, L, H, Ch), jnp.float32)
  # frame validity mask: batch 0 fully valid, batch 1 has 3 padded frames
  valid_len = jnp.array([L, L - 3])
  m_bool = jnp.arange(L)[None, :] < valid_len[:, None]

  def lin_w(k_, fan_in, shape):
    return jax.random.normal(k_, shape, jnp.float32) / math.sqrt(fan_in)

  params = {
      "ln1_g": 1.0 + 0.1 * jax.random.normal(ks[3], (1, D), jnp.float32),
      "ln1_b": 0.1 * jax.random.normal(ks[4], (1, D), jnp.float32),
      "w_in": lin_w(ks[5], D, (D, 2 * D)),
      "b_in": 0.1 * jax.random.normal(ks[6], (1, 2 * D), jnp.float32),
      "w_out": lin_w(ks[7], D, (D, D)),
      "b_out": 0.1 * jax.random.normal(ks[8], (1, D), jnp.float32),
      "ln2_g": 1.0 + 0.1 * jax.random.normal(ks[9], (1, D), jnp.float32),
      "ln2_b": 0.1 * jax.random.normal(ks[10], (1, D), jnp.float32),
      "w_fc": lin_w(ks[11], D, (D, 4 * D)),
      "b_fc": 0.1 * jax.random.normal(ks[12], (1, 4 * D), jnp.float32),
      "w_proj": lin_w(ks[13], 4 * D, (4 * D, D)),
      "b_proj": 0.1 * jax.random.normal(ks[14], (1, D), jnp.float32),
  }

  out = residual_attention_block(x, k4, v4, m_bool, params)
  out = jax.block_until_ready(out)

  ref = reference_forward(x, k4, v4, m_bool, params)
  # Kernel runs its GEMMs (and k/v) in bf16 with fp32 accumulation; allow
  # mixed-precision deviation vs. the fp32 reference.
  max_err = float(jnp.max(jnp.abs(out - ref)))
  assert max_err < 0.15, f"mismatch vs reference: max_err={max_err}"

  print("KERNEL_OK")
</pallas_src>

<mosaic_0001>
module attributes {stable_mosaic.version = 11 : i64} {
  func.func @residual_attention_block_kernel(%arg0: i32, %arg1: memref<1x8x128xf32, #tpu.memory_space<vmem>>, %arg2: memref<1x4x8x32xbf16, #tpu.memory_space<vmem>>, %arg3: memref<1x4x8x32xbf16, #tpu.memory_space<vmem>>, %arg4: memref<1x1x8xf32, #tpu.memory_space<vmem>>, %arg5: memref<1x128xf32, #tpu.memory_space<vmem>>, %arg6: memref<1x128xf32, #tpu.memory_space<vmem>>, %arg7: memref<128x256xbf16, #tpu.memory_space<vmem>>, %arg8: memref<1x256xf32, #tpu.memory_space<vmem>>, %arg9: memref<128x128xbf16, #tpu.memory_space<vmem>>, %arg10: memref<1x128xf32, #tpu.memory_space<vmem>>, %arg11: memref<1x128xf32, #tpu.memory_space<vmem>>, %arg12: memref<1x128xf32, #tpu.memory_space<vmem>>, %arg13: memref<128x512xbf16, #tpu.memory_space<vmem>>, %arg14: memref<1x512xf32, #tpu.memory_space<vmem>>, %arg15: memref<512x128xbf16, #tpu.memory_space<vmem>>, %arg16: memref<1x128xf32, #tpu.memory_space<vmem>>, %arg17: memref<1x8x128xf32, #tpu.memory_space<vmem>>) attributes {dimension_semantics = [#tpu.dimension_semantics<parallel>], iteration_bounds = array<i64: 2>, scalar_prefetch = 0 : i64, scratch_operands = 0 : i64, tpu.core_type = #tpu.core_type<tc>, window_params = [{transform_indices = @transform_0, window_bounds = array<i64: 1, 8, 128>}, {transform_indices = @transform_1, window_bounds = array<i64: 1, 4, 8, 32>}, {transform_indices = @transform_2, window_bounds = array<i64: 1, 4, 8, 32>}, {transform_indices = @transform_3, window_bounds = array<i64: 1, 1, 8>}, {pipeline_mode = #tpu.pipeline_mode<synchronous>, transform_indices = @transform_4, window_bounds = array<i64: 1, 128>}, {pipeline_mode = #tpu.pipeline_mode<synchronous>, transform_indices = @transform_5, window_bounds = array<i64: 1, 128>}, {pipeline_mode = #tpu.pipeline_mode<synchronous>, transform_indices = @transform_6, window_bounds = array<i64: 128, 256>}, {pipeline_mode = #tpu.pipeline_mode<synchronous>, transform_indices = @transform_7, window_bounds = array<i64: 1, 256>}, {pipeline_mode = #tpu.pipeline_mode<synchronous>, transform_indices = @transform_8, window_bounds = array<i64: 128, 128>}, {pipeline_mode = #tpu.pipeline_mode<synchronous>, transform_indices = @transform_9, window_bounds = array<i64: 1, 128>}, {pipeline_mode = #tpu.pipeline_mode<synchronous>, transform_indices = @transform_10, window_bounds = array<i64: 1, 128>}, {pipeline_mode = #tpu.pipeline_mode<synchronous>, transform_indices = @transform_11, window_bounds = array<i64: 1, 128>}, {pipeline_mode = #tpu.pipeline_mode<synchronous>, transform_indices = @transform_12, window_bounds = array<i64: 128, 512>}, {pipeline_mode = #tpu.pipeline_mode<synchronous>, transform_indices = @transform_13, window_bounds = array<i64: 1, 512>}, {pipeline_mode = #tpu.pipeline_mode<synchronous>, transform_indices = @transform_14, window_bounds = array<i64: 512, 128>}, {pipeline_mode = #tpu.pipeline_mode<synchronous>, transform_indices = @transform_15, window_bounds = array<i64: 1, 128>}, {transform_indices = @transform_16, window_bounds = array<i64: 1, 8, 128>}]} {
    %c0 = arith.constant 0 : index
    %c0_0 = arith.constant 0 : index
    %c0_1 = arith.constant 0 : index
    %0 = vector.load %arg1[%c0, %c0_0, %c0_1] : memref<1x8x128xf32, #tpu.memory_space<vmem>>, vector<1x8x128xf32>
    %1 = vector.shape_cast %0 : vector<1x8x128xf32> to vector<8x128xf32>
    %c0_2 = arith.constant 0 : index
    %c0_3 = arith.constant 0 : index
    %c0_4 = arith.constant 0 : index
    %c0_5 = arith.constant 0 : index
    %2 = vector.load %arg2[%c0_2, %c0_3, %c0_4, %c0_5] : memref<1x4x8x32xbf16, #tpu.memory_space<vmem>>, vector<1x4x8x32xbf16>
    %3 = vector.shape_cast %2 : vector<1x4x8x32xbf16> to vector<4x8x32xbf16>
    %c0_6 = arith.constant 0 : index
    %c0_7 = arith.constant 0 : index
    %c0_8 = arith.constant 0 : index
    %c0_9 = arith.constant 0 : index
    %4 = vector.load %arg3[%c0_6, %c0_7, %c0_8, %c0_9] : memref<1x4x8x32xbf16, #tpu.memory_space<vmem>>, vector<1x4x8x32xbf16>
    %5 = vector.shape_cast %4 : vector<1x4x8x32xbf16> to vector<4x8x32xbf16>
    %c0_10 = arith.constant 0 : index
    %c0_11 = arith.constant 0 : index
    %c0_12 = arith.constant 0 : index
    %6 = vector.load %arg4[%c0_10, %c0_11, %c0_12] : memref<1x1x8xf32, #tpu.memory_space<vmem>>, vector<1x1x8xf32>
    %cst = arith.constant 5.000000e-01 : f32
    %7 = vector.broadcast %cst : f32 to vector<1x1x8xf32>
    %8 = arith.cmpf ogt, %6, %7 : vector<1x1x8xf32>
    %cst_13 = arith.constant dense<0.000000e+00> : vector<8xf32>
    %9 = vector.multi_reduction <add>, %1, %cst_13 [1] : vector<8x128xf32> to vector<8xf32>
    %10 = vector.shape_cast %9 : vector<8xf32> to vector<8x1xf32>
    %cst_14 = arith.constant 1.280000e+02 : f32
    %11 = vector.broadcast %cst_14 : f32 to vector<8x1xf32>
    %12 = arith.divf %10, %11 : vector<8x1xf32>
    %13 = vector.broadcast %12 : vector<8x1xf32> to vector<8x128xf32>
    %14 = arith.subf %1, %13 : vector<8x128xf32>
    %15 = arith.mulf %14, %14 : vector<8x128xf32>
    %cst_15 = arith.constant dense<0.000000e+00> : vector<8xf32>
    %16 = vector.multi_reduction <add>, %15, %cst_15 [1] : vector<8x128xf32> to vector<8xf32>
    %17 = vector.shape_cast %16 : vector<8xf32> to vector<8x1xf32>
    %cst_16 = arith.constant 1.280000e+02 : f32
    %18 = vector.broadcast %cst_16 : f32 to vector<8x1xf32>
    %19 = arith.divf %17, %18 : vector<8x1xf32>
    %20 = vector.broadcast %12 : vector<8x1xf32> to vector<8x128xf32>
    %21 = arith.subf %1, %20 : vector<8x128xf32>
    %cst_17 = arith.constant 9.99999974E-6 : f32
    %22 = vector.broadcast %cst_17 : f32 to vector<8x1xf32>
    %23 = arith.addf %19, %22 : vector<8x1xf32>
    %24 = math.rsqrt %23 : vector<8x1xf32>
    %25 = vector.broadcast %24 : vector<8x1xf32> to vector<8x128xf32>
    %26 = arith.mulf %21, %25 : vector<8x128xf32>
    %c0_18 = arith.constant 0 : index
    %c0_19 = arith.constant 0 : index
    %27 = vector.load %arg5[%c0_18, %c0_19] : memref<1x128xf32, #tpu.memory_space<vmem>>, vector<1x128xf32>
    %28 = vector.broadcast %27 : vector<1x128xf32> to vector<8x128xf32>
    %29 = arith.mulf %26, %28 : vector<8x128xf32>
    %c0_20 = arith.constant 0 : index
    %c0_21 = arith.constant 0 : index
    %30 = vector.load %arg6[%c0_20, %c0_21] : memref<1x128xf32, #tpu.memory_space<vmem>>, vector<1x128xf32>
    %31 = vector.broadcast %30 : vector<1x128xf32> to vector<8x128xf32>
    %32 = arith.addf %29, %31 : vector<8x128xf32>
    %33 = arith.truncf %32 : vector<8x128xf32> to vector<8x128xbf16>
    %c0_22 = arith.constant 0 : index
    %c0_23 = arith.constant 0 : index
    %34 = vector.load %arg7[%c0_22, %c0_23] : memref<128x256xbf16, #tpu.memory_space<vmem>>, vector<128x256xbf16>
    %cst_24 = arith.constant dense<0.000000e+00> : vector<8x256xf32>
    %35 = tpu.matmul %33, %34, %cst_24 {dimension_numbers = #tpu.dot_dimension_numbers<[1], [0], [0], [1], [0, 0, 1, 1], [], []>} : vector<8x128xbf16>, vector<128x256xbf16>, vector<8x256xf32> -> vector<8x256xf32>
    %c0_25 = arith.constant 0 : index
    %c0_26 = arith.constant 0 : index
    %36 = vector.load %arg8[%c0_25, %c0_26] : memref<1x256xf32, #tpu.memory_space<vmem>>, vector<1x256xf32>
    %37 = vector.broadcast %36 : vector<1x256xf32> to vector<8x256xf32>
    %38 = arith.addf %35, %37 : vector<8x256xf32>
    %39 = vector.extract_strided_slice %38 {offsets = [0, 0], sizes = [8, 64], strides = [1, 1]} : vector<8x256xf32> to vector<8x64xf32>
    %40 = vector.shape_cast %39 : vector<8x64xf32> to vector<1x8x64xf32>
    %41 = vector.extract_strided_slice %38 {offsets = [0, 64], sizes = [8, 64], strides = [1, 1]} : vector<8x256xf32> to vector<8x64xf32>
    %42 = vector.shape_cast %41 : vector<8x64xf32> to vector<1x8x64xf32>
    %43 = vector.extract_strided_slice %38 {offsets = [0, 128], sizes = [8, 64], strides = [1, 1]} : vector<8x256xf32> to vector<8x64xf32>
    %44 = vector.shape_cast %43 : vector<8x64xf32> to vector<1x8x64xf32>
    %45 = vector.extract_strided_slice %38 {offsets = [0, 192], sizes = [8, 64], strides = [1, 1]} : vector<8x256xf32> to vector<8x64xf32>
    %46 = vector.shape_cast %45 : vector<8x64xf32> to vector<1x8x64xf32>
    %47 = tpu.concatenate %40, %42, %44, %46 in 0 : vector<1x8x64xf32>, vector<1x8x64xf32>, vector<1x8x64xf32>, vector<1x8x64xf32> -> vector<4x8x64xf32>
    %48 = vector.extract_strided_slice %47 {offsets = [0, 0, 0], sizes = [4, 8, 32], strides = [1, 1, 1]} : vector<4x8x64xf32> to vector<4x8x32xf32>
    %49 = vector.extract_strided_slice %47 {offsets = [0, 0, 32], sizes = [4, 8, 32], strides = [1, 1, 1]} : vector<4x8x64xf32> to vector<4x8x32xf32>
    %cst_27 = arith.constant 0.176776692 : f32
    %50 = vector.broadcast %cst_27 : f32 to vector<4x8x32xf32>
    %51 = arith.mulf %49, %50 : vector<4x8x32xf32>
    %52 = tpu.concatenate %48, %51 in 1 : vector<4x8x32xf32>, vector<4x8x32xf32> -> vector<4x16x32xf32>
    %53 = arith.truncf %52 : vector<4x16x32xf32> to vector<4x16x32xbf16>
    "tpu.trace_start"() <{level = 10 : i32, message = "hqc,hkc->hqk"}> : () -> ()
    %cst_28 = arith.constant dense<0.000000e+00> : vector<4x16x8xf32>
    %54 = tpu.matmul %53, %3, %cst_28 {dimension_numbers = #tpu.dot_dimension_numbers<[2], [2], [1], [1], [0, 0, 0, 1, 1, 1], [0], [0]>} : vector<4x16x32xbf16>, vector<4x8x32xbf16>, vector<4x16x8xf32> -> vector<4x16x8xf32>
    "tpu.trace_stop"() : () -> ()
    %55 = vector.extract_strided_slice %54 {offsets = [0, 0, 0], sizes = [4, 8, 8], strides = [1, 1, 1]} : vector<4x16x8xf32> to vector<4x8x8xf32>
    %56 = vector.extract_strided_slice %54 {offsets = [0, 8, 0], sizes = [4, 8, 8], strides = [1, 1, 1]} : vector<4x16x8xf32> to vector<4x8x8xf32>
    %57 = math.tanh %56 : vector<4x8x8xf32>
    %cst_29 = arith.constant -1.000000e+30 : f32
    %58 = vector.shape_cast %8 : vector<1x1x8xi1> to vector<1x1x8xi1>
    %59 = vector.broadcast %58 : vector<1x1x8xi1> to vector<4x8x8xi1>
    %60 = vector.broadcast %cst_29 : f32 to vector<4x8x8xf32>
    %61 = arith.select %59, %55, %60 : vector<4x8x8xi1>, vector<4x8x8xf32>
    %cst_30 = arith.constant dense<0xFF800000> : vector<4x8xf32>
    %62 = vector.multi_reduction <maximumf>, %61, %cst_30 [2] : vector<4x8x8xf32> to vector<4x8xf32>
    %63 = vector.shape_cast %62 : vector<4x8xf32> to vector<4x8x1xf32>
    %64 = vector.broadcast %63 : vector<4x8x1xf32> to vector<4x8x8xf32>
    %65 = arith.subf %61, %64 : vector<4x8x8xf32>
    %66 = math.exp %65 : vector<4x8x8xf32>
    %cst_31 = arith.constant dense<0.000000e+00> : vector<4x8xf32>
    %67 = vector.multi_reduction <add>, %66, %cst_31 [2] : vector<4x8x8xf32> to vector<4x8xf32>
    %68 = vector.shape_cast %67 : vector<4x8xf32> to vector<4x8x1xf32>
    %69 = tpu.reciprocal %68 {approx = true} : vector<4x8x1xf32> -> vector<4x8x1xf32>
    %70 = vector.broadcast %69 : vector<4x8x1xf32> to vector<4x8x8xf32>
    %71 = arith.mulf %66, %70 : vector<4x8x8xf32>
    %72 = arith.extf %3 : vector<4x8x32xbf16> to vector<4x8x32xf32>
    %73 = arith.subf %49, %72 : vector<4x8x32xf32>
    %74 = math.absf %73 : vector<4x8x32xf32>
    %cst_32 = arith.constant dense<0.000000e+00> : vector<4x8xf32>
    %75 = vector.multi_reduction <add>, %74, %cst_32 [2] : vector<4x8x32xf32> to vector<4x8xf32>
    %cst_33 = arith.constant 0.000000e+00 : f32
    %76 = vector.broadcast %cst_33 : f32 to vector<4x8xf32>
    %77 = arith.subf %76, %75 : vector<4x8xf32>
    %cst_34 = arith.constant 0.176776692 : f32
    %78 = vector.broadcast %cst_34 : f32 to vector<4x8xf32>
    %79 = arith.mulf %77, %78 : vector<4x8xf32>
    %80 = arith.negf %79 : vector<4x8xf32>
    %81 = math.exp %80 : vector<4x8xf32>
    %cst_35 = arith.constant 1.000000e+00 : f32
    %82 = vector.broadcast %cst_35 : f32 to vector<4x8xf32>
    %83 = arith.addf %82, %81 : vector<4x8xf32>
    %84 = arith.divf %82, %83 : vector<4x8xf32>
    %cst_36 = arith.constant 2.000000e+00 : f32
    %85 = vector.broadcast %cst_36 : f32 to vector<4x8xf32>
    %86 = arith.mulf %85, %84 : vector<4x8xf32>
    %87 = vector.shape_cast %8 : vector<1x1x8xi1> to vector<1x8xi1>
    %cst_37 = arith.constant 0.000000e+00 : f32
    %88 = vector.shape_cast %87 : vector<1x8xi1> to vector<1x8xi1>
    %89 = vector.broadcast %88 : vector<1x8xi1> to vector<4x8xi1>
    %90 = vector.broadcast %cst_37 : f32 to vector<4x8xf32>
    %91 = arith.select %89, %86, %90 : vector<4x8xi1>, vector<4x8xf32>
    %92 = vector.shape_cast %91 : vector<4x8xf32> to vector<4x1x8xf32>
    %93 = vector.broadcast %92 : vector<4x1x8xf32> to vector<4x8x8xf32>
    %94 = arith.mulf %57, %93 : vector<4x8x8xf32>
    %95 = arith.addf %71, %94 : vector<4x8x8xf32>
    %96 = arith.truncf %95 : vector<4x8x8xf32> to vector<4x8x8xbf16>
    "tpu.trace_start"() <{level = 10 : i32, message = "hql,hlc->hqc"}> : () -> ()
    %cst_38 = arith.constant dense<0.000000e+00> : vector<4x8x32xf32>
    %97 = tpu.matmul %96, %5, %cst_38 {dimension_numbers = #tpu.dot_dimension_numbers<[2], [1], [1], [2], [0, 0, 0, 1, 1, 2], [0], [0]>} : vector<4x8x8xbf16>, vector<4x8x32xbf16>, vector<4x8x32xf32> -> vector<4x8x32xf32>
    "tpu.trace_stop"() : () -> ()
    %98 = vector.extract_strided_slice %97 {offsets = [0, 0, 0], sizes = [1, 8, 32], strides = [1, 1, 1]} : vector<4x8x32xf32> to vector<1x8x32xf32>
    %99 = vector.shape_cast %98 : vector<1x8x32xf32> to vector<8x32xf32>
    %100 = vector.extract_strided_slice %97 {offsets = [1, 0, 0], sizes = [1, 8, 32], strides = [1, 1, 1]} : vector<4x8x32xf32> to vector<1x8x32xf32>
    %101 = vector.shape_cast %100 : vector<1x8x32xf32> to vector<8x32xf32>
    %102 = vector.extract_strided_slice %97 {offsets = [2, 0, 0], sizes = [1, 8, 32], strides = [1, 1, 1]} : vector<4x8x32xf32> to vector<1x8x32xf32>
    %103 = vector.shape_cast %102 : vector<1x8x32xf32> to vector<8x32xf32>
    %104 = vector.extract_strided_slice %97 {offsets = [3, 0, 0], sizes = [1, 8, 32], strides = [1, 1, 1]} : vector<4x8x32xf32> to vector<1x8x32xf32>
    %105 = vector.shape_cast %104 : vector<1x8x32xf32> to vector<8x32xf32>
    %106 = tpu.concatenate %99, %101, %103, %105 in 1 : vector<8x32xf32>, vector<8x32xf32>, vector<8x32xf32>, vector<8x32xf32> -> vector<8x128xf32>
    %107 = arith.truncf %106 : vector<8x128xf32> to vector<8x128xbf16>
    %c0_39 = arith.constant 0 : index
    %c0_40 = arith.constant 0 : index
    %108 = vector.load %arg9[%c0_39, %c0_40] : memref<128x128xbf16, #tpu.memory_space<vmem>>, vector<128x128xbf16>
    %cst_41 = arith.constant dense<0.000000e+00> : vector<8x128xf32>
    %109 = tpu.matmul %107, %108, %cst_41 {dimension_numbers = #tpu.dot_dimension_numbers<[1], [0], [0], [1], [0, 0, 1, 1], [], []>} : vector<8x128xbf16>, vector<128x128xbf16>, vector<8x128xf32> -> vector<8x128xf32>
    %c0_42 = arith.constant 0 : index
    %c0_43 = arith.constant 0 : index
    %110 = vector.load %arg10[%c0_42, %c0_43] : memref<1x128xf32, #tpu.memory_space<vmem>>, vector<1x128xf32>
    %111 = vector.broadcast %110 : vector<1x128xf32> to vector<8x128xf32>
    %112 = arith.addf %109, %111 : vector<8x128xf32>
    %113 = arith.addf %1, %112 : vector<8x128xf32>
    %cst_44 = arith.constant dense<0.000000e+00> : vector<8xf32>
    %114 = vector.multi_reduction <add>, %113, %cst_44 [1] : vector<8x128xf32> to vector<8xf32>
    %115 = vector.shape_cast %114 : vector<8xf32> to vector<8x1xf32>
    %cst_45 = arith.constant 1.280000e+02 : f32
    %116 = vector.broadcast %cst_45 : f32 to vector<8x1xf32>
    %117 = arith.divf %115, %116 : vector<8x1xf32>
    %118 = vector.broadcast %117 : vector<8x1xf32> to vector<8x128xf32>
    %119 = arith.subf %113, %118 : vector<8x128xf32>
    %120 = arith.mulf %119, %119 : vector<8x128xf32>
    %cst_46 = arith.constant dense<0.000000e+00> : vector<8xf32>
    %121 = vector.multi_reduction <add>, %120, %cst_46 [1] : vector<8x128xf32> to vector<8xf32>
    %122 = vector.shape_cast %121 : vector<8xf32> to vector<8x1xf32>
    %cst_47 = arith.constant 1.280000e+02 : f32
    %123 = vector.broadcast %cst_47 : f32 to vector<8x1xf32>
    %124 = arith.divf %122, %123 : vector<8x1xf32>
    %125 = vector.broadcast %117 : vector<8x1xf32> to vector<8x128xf32>
    %126 = arith.subf %113, %125 : vector<8x128xf32>
    %cst_48 = arith.constant 9.99999974E-6 : f32
    %127 = vector.broadcast %cst_48 : f32 to vector<8x1xf32>
    %128 = arith.addf %124, %127 : vector<8x1xf32>
    %129 = math.rsqrt %128 : vector<8x1xf32>
    %130 = vector.broadcast %129 : vector<8x1xf32> to vector<8x128xf32>
    %131 = arith.mulf %126, %130 : vector<8x128xf32>
    %c0_49 = arith.constant 0 : index
    %c0_50 = arith.constant 0 : index
    %132 = vector.load %arg11[%c0_49, %c0_50] : memref<1x128xf32, #tpu.memory_space<vmem>>, vector<1x128xf32>
    %133 = vector.broadcast %132 : vector<1x128xf32> to vector<8x128xf32>
    %134 = arith.mulf %131, %133 : vector<8x128xf32>
    %c0_51 = arith.constant 0 : index
    %c0_52 = arith.constant 0 : index
    %135 = vector.load %arg12[%c0_51, %c0_52] : memref<1x128xf32, #tpu.memory_space<vmem>>, vector<1x128xf32>
    %136 = vector.broadcast %135 : vector<1x128xf32> to vector<8x128xf32>
    %137 = arith.addf %134, %136 : vector<8x128xf32>
    %138 = arith.truncf %137 : vector<8x128xf32> to vector<8x128xbf16>
    %c0_53 = arith.constant 0 : index
    %c0_54 = arith.constant 0 : index
    %139 = vector.load %arg13[%c0_53, %c0_54] : memref<128x512xbf16, #tpu.memory_space<vmem>>, vector<128x512xbf16>
    %cst_55 = arith.constant dense<0.000000e+00> : vector<8x512xf32>
    %140 = tpu.matmul %138, %139, %cst_55 {dimension_numbers = #tpu.dot_dimension_numbers<[1], [0], [0], [1], [0, 0, 1, 1], [], []>} : vector<8x128xbf16>, vector<128x512xbf16>, vector<8x512xf32> -> vector<8x512xf32>
    %c0_56 = arith.constant 0 : index
    %c0_57 = arith.constant 0 : index
    %141 = vector.load %arg14[%c0_56, %c0_57] : memref<1x512xf32, #tpu.memory_space<vmem>>, vector<1x512xf32>
    %142 = vector.broadcast %141 : vector<1x512xf32> to vector<8x512xf32>
    %143 = arith.addf %140, %142 : vector<8x512xf32>
    %cst_58 = arith.constant 1.702000e+00 : f32
    %144 = vector.broadcast %cst_58 : f32 to vector<8x512xf32>
    %145 = arith.mulf %144, %143 : vector<8x512xf32>
    %146 = arith.negf %145 : vector<8x512xf32>
    %147 = math.exp %146 : vector<8x512xf32>
    %cst_59 = arith.constant 1.000000e+00 : f32
    %148 = vector.broadcast %cst_59 : f32 to vector<8x512xf32>
    %149 = arith.addf %148, %147 : vector<8x512xf32>
    %150 = arith.divf %148, %149 : vector<8x512xf32>
    %151 = arith.mulf %143, %150 : vector<8x512xf32>
    %152 = arith.truncf %151 : vector<8x512xf32> to vector<8x512xbf16>
    %c0_60 = arith.constant 0 : index
    %c0_61 = arith.constant 0 : index
    %153 = vector.load %arg15[%c0_60, %c0_61] : memref<512x128xbf16, #tpu.memory_space<vmem>>, vector<512x128xbf16>
    %cst_62 = arith.constant dense<0.000000e+00> : vector<8x128xf32>
    %154 = tpu.matmul %152, %153, %cst_62 {dimension_numbers = #tpu.dot_dimension_numbers<[1], [0], [0], [1], [0, 0, 1, 1], [], []>} : vector<8x512xbf16>, vector<512x128xbf16>, vector<8x128xf32> -> vector<8x128xf32>
    %c0_63 = arith.constant 0 : index
    %c0_64 = arith.constant 0 : index
    %155 = vector.load %arg16[%c0_63, %c0_64] : memref<1x128xf32, #tpu.memory_space<vmem>>, vector<1x128xf32>
    %156 = vector.broadcast %155 : vector<1x128xf32> to vector<8x128xf32>
    %157 = arith.addf %154, %156 : vector<8x128xf32>
    %158 = arith.addf %113, %157 : vector<8x128xf32>
    %c0_65 = arith.constant 0 : index
    %c0_66 = arith.constant 0 : index
    %c0_67 = arith.constant 0 : index
    %159 = vector.load %arg17[%c0_65, %c0_66, %c0_67] : memref<1x8x128xf32, #tpu.memory_space<vmem>>, vector<1x8x128xf32>
    %160 = vector.shape_cast %159 : vector<1x8x128xf32> to vector<8x128xf32>
    %161 = vector.shape_cast %158 : vector<8x128xf32> to vector<1x8x128xf32>
    tpu.vector_store %arg17[%c0_65, %c0_66, %c0_67], %161 {strides = array<i32>} : memref<1x8x128xf32, #tpu.memory_space<vmem>>, vector<1x8x128xf32>,
    return
  }
  func.func @transform_0(%arg0: i32) -> (i32, i32, i32) {
    %c0_i32 = arith.constant 0 : i32
    %c0_i32_0 = arith.constant 0 : i32
    %c0_i32_1 = arith.constant 0 : i32
    return %arg0, %c0_i32, %c0_i32_0 : i32, i32, i32
  }
  func.func @transform_1(%arg0: i32) -> (i32, i32, i32, i32) {
    %c0_i32 = arith.constant 0 : i32
    %c0_i32_0 = arith.constant 0 : i32
    %c0_i32_1 = arith.constant 0 : i32
    %c0_i32_2 = arith.constant 0 : i32
    return %arg0, %c0_i32, %c0_i32_0, %c0_i32_1 : i32, i32, i32, i32
  }
  func.func @transform_2(%arg0: i32) -> (i32, i32, i32, i32) {
    %c0_i32 = arith.constant 0 : i32
    %c0_i32_0 = arith.constant 0 : i32
    %c0_i32_1 = arith.constant 0 : i32
    %c0_i32_2 = arith.constant 0 : i32
    return %arg0, %c0_i32, %c0_i32_0, %c0_i32_1 : i32, i32, i32, i32
  }
  func.func @transform_3(%arg0: i32) -> (i32, i32, i32) {
    %c0_i32 = arith.constant 0 : i32
    %c0_i32_0 = arith.constant 0 : i32
    %c0_i32_1 = arith.constant 0 : i32
    return %arg0, %c0_i32, %c0_i32_0 : i32, i32, i32
  }
  func.func @transform_4(%arg0: i32) -> (i32, i32) {
    %c0_i32 = arith.constant 0 : i32
    %c0_i32_0 = arith.constant 0 : i32
    %c0_i32_1 = arith.constant 0 : i32
    return %c0_i32, %c0_i32_0 : i32, i32
  }
  func.func @transform_5(%arg0: i32) -> (i32, i32) {
    %c0_i32 = arith.constant 0 : i32
    %c0_i32_0 = arith.constant 0 : i32
    %c0_i32_1 = arith.constant 0 : i32
    return %c0_i32, %c0_i32_0 : i32, i32
  }
  func.func @transform_6(%arg0: i32) -> (i32, i32) {
    %c0_i32 = arith.constant 0 : i32
    %c0_i32_0 = arith.constant 0 : i32
    %c0_i32_1 = arith.constant 0 : i32
    return %c0_i32, %c0_i32_0 : i32, i32
  }
  func.func @transform_7(%arg0: i32) -> (i32, i32) {
    %c0_i32 = arith.constant 0 : i32
    %c0_i32_0 = arith.constant 0 : i32
    %c0_i32_1 = arith.constant 0 : i32
    return %c0_i32, %c0_i32_0 : i32, i32
  }
  func.func @transform_8(%arg0: i32) -> (i32, i32) {
    %c0_i32 = arith.constant 0 : i32
    %c0_i32_0 = arith.constant 0 : i32
    %c0_i32_1 = arith.constant 0 : i32
    return %c0_i32, %c0_i32_0 : i32, i32
  }
  func.func @transform_9(%arg0: i32) -> (i32, i32) {
    %c0_i32 = arith.constant 0 : i32
    %c0_i32_0 = arith.constant 0 : i32
    %c0_i32_1 = arith.constant 0 : i32
    return %c0_i32, %c0_i32_0 : i32, i32
  }
  func.func @transform_10(%arg0: i32) -> (i32, i32) {
    %c0_i32 = arith.constant 0 : i32
    %c0_i32_0 = arith.constant 0 : i32
    %c0_i32_1 = arith.constant 0 : i32
    return %c0_i32, %c0_i32_0 : i32, i32
  }
  func.func @transform_11(%arg0: i32) -> (i32, i32) {
    %c0_i32 = arith.constant 0 : i32
    %c0_i32_0 = arith.constant 0 : i32
    %c0_i32_1 = arith.constant 0 : i32
    return %c0_i32, %c0_i32_0 : i32, i32
  }
  func.func @transform_12(%arg0: i32) -> (i32, i32) {
    %c0_i32 = arith.constant 0 : i32
    %c0_i32_0 = arith.constant 0 : i32
    %c0_i32_1 = arith.constant 0 : i32
    return %c0_i32, %c0_i32_0 : i32, i32
  }
  func.func @transform_13(%arg0: i32) -> (i32, i32) {
    %c0_i32 = arith.constant 0 : i32
    %c0_i32_0 = arith.constant 0 : i32
    %c0_i32_1 = arith.constant 0 : i32
    return %c0_i32, %c0_i32_0 : i32, i32
  }
  func.func @transform_14(%arg0: i32) -> (i32, i32) {
    %c0_i32 = arith.constant 0 : i32
    %c0_i32_0 = arith.constant 0 : i32
    %c0_i32_1 = arith.constant 0 : i32
    return %c0_i32, %c0_i32_0 : i32, i32
  }
  func.func @transform_15(%arg0: i32) -> (i32, i32) {
    %c0_i32 = arith.constant 0 : i32
    %c0_i32_0 = arith.constant 0 : i32
    %c0_i32_1 = arith.constant 0 : i32
    return %c0_i32, %c0_i32_0 : i32, i32
  }
  func.func @transform_16(%arg0: i32) -> (i32, i32, i32) {
    %c0_i32 = arith.constant 0 : i32
    %c0_i32_0 = arith.constant 0 : i32
    %c0_i32_1 = arith.constant 0 : i32
    return %arg0, %c0_i32, %c0_i32_0 : i32, i32, i32
  }
}

module attributes {stable_mosaic.version = 11 : i64} {
  func.func @residual_attention_block_kernel(%arg0: i32, %arg1: memref<1x8x128xf32, #tpu.memory_space<vmem>>, %arg2: memref<1x4x8x32xbf16, #tpu.memory_space<vmem>>, %arg3: memref<1x4x8x32xbf16, #tpu.memory_space<vmem>>, %arg4: memref<1x1x8xf32, #tpu.memory_space<vmem>>, %arg5: memref<1x128xf32, #tpu.memory_space<vmem>>, %arg6: memref<1x128xf32, #tpu.memory_space<vmem>>, %arg7: memref<128x256xbf16, #tpu.memory_space<vmem>>, %arg8: memref<1x256xf32, #tpu.memory_space<vmem>>, %arg9: memref<128x128xbf16, #tpu.memory_space<vmem>>, %arg10: memref<1x128xf32, #tpu.memory_space<vmem>>, %arg11: memref<1x128xf32, #tpu.memory_space<vmem>>, %arg12: memref<1x128xf32, #tpu.memory_space<vmem>>, %arg13: memref<128x512xbf16, #tpu.memory_space<vmem>>, %arg14: memref<1x512xf32, #tpu.memory_space<vmem>>, %arg15: memref<512x128xbf16, #tpu.memory_space<vmem>>, %arg16: memref<1x128xf32, #tpu.memory_space<vmem>>, %arg17: memref<1x8x128xf32, #tpu.memory_space<vmem>>) attributes {dimension_semantics = [#tpu.dimension_semantics<parallel>], iteration_bounds = array<i64: 2>, scalar_prefetch = 0 : i64, scratch_operands = 0 : i64, tpu.core_type = #tpu.core_type<tc>, window_params = [{transform_indices = @transform_0, window_bounds = array<i64: 1, 8, 128>}, {transform_indices = @transform_1, window_bounds = array<i64: 1, 4, 8, 32>}, {transform_indices = @transform_2, window_bounds = array<i64: 1, 4, 8, 32>}, {transform_indices = @transform_3, window_bounds = array<i64: 1, 1, 8>}, {pipeline_mode = #tpu.pipeline_mode<synchronous>, transform_indices = @transform_4, window_bounds = array<i64: 1, 128>}, {pipeline_mode = #tpu.pipeline_mode<synchronous>, transform_indices = @transform_5, window_bounds = array<i64: 1, 128>}, {pipeline_mode = #tpu.pipeline_mode<synchronous>, transform_indices = @transform_6, window_bounds = array<i64: 128, 256>}, {pipeline_mode = #tpu.pipeline_mode<synchronous>, transform_indices = @transform_7, window_bounds = array<i64: 1, 256>}, {pipeline_mode = #tpu.pipeline_mode<synchronous>, transform_indices = @transform_8, window_bounds = array<i64: 128, 128>}, {pipeline_mode = #tpu.pipeline_mode<synchronous>, transform_indices = @transform_9, window_bounds = array<i64: 1, 128>}, {pipeline_mode = #tpu.pipeline_mode<synchronous>, transform_indices = @transform_10, window_bounds = array<i64: 1, 128>}, {pipeline_mode = #tpu.pipeline_mode<synchronous>, transform_indices = @transform_11, window_bounds = array<i64: 1, 128>}, {pipeline_mode = #tpu.pipeline_mode<synchronous>, transform_indices = @transform_12, window_bounds = array<i64: 128, 512>}, {pipeline_mode = #tpu.pipeline_mode<synchronous>, transform_indices = @transform_13, window_bounds = array<i64: 1, 512>}, {pipeline_mode = #tpu.pipeline_mode<synchronous>, transform_indices = @transform_14, window_bounds = array<i64: 512, 128>}, {pipeline_mode = #tpu.pipeline_mode<synchronous>, transform_indices = @transform_15, window_bounds = array<i64: 1, 128>}, {transform_indices = @transform_16, window_bounds = array<i64: 1, 8, 128>}]} {
    %c0 = arith.constant 0 : index
    %c0_0 = arith.constant 0 : index
    %c0_1 = arith.constant 0 : index
    %0 = vector.load %arg1[%c0, %c0_0, %c0_1] : memref<1x8x128xf32, #tpu.memory_space<vmem>>, vector<1x8x128xf32>
    %1 = vector.shape_cast %0 : vector<1x8x128xf32> to vector<8x128xf32>
    %c0_2 = arith.constant 0 : index
    %c0_3 = arith.constant 0 : index
    %c0_4 = arith.constant 0 : index
    %c0_5 = arith.constant 0 : index
    %2 = vector.load %arg2[%c0_2, %c0_3, %c0_4, %c0_5] : memref<1x4x8x32xbf16, #tpu.memory_space<vmem>>, vector<1x4x8x32xbf16>
    %3 = vector.shape_cast %2 : vector<1x4x8x32xbf16> to vector<4x8x32xbf16>
    %c0_6 = arith.constant 0 : index
    %c0_7 = arith.constant 0 : index
    %c0_8 = arith.constant 0 : index
    %c0_9 = arith.constant 0 : index
    %4 = vector.load %arg3[%c0_6, %c0_7, %c0_8, %c0_9] : memref<1x4x8x32xbf16, #tpu.memory_space<vmem>>, vector<1x4x8x32xbf16>
    %5 = vector.shape_cast %4 : vector<1x4x8x32xbf16> to vector<4x8x32xbf16>
    %c0_10 = arith.constant 0 : index
    %c0_11 = arith.constant 0 : index
    %c0_12 = arith.constant 0 : index
    %6 = vector.load %arg4[%c0_10, %c0_11, %c0_12] : memref<1x1x8xf32, #tpu.memory_space<vmem>>, vector<1x1x8xf32>
    %cst = arith.constant 5.000000e-01 : f32
    %7 = vector.broadcast %cst : f32 to vector<1x1x8xf32>
    %8 = arith.cmpf ogt, %6, %7 : vector<1x1x8xf32>
    %cst_13 = arith.constant dense<0.000000e+00> : vector<8xf32>
    %9 = vector.multi_reduction <add>, %1, %cst_13 [1] : vector<8x128xf32> to vector<8xf32>
    %10 = vector.shape_cast %9 : vector<8xf32> to vector<8x1xf32>
    %cst_14 = arith.constant 1.280000e+02 : f32
    %11 = vector.broadcast %cst_14 : f32 to vector<8x1xf32>
    %12 = arith.divf %10, %11 : vector<8x1xf32>
    %13 = vector.broadcast %12 : vector<8x1xf32> to vector<8x128xf32>
    %14 = arith.subf %1, %13 : vector<8x128xf32>
    %15 = arith.mulf %14, %14 : vector<8x128xf32>
    %cst_15 = arith.constant dense<0.000000e+00> : vector<8xf32>
    %16 = vector.multi_reduction <add>, %15, %cst_15 [1] : vector<8x128xf32> to vector<8xf32>
    %17 = vector.shape_cast %16 : vector<8xf32> to vector<8x1xf32>
    %cst_16 = arith.constant 1.280000e+02 : f32
    %18 = vector.broadcast %cst_16 : f32 to vector<8x1xf32>
    %19 = arith.divf %17, %18 : vector<8x1xf32>
    %20 = vector.broadcast %12 : vector<8x1xf32> to vector<8x128xf32>
    %21 = arith.subf %1, %20 : vector<8x128xf32>
    %cst_17 = arith.constant 9.99999974E-6 : f32
    %22 = vector.broadcast %cst_17 : f32 to vector<8x1xf32>
    %23 = arith.addf %19, %22 : vector<8x1xf32>
    %24 = math.rsqrt %23 : vector<8x1xf32>
    %25 = vector.broadcast %24 : vector<8x1xf32> to vector<8x128xf32>
    %26 = arith.mulf %21, %25 : vector<8x128xf32>
    %c0_18 = arith.constant 0 : index
    %c0_19 = arith.constant 0 : index
    %27 = vector.load %arg5[%c0_18, %c0_19] : memref<1x128xf32, #tpu.memory_space<vmem>>, vector<1x128xf32>
    %28 = vector.broadcast %27 : vector<1x128xf32> to vector<8x128xf32>
    %29 = arith.mulf %26, %28 : vector<8x128xf32>
    %c0_20 = arith.constant 0 : index
    %c0_21 = arith.constant 0 : index
    %30 = vector.load %arg6[%c0_20, %c0_21] : memref<1x128xf32, #tpu.memory_space<vmem>>, vector<1x128xf32>
    %31 = vector.broadcast %30 : vector<1x128xf32> to vector<8x128xf32>
    %32 = arith.addf %29, %31 : vector<8x128xf32>
    %33 = arith.truncf %32 : vector<8x128xf32> to vector<8x128xbf16>
    %c0_22 = arith.constant 0 : index
    %c0_23 = arith.constant 0 : index
    %34 = vector.load %arg7[%c0_22, %c0_23] : memref<128x256xbf16, #tpu.memory_space<vmem>>, vector<128x256xbf16>
    %cst_24 = arith.constant dense<0.000000e+00> : vector<8x256xf32>
    %35 = tpu.matmul %33, %34, %cst_24 {dimension_numbers = #tpu.dot_dimension_numbers<[1], [0], [0], [1], [0, 0, 1, 1], [], []>} : vector<8x128xbf16>, vector<128x256xbf16>, vector<8x256xf32> -> vector<8x256xf32>
    %c0_25 = arith.constant 0 : index
    %c0_26 = arith.constant 0 : index
    %36 = vector.load %arg8[%c0_25, %c0_26] : memref<1x256xf32, #tpu.memory_space<vmem>>, vector<1x256xf32>
    %37 = vector.broadcast %36 : vector<1x256xf32> to vector<8x256xf32>
    %38 = arith.addf %35, %37 : vector<8x256xf32>
    %39 = vector.extract_strided_slice %38 {offsets = [0, 0], sizes = [8, 64], strides = [1, 1]} : vector<8x256xf32> to vector<8x64xf32>
    %40 = vector.shape_cast %39 : vector<8x64xf32> to vector<1x8x64xf32>
    %41 = vector.extract_strided_slice %38 {offsets = [0, 64], sizes = [8, 64], strides = [1, 1]} : vector<8x256xf32> to vector<8x64xf32>
    %42 = vector.shape_cast %41 : vector<8x64xf32> to vector<1x8x64xf32>
    %43 = vector.extract_strided_slice %38 {offsets = [0, 128], sizes = [8, 64], strides = [1, 1]} : vector<8x256xf32> to vector<8x64xf32>
    %44 = vector.shape_cast %43 : vector<8x64xf32> to vector<1x8x64xf32>
    %45 = vector.extract_strided_slice %38 {offsets = [0, 192], sizes = [8, 64], strides = [1, 1]} : vector<8x256xf32> to vector<8x64xf32>
    %46 = vector.shape_cast %45 : vector<8x64xf32> to vector<1x8x64xf32>
    %47 = tpu.concatenate %40, %42, %44, %46 in 0 : vector<1x8x64xf32>, vector<1x8x64xf32>, vector<1x8x64xf32>, vector<1x8x64xf32> -> vector<4x8x64xf32>
    %48 = vector.extract_strided_slice %47 {offsets = [0, 0, 0], sizes = [4, 8, 32], strides = [1, 1, 1]} : vector<4x8x64xf32> to vector<4x8x32xf32>
    %49 = vector.extract_strided_slice %47 {offsets = [0, 0, 32], sizes = [4, 8, 32], strides = [1, 1, 1]} : vector<4x8x64xf32> to vector<4x8x32xf32>
    %cst_27 = arith.constant 0.176776692 : f32
    %50 = vector.broadcast %cst_27 : f32 to vector<4x8x32xf32>
    %51 = arith.mulf %49, %50 : vector<4x8x32xf32>
    %52 = tpu.concatenate %48, %51 in 1 : vector<4x8x32xf32>, vector<4x8x32xf32> -> vector<4x16x32xf32>
    %53 = arith.truncf %52 : vector<4x16x32xf32> to vector<4x16x32xbf16>
    "tpu.trace_start"() <{level = 10 : i32, message = "hqc,hkc->hqk"}> : () -> ()
    %cst_28 = arith.constant dense<0.000000e+00> : vector<4x16x8xf32>
    %54 = tpu.matmul %53, %3, %cst_28 {dimension_numbers = #tpu.dot_dimension_numbers<[2], [2], [1], [1], [0, 0, 0, 1, 1, 1], [0], [0]>} : vector<4x16x32xbf16>, vector<4x8x32xbf16>, vector<4x16x8xf32> -> vector<4x16x8xf32>
    "tpu.trace_stop"() : () -> ()
    %55 = vector.extract_strided_slice %54 {offsets = [0, 0, 0], sizes = [4, 8, 8], strides = [1, 1, 1]} : vector<4x16x8xf32> to vector<4x8x8xf32>
    %56 = vector.extract_strided_slice %54 {offsets = [0, 8, 0], sizes = [4, 8, 8], strides = [1, 1, 1]} : vector<4x16x8xf32> to vector<4x8x8xf32>
    %57 = math.tanh %56 : vector<4x8x8xf32>
    %cst_29 = arith.constant -1.000000e+30 : f32
    %58 = vector.shape_cast %8 : vector<1x1x8xi1> to vector<1x1x8xi1>
    %59 = vector.broadcast %58 : vector<1x1x8xi1> to vector<4x8x8xi1>
    %60 = vector.broadcast %cst_29 : f32 to vector<4x8x8xf32>
    %61 = arith.select %59, %55, %60 : vector<4x8x8xi1>, vector<4x8x8xf32>
    %cst_30 = arith.constant dense<0xFF800000> : vector<4x8xf32>
    %62 = vector.multi_reduction <maximumf>, %61, %cst_30 [2] : vector<4x8x8xf32> to vector<4x8xf32>
    %63 = vector.shape_cast %62 : vector<4x8xf32> to vector<4x8x1xf32>
    %64 = vector.broadcast %63 : vector<4x8x1xf32> to vector<4x8x8xf32>
    %65 = arith.subf %61, %64 : vector<4x8x8xf32>
    %66 = math.exp %65 : vector<4x8x8xf32>
    %cst_31 = arith.constant dense<0.000000e+00> : vector<4x8xf32>
    %67 = vector.multi_reduction <add>, %66, %cst_31 [2] : vector<4x8x8xf32> to vector<4x8xf32>
    %68 = vector.shape_cast %67 : vector<4x8xf32> to vector<4x8x1xf32>
    %69 = tpu.reciprocal %68 {approx = true} : vector<4x8x1xf32> -> vector<4x8x1xf32>
    %70 = vector.broadcast %69 : vector<4x8x1xf32> to vector<4x8x8xf32>
    %71 = arith.mulf %66, %70 : vector<4x8x8xf32>
    %72 = arith.extf %3 : vector<4x8x32xbf16> to vector<4x8x32xf32>
    %73 = arith.subf %49, %72 : vector<4x8x32xf32>
    %74 = math.absf %73 : vector<4x8x32xf32>
    %cst_32 = arith.constant dense<0.000000e+00> : vector<4x8xf32>
    %75 = vector.multi_reduction <add>, %74, %cst_32 [2] : vector<4x8x32xf32> to vector<4x8xf32>
    %cst_33 = arith.constant 0.000000e+00 : f32
    %76 = vector.broadcast %cst_33 : f32 to vector<4x8xf32>
    %77 = arith.subf %76, %75 : vector<4x8xf32>
    %cst_34 = arith.constant 0.176776692 : f32
    %78 = vector.broadcast %cst_34 : f32 to vector<4x8xf32>
    %79 = arith.mulf %77, %78 : vector<4x8xf32>
    %80 = arith.negf %79 : vector<4x8xf32>
    %81 = math.exp %80 : vector<4x8xf32>
    %cst_35 = arith.constant 1.000000e+00 : f32
    %82 = vector.broadcast %cst_35 : f32 to vector<4x8xf32>
    %83 = arith.addf %82, %81 : vector<4x8xf32>
    %84 = arith.divf %82, %83 : vector<4x8xf32>
    %cst_36 = arith.constant 2.000000e+00 : f32
    %85 = vector.broadcast %cst_36 : f32 to vector<4x8xf32>
    %86 = arith.mulf %85, %84 : vector<4x8xf32>
    %87 = vector.shape_cast %8 : vector<1x1x8xi1> to vector<1x8xi1>
    %cst_37 = arith.constant 0.000000e+00 : f32
    %88 = vector.shape_cast %87 : vector<1x8xi1> to vector<1x8xi1>
    %89 = vector.broadcast %88 : vector<1x8xi1> to vector<4x8xi1>
    %90 = vector.broadcast %cst_37 : f32 to vector<4x8xf32>
    %91 = arith.select %89, %86, %90 : vector<4x8xi1>, vector<4x8xf32>
    %92 = vector.shape_cast %91 : vector<4x8xf32> to vector<4x1x8xf32>
    %93 = vector.broadcast %92 : vector<4x1x8xf32> to vector<4x8x8xf32>
    %94 = arith.mulf %57, %93 : vector<4x8x8xf32>
    %95 = arith.addf %71, %94 : vector<4x8x8xf32>
    %96 = arith.truncf %95 : vector<4x8x8xf32> to vector<4x8x8xbf16>
    "tpu.trace_start"() <{level = 10 : i32, message = "hql,hlc->hqc"}> : () -> ()
    %cst_38 = arith.constant dense<0.000000e+00> : vector<4x8x32xf32>
    %97 = tpu.matmul %96, %5, %cst_38 {dimension_numbers = #tpu.dot_dimension_numbers<[2], [1], [1], [2], [0, 0, 0, 1, 1, 2], [0], [0]>} : vector<4x8x8xbf16>, vector<4x8x32xbf16>, vector<4x8x32xf32> -> vector<4x8x32xf32>
    "tpu.trace_stop"() : () -> ()
    %98 = vector.extract_strided_slice %97 {offsets = [0, 0, 0], sizes = [1, 8, 32], strides = [1, 1, 1]} : vector<4x8x32xf32> to vector<1x8x32xf32>
    %99 = vector.shape_cast %98 : vector<1x8x32xf32> to vector<8x32xf32>
    %100 = vector.extract_strided_slice %97 {offsets = [1, 0, 0], sizes = [1, 8, 32], strides = [1, 1, 1]} : vector<4x8x32xf32> to vector<1x8x32xf32>
    %101 = vector.shape_cast %100 : vector<1x8x32xf32> to vector<8x32xf32>
    %102 = vector.extract_strided_slice %97 {offsets = [2, 0, 0], sizes = [1, 8, 32], strides = [1, 1, 1]} : vector<4x8x32xf32> to vector<1x8x32xf32>
    %103 = vector.shape_cast %102 : vector<1x8x32xf32> to vector<8x32xf32>
    %104 = vector.extract_strided_slice %97 {offsets = [3, 0, 0], sizes = [1, 8, 32], strides = [1, 1, 1]} : vector<4x8x32xf32> to vector<1x8x32xf32>
    %105 = vector.shape_cast %104 : vector<1x8x32xf32> to vector<8x32xf32>
    %106 = tpu.concatenate %99, %101, %103, %105 in 1 : vector<8x32xf32>, vector<8x32xf32>, vector<8x32xf32>, vector<8x32xf32> -> vector<8x128xf32>
    %107 = arith.truncf %106 : vector<8x128xf32> to vector<8x128xbf16>
    %c0_39 = arith.constant 0 : index
    %c0_40 = arith.constant 0 : index
    %108 = vector.load %arg9[%c0_39, %c0_40] : memref<128x128xbf16, #tpu.memory_space<vmem>>, vector<128x128xbf16>
    %cst_41 = arith.constant dense<0.000000e+00> : vector<8x128xf32>
    %109 = tpu.matmul %107, %108, %cst_41 {dimension_numbers = #tpu.dot_dimension_numbers<[1], [0], [0], [1], [0, 0, 1, 1], [], []>} : vector<8x128xbf16>, vector<128x128xbf16>, vector<8x128xf32> -> vector<8x128xf32>
    %c0_42 = arith.constant 0 : index
    %c0_43 = arith.constant 0 : index
    %110 = vector.load %arg10[%c0_42, %c0_43] : memref<1x128xf32, #tpu.memory_space<vmem>>, vector<1x128xf32>
    %111 = vector.broadcast %110 : vector<1x128xf32> to vector<8x128xf32>
    %112 = arith.addf %109, %111 : vector<8x128xf32>
    %113 = arith.addf %1, %112 : vector<8x128xf32>
    %cst_44 = arith.constant dense<0.000000e+00> : vector<8xf32>
    %114 = vector.multi_reduction <add>, %113, %cst_44 [1] : vector<8x128xf32> to vector<8xf32>
    %115 = vector.shape_cast %114 : vector<8xf32> to vector<8x1xf32>
    %cst_45 = arith.constant 1.280000e+02 : f32
    %116 = vector.broadcast %cst_45 : f32 to vector<8x1xf32>
    %117 = arith.divf %115, %116 : vector<8x1xf32>
    %118 = vector.broadcast %117 : vector<8x1xf32> to vector<8x128xf32>
    %119 = arith.subf %113, %118 : vector<8x128xf32>
    %120 = arith.mulf %119, %119 : vector<8x128xf32>
    %cst_46 = arith.constant dense<0.000000e+00> : vector<8xf32>
    %121 = vector.multi_reduction <add>, %120, %cst_46 [1] : vector<8x128xf32> to vector<8xf32>
    %122 = vector.shape_cast %121 : vector<8xf32> to vector<8x1xf32>
    %cst_47 = arith.constant 1.280000e+02 : f32
    %123 = vector.broadcast %cst_47 : f32 to vector<8x1xf32>
    %124 = arith.divf %122, %123 : vector<8x1xf32>
    %125 = vector.broadcast %117 : vector<8x1xf32> to vector<8x128xf32>
    %126 = arith.subf %113, %125 : vector<8x128xf32>
    %cst_48 = arith.constant 9.99999974E-6 : f32
    %127 = vector.broadcast %cst_48 : f32 to vector<8x1xf32>
    %128 = arith.addf %124, %127 : vector<8x1xf32>
    %129 = math.rsqrt %128 : vector<8x1xf32>
    %130 = vector.broadcast %129 : vector<8x1xf32> to vector<8x128xf32>
    %131 = arith.mulf %126, %130 : vector<8x128xf32>
    %c0_49 = arith.constant 0 : index
    %c0_50 = arith.constant 0 : index
    %132 = vector.load %arg11[%c0_49, %c0_50] : memref<1x128xf32, #tpu.memory_space<vmem>>, vector<1x128xf32>
    %133 = vector.broadcast %132 : vector<1x128xf32> to vector<8x128xf32>
    %134 = arith.mulf %131, %133 : vector<8x128xf32>
    %c0_51 = arith.constant 0 : index
    %c0_52 = arith.constant 0 : index
    %135 = vector.load %arg12[%c0_51, %c0_52] : memref<1x128xf32, #tpu.memory_space<vmem>>, vector<1x128xf32>
    %136 = vector.broadcast %135 : vector<1x128xf32> to vector<8x128xf32>
    %137 = arith.addf %134, %136 : vector<8x128xf32>
    %138 = arith.truncf %137 : vector<8x128xf32> to vector<8x128xbf16>
    %c0_53 = arith.constant 0 : index
    %c0_54 = arith.constant 0 : index
    %139 = vector.load %arg13[%c0_53, %c0_54] : memref<128x512xbf16, #tpu.memory_space<vmem>>, vector<128x512xbf16>
    %cst_55 = arith.constant dense<0.000000e+00> : vector<8x512xf32>
    %140 = tpu.matmul %138, %139, %cst_55 {dimension_numbers = #tpu.dot_dimension_numbers<[1], [0], [0], [1], [0, 0, 1, 1], [], []>} : vector<8x128xbf16>, vector<128x512xbf16>, vector<8x512xf32> -> vector<8x512xf32>
    %c0_56 = arith.constant 0 : index
    %c0_57 = arith.constant 0 : index
    %141 = vector.load %arg14[%c0_56, %c0_57] : memref<1x512xf32, #tpu.memory_space<vmem>>, vector<1x512xf32>
    %142 = vector.broadcast %141 : vector<1x512xf32> to vector<8x512xf32>
    %143 = arith.addf %140, %142 : vector<8x512xf32>
    %cst_58 = arith.constant 1.702000e+00 : f32
    %144 = vector.broadcast %cst_58 : f32 to vector<8x512xf32>
    %145 = arith.mulf %144, %143 : vector<8x512xf32>
    %146 = arith.negf %145 : vector<8x512xf32>
    %147 = math.exp %146 : vector<8x512xf32>
    %cst_59 = arith.constant 1.000000e+00 : f32
    %148 = vector.broadcast %cst_59 : f32 to vector<8x512xf32>
    %149 = arith.addf %148, %147 : vector<8x512xf32>
    %150 = arith.divf %148, %149 : vector<8x512xf32>
    %151 = arith.mulf %143, %150 : vector<8x512xf32>
    %152 = arith.truncf %151 : vector<8x512xf32> to vector<8x512xbf16>
    %c0_60 = arith.constant 0 : index
    %c0_61 = arith.constant 0 : index
    %153 = vector.load %arg15[%c0_60, %c0_61] : memref<512x128xbf16, #tpu.memory_space<vmem>>, vector<512x128xbf16>
    %cst_62 = arith.constant dense<0.000000e+00> : vector<8x128xf32>
    %154 = tpu.matmul %152, %153, %cst_62 {dimension_numbers = #tpu.dot_dimension_numbers<[1], [0], [0], [1], [0, 0, 1, 1], [], []>} : vector<8x512xbf16>, vector<512x128xbf16>, vector<8x128xf32> -> vector<8x128xf32>
    %c0_63 = arith.constant 0 : index
    %c0_64 = arith.constant 0 : index
    %155 = vector.load %arg16[%c0_63, %c0_64] : memref<1x128xf32, #tpu.memory_space<vmem>>, vector<1x128xf32>
    %156 = vector.broadcast %155 : vector<1x128xf32> to vector<8x128xf32>
    %157 = arith.addf %154, %156 : vector<8x128xf32>
    %158 = arith.addf %113, %157 : vector<8x128xf32>
    %c0_65 = arith.constant 0 : index
    %c0_66 = arith.constant 0 : index
    %c0_67 = arith.constant 0 : index
    %159 = vector.load %arg17[%c0_65, %c0_66, %c0_67] : memref<1x8x128xf32, #tpu.memory_space<vmem>>, vector<1x8x128xf32>
    %160 = vector.shape_cast %159 : vector<1x8x128xf32> to vector<8x128xf32>
    %161 = vector.shape_cast %158 : vector<8x128xf32> to vector<1x8x128xf32>
    tpu.vector_store %arg17[%c0_65, %c0_66, %c0_67], %161 {strides = array<i32>} : memref<1x8x128xf32, #tpu.memory_space<vmem>>, vector<1x8x128xf32>,
    return
  }
  func.func @transform_0(%arg0: i32) -> (i32, i32, i32) {
    %c0_i32 = arith.constant 0 : i32
    %c0_i32_0 = arith.constant 0 : i32
    %c0_i32_1 = arith.constant 0 : i32
    return %arg0, %c0_i32, %c0_i32_0 : i32, i32, i32
  }
  func.func @transform_1(%arg0: i32) -> (i32, i32, i32, i32) {
    %c0_i32 = arith.constant 0 : i32
    %c0_i32_0 = arith.constant 0 : i32
    %c0_i32_1 = arith.constant 0 : i32
    %c0_i32_2 = arith.constant 0 : i32
    return %arg0, %c0_i32, %c0_i32_0, %c0_i32_1 : i32, i32, i32, i32
  }
  func.func @transform_2(%arg0: i32) -> (i32, i32, i32, i32) {
    %c0_i32 = arith.constant 0 : i32
    %c0_i32_0 = arith.constant 0 : i32
    %c0_i32_1 = arith.constant 0 : i32
    %c0_i32_2 = arith.constant 0 : i32
    return %arg0, %c0_i32, %c0_i32_0, %c0_i32_1 : i32, i32, i32, i32
  }
  func.func @transform_3(%arg0: i32) -> (i32, i32, i32) {
    %c0_i32 = arith.constant 0 : i32
    %c0_i32_0 = arith.constant 0 : i32
    %c0_i32_1 = arith.constant 0 : i32
    return %arg0, %c0_i32, %c0_i32_0 : i32, i32, i32
  }
  func.func @transform_4(%arg0: i32) -> (i32, i32) {
    %c0_i32 = arith.constant 0 : i32
    %c0_i32_0 = arith.constant 0 : i32
    %c0_i32_1 = arith.constant 0 : i32
    return %c0_i32, %c0_i32_0 : i32, i32
  }
  func.func @transform_5(%arg0: i32) -> (i32, i32) {
    %c0_i32 = arith.constant 0 : i32
    %c0_i32_0 = arith.constant 0 : i32
    %c0_i32_1 = arith.constant 0 : i32
    return %c0_i32, %c0_i32_0 : i32, i32
  }
  func.func @transform_6(%arg0: i32) -> (i32, i32) {
    %c0_i32 = arith.constant 0 : i32
    %c0_i32_0 = arith.constant 0 : i32
    %c0_i32_1 = arith.constant 0 : i32
    return %c0_i32, %c0_i32_0 : i32, i32
  }
  func.func @transform_7(%arg0: i32) -> (i32, i32) {
    %c0_i32 = arith.constant 0 : i32
    %c0_i32_0 = arith.constant 0 : i32
    %c0_i32_1 = arith.constant 0 : i32
    return %c0_i32, %c0_i32_0 : i32, i32
  }
  func.func @transform_8(%arg0: i32) -> (i32, i32) {
    %c0_i32 = arith.constant 0 : i32
    %c0_i32_0 = arith.constant 0 : i32
    %c0_i32_1 = arith.constant 0 : i32
    return %c0_i32, %c0_i32_0 : i32, i32
  }
  func.func @transform_9(%arg0: i32) -> (i32, i32) {
    %c0_i32 = arith.constant 0 : i32
    %c0_i32_0 = arith.constant 0 : i32
    %c0_i32_1 = arith.constant 0 : i32
    return %c0_i32, %c0_i32_0 : i32, i32
  }
  func.func @transform_10(%arg0: i32) -> (i32, i32) {
    %c0_i32 = arith.constant 0 : i32
    %c0_i32_0 = arith.constant 0 : i32
    %c0_i32_1 = arith.constant 0 : i32
    return %c0_i32, %c0_i32_0 : i32, i32
  }
  func.func @transform_11(%arg0: i32) -> (i32, i32) {
    %c0_i32 = arith.constant 0 : i32
    %c0_i32_0 = arith.constant 0 : i32
    %c0_i32_1 = arith.constant 0 : i32
    return %c0_i32, %c0_i32_0 : i32, i32
  }
  func.func @transform_12(%arg0: i32) -> (i32, i32) {
    %c0_i32 = arith.constant 0 : i32
    %c0_i32_0 = arith.constant 0 : i32
    %c0_i32_1 = arith.constant 0 : i32
    return %c0_i32, %c0_i32_0 : i32, i32
  }
  func.func @transform_13(%arg0: i32) -> (i32, i32) {
    %c0_i32 = arith.constant 0 : i32
    %c0_i32_0 = arith.constant 0 : i32
    %c0_i32_1 = arith.constant 0 : i32
    return %c0_i32, %c0_i32_0 : i32, i32
  }
  func.func @transform_14(%arg0: i32) -> (i32, i32) {
    %c0_i32 = arith.constant 0 : i32
    %c0_i32_0 = arith.constant 0 : i32
    %c0_i32_1 = arith.constant 0 : i32
    return %c0_i32, %c0_i32_0 : i32, i32
  }
  func.func @transform_15(%arg0: i32) -> (i32, i32) {
    %c0_i32 = arith.constant 0 : i32
    %c0_i32_0 = arith.constant 0 : i32
    %c0_i32_1 = arith.constant 0 : i32
    return %c0_i32, %c0_i32_0 : i32, i32
  }
  func.func @transform_16(%arg0: i32) -> (i32, i32, i32) {
    %c0_i32 = arith.constant 0 : i32
    %c0_i32_0 = arith.constant 0 : i32
    %c0_i32_1 = arith.constant 0 : i32
    return %arg0, %c0_i32, %c0_i32_0 : i32, i32, i32
  }
}

</mosaic_0001>

<bundles_post_ra>
// kernel: tpu_custom_call.1
= control target key start
LH: loop header
LB: loop body
LE: loop exit
PB: predicated region body
PF: predicated region fallthrough
CT: control target
= control target key end

     0   :  { %s3954_s0 = inlined_call_operand.hbm [shape: f32[2,8,128], index: 0, kind: input, shape index: {}]   ;;  %s3955_s1 = inlined_call_operand.hbm [shape: bf16[2,4,8,32], index: 1, kind: input, shape index: {}]   ;;  %s3956_s2 = inlined_call_operand.hbm [shape: bf16[2,4,8,32], index: 2, kind: input, shape index: {}]   ;;  %s3957_s3 = inlined_call_operand.vmem [shape: f32[2,1,8], index: 3, kind: input, shape index: {}]   ;;  %s3958_s4 = inlined_call_operand.vmem [shape: f32[1,128], index: 4, kind: input, shape index: {}]   ;;  %s3959_s5 = inlined_call_operand.hbm [shape: f32[1,128], index: 5, kind: input, shape index: {}]   ;;  %s3960_s6 = inlined_call_operand.hbm [shape: bf16[128,256], index: 6, kind: input, shape index: {}]   ;;  %s3961_s7 = inlined_call_operand.hbm [shape: f32[1,256], index: 7, kind: input, shape index: {}]   ;;  %s3962_s8 = inlined_call_operand.hbm [shape: bf16[128,128], index: 8, kind: input, shape index: {}]   ;;  %s3963_s9 = inlined_call_operand.vmem [shape: f32[1,128], index: 9, kind: input, shape index: {}]   ;;  %s3964_s10 = inlined_call_operand.vmem [shape: f32[1,128], index: 10, kind: input, shape index: {}]   ;;  %s3965_s11 = inlined_call_operand.vmem [shape: f32[1,128], index: 11, kind: input, shape index: {}]   ;;  %s3966_s12 = inlined_call_operand.hbm [shape: bf16[128,512], index: 12, kind: input, shape index: {}]   ;;  %s3967_s13 = inlined_call_operand.vmem [shape: f32[1,512], index: 13, kind: input, shape index: {}]   ;;  %s3968_s14 = inlined_call_operand.hbm [shape: bf16[512,128], index: 14, kind: input, shape index: {}]   ;;  %s3969_s15 = inlined_call_operand.vmem [shape: f32[1,128], index: 15, kind: input, shape index: {}]   ;;  %s3970_s16 = inlined_call_operand.hbm [shape: f32[2,8,128], index: 16, kind: output, shape index: {}]  }
   0x1   :  { %3982 = sst [smem:[#allocation30_spill]] %s3954_s0 }
   0x2   :  { %3983 = sst [smem:[#allocation31_spill]] %s3955_s1 }
   0x3   :  { %3984 = sst [smem:[#allocation32_spill]] %s3959_s5 }
   0x4   :  { %3985 = sst [smem:[#allocation33_spill]] %s3960_s6 }
   0x5   :  { %3986 = sst [smem:[#allocation34_spill]] %s3961_s7 }
   0x6   :  { %3987 = sst [smem:[#allocation35_spill]] %s3962_s8 }
   0x7   :  { %3988 = sst [smem:[#allocation36_spill]] %s3963_s9 }
   0x8   :  { %3989 = sst [smem:[#allocation37_spill]] %s3964_s10 }
   0x9   :  { %3990 = sst [smem:[#allocation38_spill]] %s3965_s11 }
   0xa   :  { %3991 = sst [smem:[#allocation39_spill]] %s3966_s12 }
   0xb   :  { %3992 = sst [smem:[#allocation40_spill]] %s3967_s13 }
   0xc   :  { %3993 = sst [smem:[#allocation41_spill]] %s3969_s15 }
   0xd   :  { %3994 = sst [smem:[#allocation42_spill]] %s3970_s16 }
   0xe   :  { %21 = vsyncpa [#allocation3], 0 }
   0xf   :  { %23 = vsyncpa [#allocation3 + $0x1], 0 }
  0x10   :  { %24 = vsyncpa [#allocation6], 0 }
  0x11   :  { %26 = vsyncpa [#allocation6 + $0x1], 0 }
  0x12   :  { %27 = vsyncpa [#allocation9], 0 }
  0x13   :  { %28 = vsyncpa [#allocation12], 0 }
  0x14   :  { %29 = vsyncpa [#allocation15], 0 }
  0x15   :  { %30 = vsyncpa [#allocation4], 0 }
  0x16   :  { %32 = vsyncpa [#allocation4 + $0x1], 0  ;;  %s3502_s21 = smov 0   ;;  %s3504_s22 = smov 0  }
  0x17   :  { %s3506_s23 = smov 0   ;;  %s3508_s24 = smov 0  }
  0x18 LB: > { %3995 = sst [smem:[#allocation24_spill]] %s3386_s21  ;;  %s3526_s28 = sadd.s32 4294967295, %s3398_s24   ;;  %s3398_s24 = sphi %s3508_s24, %s4039_s24   ;;  %s3394_s23 = sphi %s3506_s23, %s4041_s23   ;;  %s3390_s22 = sphi %s3504_s22, %s4043_s22   ;;  %s3386_s21 = sphi %s3502_s21, %s4042_s21  }
  0x19   : > { %3996 = sst [smem:[#allocation25_spill]] %s3394_s23  ;;  %p2346_p0 = scmp.ge.s32.totalorder %s3398_s24, 1 }
  0x1a   : > { %s3997_s5 = sld [smem:[#allocation32_spill]]  ;;  %p3981_p1 = scmp.eq.s32.totalorder %s3526_s28, 0 }
  0x1b   : > { %p425_p2 = scmp.lt.s32.totalorder %s3398_s24, 3  ;;  %s3400_s30 = smov [#allocation8]  }
  0x1c   : > { %s442_s0 = sshll.u32 %s3400_s30, 4  ;;  %s3999_s7 = sld [smem:[#allocation34_spill]]  ;;  %s443_s0 = int_to_ptr.vmem [resolvable:$true] %s442_s0 }
  0x1d   : > { %p3531_p3 = pnand %p2346_p0, %p425_p2  ;;  %s3401_s25 = smov [#allocation11]  }
  0x1e   : > { %s468_s26 = sshll.u32 %s3401_s25, 4  ;;  %s4001_s12 = sld [smem:[#allocation39_spill]]  ;;  %s469_s26 = int_to_ptr.vmem [resolvable:$true] %s468_s26 }
  0x1f   : > { %p2867_p5 = pneg %p3531_p3  ;;  %s3403_s25 = smov 256  }
  0x20   : > { %s440_s27 = sshll.u32 %s3997_s5, 4  ;;  %s3402_s5 = smov [#allocation14]   ;;  %s441_s27 = int_to_ptr.hbm [resolvable:$true] %s440_s27 }
  0x21   : > { %p3543_p6 = pnand %p2867_p5, %p3981_p1  ;;  %s3404_s16 = smov 16  }
  0x22   : > { %s466_s19 = sshll.u32 %s3999_s7, 4  ;;  %s502_s7 = sshll.u32 %s3402_s5, 4  ;;  %s467_s19 = int_to_ptr.hbm [resolvable:$true] %s466_s19  ;;  %s503_s7 = int_to_ptr.vmem [resolvable:$true] %s502_s7 }
  0x23   : > { %2870 = dma.hbm_to_vmem [thread:$0]  (!%p3543_p6), %s441_s27, 16, %s443_s0, [#allocation9]  }
  0x24   : > { %s500_s18 = sshll.u32 %s4001_s12, 4  ;;  %s2345_s30 = sadd.s32 4294967294, %s3398_s24   ;;  %s501_s18 = int_to_ptr.hbm [resolvable:$true] %s500_s18 }
  0x25   : > { %2876 = dma.hbm_to_vmem [thread:$0]  (!%p3543_p6), %s467_s19, 32, %s469_s26, [#allocation12]  }
  0x26   : > { %2882 = dma.hbm_to_vmem [thread:$0]  (!%p3543_p6), %s501_s18, 4096, %s503_s7, [#allocation15], %s3403_s25, %s3403_s25, %s3404_s16  }
  0x27   : > { %s3558_s17 = sadd.s32 1, %s3398_s24   ;;  %s45_s27 = sadd.s32 1, %s3394_s23 }
  0x28   : > { %4002 = sst [smem:[#allocation26_spill]] %s3558_s17  ;;  %s42_s0 = ssub.s32 %s3398_s24, %s3558_s17 }
  0x29   : > { %p52_p7 = scmp.ne.s32.totalorder %s3394_s23, %s3390_s22  ;;  %p43_p8 = scmp.eq.s32.totalorder %s42_s0, 0 }
  0x2a   : > { %p53_p9 = scmp.eq.s32.totalorder %s3398_s24, 0  ;;  %p58_p10 = scmp.ne.s32.totalorder %s3390_s22, %s3386_s21 }
  0x2b   : > { %p412_p11 = scmp.eq.s32.totalorder %s3526_s28, 1  ;;  %p418_p2 = scmp.eq.s32.totalorder %s2345_s30, 1 }
  0x2c   : > { %s3570_s5 = scalar_select %p43_p8, %s3394_s23, %s45_s27  }
  0x2d   : > { %p54_p12 = por %p53_p9, %p52_p7  ;;  %p3574_p13 = por %p3981_p1, %p58_p10 }
  0x2e   : > { %4003 = sst [smem:[#allocation27_spill]] %s3570_s5  ;;  %p3578_p0 = por %p412_p11, %p52_p7 }
  0x2f   : > { %p3582_p5 = por %p418_p2, %p58_p10  ;;  %p2906_p4 = scmp.lt.s32.totalorder %s3398_s24, 2 }
  0x30   : > { %s4005_s16 = scalar_select %p3578_p0, 1, 0 }
  0x31   : > { %s4007_s19 = scalar_select %p3582_p5, 1, 0 }
  0x32   : > { %4006 = sst [smem:[#allocation28_spill]] %s4005_s16  ;;  %s3588_s26 = sand.u32 1, %s3394_s23  }
  0x33   : > { %4008 = sst [smem:[#allocation29_spill]] %s4007_s19  ;;  %s555_s18 = sand.u32 1, %s3398_s24  }
  0x34   : > { %p3591_p8 = pnand %p2906_p4, %p54_p12  ;;  %s3980_s27 = sshll.u32 %s3588_s26, 4 }
  0x35   : > { %s2745_s0 = sshll.u32 %s3398_s24, 4  ;;  %s4010_s1 = sld [smem:[#allocation31_spill]] }
  0x36   : > { %s559_s17 = scalar_lea.vmem [#allocation5], %s3980_s27  ;;  %s3602_s21 = scalar_lea.sflag [#allocation6], %s555_s18 }
  0x37   : > { %s567_s19 = sshll.u32 %s559_s17, 4  ;;  %p3140_p7 = pneg %p3591_p8  ;;  %s568_s19 = int_to_ptr.vmem [resolvable:$true] %s567_s19 }
  0x3b   : > { %s564_s5 = scalar_lea.hbm %s4010_s1, %s2745_s0  ;;  %s3143_s27 = scalar_lea.hbm %s4010_s1, 32 }
  0x3c   : > { %s565_s23 = sshll.u32 %s564_s5, 4  ;;  %s566_s23 = int_to_ptr.hbm [resolvable:$true] %s565_s23 }
  0x3d   : > { %s3136_s16 = sshra.s32 %s566_s23, 4  ;;  %s3137_s16 = int_to_ptr.hbm [resolvable:$true] %s3136_s16 }
  0x3e   : > { %s3138_s15 = scalar_lea.hbm %s3137_s16, 16  ;;  %p3144_p11 = scmp.lt.s32.totalorder %s3137_s16, %s4010_s1 }
  0x3f   : > { %p3139_p4 = scmp.ne.s32.totalorder %s3137_s16, %s3138_s15  ;;  %p3145_p12 = scmp.lt.s32.totalorder %s3143_s27, %s3138_s15 }
  0x41   : > { %p3141_p9 = pnand %p3140_p7, %p3139_p4  ;;  %p3146_p2 = por %p3145_p12, %p3144_p11 }
  0x43   : > { %p3142_p10 = pneg %p3141_p9 }
  0x45   : > { %p3147_p1 = pnand %p3146_p2, %p3142_p10 }
  0x47   : > { %3150 = shalt.err (!%p3147_p1)
}
  0x48   : > { %s3405_s18 = smov 64   ;;  %s3406_s13 = smov 4  }
  0x49   : > { %2892 = dma.hbm_to_vmem [thread:$0]  (!%p3591_p8), %s566_s23, 256, %s568_s19, %s3602_s21, %s3405_s18, %s3405_s18, %s3406_s13  }
  0x4a   : > { %s586_s17 = scalar_lea.hbm %s3956_s2, %s2745_s0  ;;  %s4011_s16 = sshll.u32 %s3588_s26, 4 }
  0x4b   : > { %s581_s15 = scalar_lea.vmem [#allocation7], %s4011_s16  ;;  %s587_s5 = sshll.u32 %s586_s17, 4  ;;  %s3628_s5 = int_to_ptr.hbm [resolvable:$true] %s587_s5 }
  0x4c   : > { %s589_s27 = sshll.u32 %s581_s15, 4  ;;  %s4012_s6 = sld [smem:[#allocation33_spill]]  ;;  %s3626_s27 = int_to_ptr.vmem [resolvable:$true] %s589_s27 }
  0x4d   : > { %s3407_s9 = smov [#allocation10]   ;;  %s3408_s19 = smov 128  }
  0x4e   : > { %s453_s23 = sshll.u32 %s3407_s9, 4  ;;  %s3409_s0 = smov 8   ;;  %s454_s23 = int_to_ptr.vmem [resolvable:$true] %s453_s23 }
  0x4f   : > { %s4013_s8 = sld [smem:[#allocation35_spill]]  ;;  %s3410_s16 = smov [#allocation13]  }
  0x50   : > { %s479_s15 = sshll.u32 %s3410_s16, 4  ;;  %s517_s9 = sshll.u32 %s3968_s14, 4  ;;  %s480_s15 = int_to_ptr.vmem [resolvable:$true] %s479_s15  ;;  %s518_s9 = int_to_ptr.hbm [resolvable:$true] %s517_s9 }
  0x51   : > { %s4014_s16 = sld [smem:[#allocation30_spill]] }
  0x52   : > { %s451_s10 = sshll.u32 %s4012_s6, 4  ;;  %s452_s10 = int_to_ptr.hbm [resolvable:$true] %s451_s10 }
  0x53   : > { %2873 = dma.hbm_to_vmem [thread:$0]  (!%p3543_p6), %s452_s10, 2048, %s454_s23, [#allocation9], %s3408_s19, %s3408_s19, %s3409_s0  }
  0x54   : > { %s3411_s10 = smov [#allocation16]   ;;  %s2354_s19 = sshll.u32 %s3588_s26, 3 }
  0x55   : > { %s477_s17 = sshll.u32 %s4013_s8, 4  ;;  %s519_s23 = sshll.u32 %s3411_s10, 4  ;;  %s478_s17 = int_to_ptr.hbm [resolvable:$true] %s477_s17  ;;  %s520_s23 = int_to_ptr.vmem [resolvable:$true] %s519_s23 }
  0x56   : > { %2879 = dma.hbm_to_vmem [thread:$0]  (!%p3543_p6), %s478_s17, 1024, %s480_s15, [#allocation12], %s3405_s18, %s3405_s18, %s3406_s13  }
  0x57   : > { %2885 = dma.hbm_to_vmem [thread:$0]  (!%p3543_p6), %s518_s9, 4096, %s520_s23, [#allocation15], %s3405_s18, %s3405_s18, %s3406_s13  }
  0x58   : > { %s2355_s0 = sshll.u32 %s3398_s24, 3  ;;  %s540_s11 = scalar_lea.vmem [#allocation2], %s2354_s19 }
  0x59   : > { %s544_s1 = scalar_lea.hbm %s4014_s16, %s2355_s0  ;;  %s548_s6 = sshll.u32 %s540_s11, 4  ;;  %s549_s6 = int_to_ptr.vmem [resolvable:$true] %s548_s6 }
  0x5a   : > { %s546_s8 = sshll.u32 %s544_s1, 4  ;;  %s537_s17 = scalar_lea.sflag [#allocation3], %s3588_s26  ;;  %s547_s8 = int_to_ptr.hbm [resolvable:$true] %s546_s8 }
  0x5b   : > { %s3256_s15 = sshra.s32 %s547_s8, 4  ;;  %s3263_s23 = scalar_lea.hbm %s4014_s16, 16  ;;  %s3257_s15 = int_to_ptr.hbm [resolvable:$true] %s3256_s15 }
  0x5c   : > { %s3258_s10 = scalar_lea.hbm %s3257_s15, 8  ;;  %p3264_p6 = scmp.lt.s32.totalorder %s3257_s15, %s4014_s16 }
  0x5d   : > { %p3259_p1 = scmp.ne.s32.totalorder %s3257_s15, %s3258_s10  ;;  %p3265_p10 = scmp.lt.s32.totalorder %s3263_s23, %s3258_s10 }
  0x5f   : > { %p3261_p4 = pnand %p3259_p1, %p3140_p7  ;;  %p3266_p11 = por %p3265_p10, %p3264_p6 }
  0x61   : > { %p3262_p9 = pneg %p3261_p4 }
  0x63   : > { %p3267_p12 = pnand %p3266_p11, %p3262_p9 }
  0x65   : > { %3270 = shalt.err (!%p3267_p12)
}
  0x66   : > { %2889 = dma.hbm_to_vmem [thread:$0]  (!%p3591_p8), %s547_s8, 128, %s549_s6, %s537_s17  }
  0x67   : > { %s3286_s26 = sshra.s32 %s3628_s5, 4  ;;  %s3293_s11 = scalar_lea.hbm %s3956_s2, 32  ;;  %s3287_s26 = int_to_ptr.hbm [resolvable:$true] %s3286_s26 }
  0x68   : > { %s3288_s19 = scalar_lea.hbm %s3287_s26, 16  ;;  %p3294_p9 = scmp.lt.s32.totalorder %s3287_s26, %s3956_s2 }
  0x69   : > { %p3289_p2 = scmp.ne.s32.totalorder %s3287_s26, %s3288_s19  ;;  %p3295_p6 = scmp.lt.s32.totalorder %s3293_s11, %s3288_s19 }
  0x6b   : > { %p3291_p1 = pnand %p3289_p2, %p3140_p7  ;;  %p3296_p10 = por %p3295_p6, %p3294_p9 }
  0x6d   : > { %p3292_p4 = pneg %p3291_p1 }
  0x6f   : > { %p3297_p11 = pnand %p3296_p10, %p3292_p4 }
  0x71   : > { %3300 = shalt.err (!%p3297_p11)
}
  0x72   : > { %2895 = dma.hbm_to_vmem [thread:$0]  (!%p3591_p8), %s3628_s5, 256, %s3626_s27, %s3602_s21, %s3405_s18, %s3405_s18, %s3406_s13  }
  0x73   : > { %607 = sbr.rel (%p3531_p3) target bundleno = 2132 (0x854), region = 84  ;;  %s3689_s6 = sand.u32 (!%p3531_p3), 1, %s3390_s22  }
  0x74   : > { %s2363_s8 = sshll.u32 (!%p3531_p3), %s3689_s6, 3  ;;  %s610_s17 = scalar_lea.sflag (!%p3531_p3), [#allocation3], %s3689_s6 }
  0x75   : > { %s613_s25 = scalar_lea.vmem (!%p3531_p3), [#allocation2], %s2363_s8 }
  0x78   : > { %3361 = dma.done.wait (%p3574_p13), %s610_s17, 128  }
  0x79   : > { %3363 = vsyncadd (%p3574_p13), %s610_s17, 4294967168  ;;  %s619_s13 = sand.u32 1, %s3526_s28   ;;  %s2364_s21 = sshll.u32 %s3689_s6, 4 }
  0x7a   : > { %s620_s29 = scalar_lea.sflag [#allocation6], %s619_s13  ;;  %s3701_s18 = scalar_lea.vmem [#allocation5], %s2364_s21 }
  0x7b   : > { %3365 = dma.done.wait (%p3574_p13), %s620_s29, 512  }
  0x7c   : > { %3367 = vsyncadd (%p3574_p13), %s620_s29, 4294966784  ;;  %s3707_s27 = scalar_lea.vmem [#allocation7], %s2364_s21  ;;  %p4015_p3 = scmp.eq.s32.totalorder %s3526_s28, 0 }
  0x7e   : > { %3369 = dma.done.wait (%p4015_p3), [#allocation9], 2064   ;;  %p4016_p8 = pmov %p4015_p3 }
  0x7f   : > { %p4017_p7 = pmov %p4015_p3 }
  0x80   : > { %3371 = vsyncadd (%p4016_p8), [#allocation9], 4294965232 }
  0x81   : > { %3373 = dma.done.wait (%p4017_p7), [#allocation12], 1056   ;;  %p4018_p12 = pmov %p4015_p3 }
  0x82   : > { %p4019_p2 = pmov %p4015_p3 }
  0x83   : > { %3375 = vsyncadd (%p4018_p12), [#allocation12], 4294966240 }
  0x84   : > { %3377 = dma.done.wait (%p4019_p2), [#allocation15], 8192   ;;  %p4020_p1 = pmov %p4019_p2 }
  0x85   : > { %v3721_v0 = vld [vmem:[%s613_s25] sm:$0xff]  ;;  %v3412_v1 = vmov 128.0   ;;  %v2423_v18 = vld [vmem:[#allocation10 + $0x60] sm:$0xf]  ;;  %v2760_v19 = vld [vmem:[#allocation10 + $0x64] sm:$0xf0] }
  0x86   : > { %3379 = vsyncadd (%p4020_p1), [#allocation15], 4294959104  ;;  %741 = vadd.xlane.f32.xlu0 %v3721_v0  ;;  %2984 = vrcp.f32 %v3412_v1  ;;  %v2431_v2 = vld [vmem:[#allocation10 + $0x70] sm:$0xf]  ;;  %v2762_v3 = vld [vmem:[#allocation10 + $0x74] sm:$0xf0]  ;;  %v2424_v21 = vor.u32 %v2760_v19, %v2423_v18 }
  0x87   : > { %v2761_v4 = vld [vmem:[#allocation10 + $0x74] sm:$0xf]  ;;  %v2432_v5 = vor.u32 %v2762_v3, %v2431_v2  ;;  %v2433_v6 = vld [vmem:[#allocation10 + $0x78] sm:$0xf0]  ;;  %v2759_v20 = vld [vmem:[#allocation10 + $0x64] sm:$0xf] }
  0x88   : > { %v2436_v7 = vor.u32 %v2761_v4, %v2433_v6  ;;  %v2425_v22 = vld [vmem:[#allocation10 + $0x68] sm:$0xf0]  ;;  %v2415_v24 = vld [vmem:[#allocation10 + $0x50] sm:$0xf]  ;;  %v2758_v25 = vld [vmem:[#allocation10 + $0x54] sm:$0xf0] }
  0x89   : > { %881 = vmatpush.bf16.msra.mxu0 %v2432_v5  ;;  %v2428_v23 = vor.u32 %v2759_v20, %v2425_v22  ;;  %v2757_v26 = vld [vmem:[#allocation10 + $0x54] sm:$0xf]  ;;  %v2416_v27 = vor.u32 %v2758_v25, %v2415_v24  ;;  %v2417_v28 = vld [vmem:[#allocation10 + $0x58] sm:$0xf0]  ;;  %v2407_v30 = vld [vmem:[#allocation10 + $0x40] sm:$0xf] }
  0x8a   : > { %894 = vmatpush.bf16.msra.mxu1 %v2436_v7  ;;  %v2420_v29 = vor.u32 %v2757_v26, %v2417_v28  ;;  %v2756_v31 = vld [vmem:[#allocation10 + $0x44] sm:$0xf0]  ;;  %v2755_v32 = vld [vmem:[#allocation10 + $0x44] sm:$0xf]  ;;  %v2409_v34 = vld [vmem:[#allocation10 + $0x48] sm:$0xf0] }
  0x8b   : > { %v2408_v33 = vor.u32 %v2756_v31, %v2407_v30  ;;  %v2412_v35 = vor.u32 %v2755_v32, %v2409_v34  ;;  %v2399_v36 = vld [vmem:[#allocation10 + $0x30] sm:$0xf]  ;;  %v2754_v37 = vld [vmem:[#allocation10 + $0x34] sm:$0xf0]  ;;  %v2753_v38 = vld [vmem:[#allocation10 + $0x34] sm:$0xf] }
  0x8c   : > { %v2985_v8 = vpop.eup %2984  ;;  %v2400_v39 = vor.u32 %v2754_v37, %v2399_v36  ;;  %v2401_v40 = vld [vmem:[#allocation10 + $0x38] sm:$0xf0]  ;;  %v2391_v42 = vld [vmem:[#allocation10 + $0x20] sm:$0xf]  ;;  %v2752_v43 = vld [vmem:[#allocation10 + $0x24] sm:$0xf0] }
  0x8d   : > { %v744_v9 = vmul.f32 128.0, %v2985_v8  ;;  %vm748_vm0 = vweird.f32 %v2985_v8  ;;  %882 = vmatpush.bf16.msra.mxu0 %v2424_v21  ;;  %v2404_v41 = vor.u32 %v2753_v38, %v2401_v40  ;;  %v2751_v44 = vld [vmem:[#allocation10 + $0x24] sm:$0xf]  ;;  %v2392_v45 = vor.u32 %v2752_v43, %v2391_v42  ;;  %v2393_v46 = vld [vmem:[#allocation10 + $0x28] sm:$0xf0]  ;;  %s3413_s20 = smov 64  }
  0x8e   : > { %895 = vmatpush.bf16.msra.mxu1 %v2428_v23  ;;  %v2396_v47 = vor.u32 %v2751_v44, %v2393_v46  ;;  %v2383_v48 = vld [vmem:[#allocation10 + $0x10] sm:$0xf]  ;;  %v2750_v49 = vld [vmem:[#allocation10 + $0x14] sm:$0xf0]  ;;  %v2749_v50 = vld [vmem:[#allocation10 + $0x14] sm:$0xf] }
  0x8f   : > { %v745_v10 = vsub.f32 1.0, %v744_v9  ;;  %v2384_v51 = vor.u32 %v2750_v49, %v2383_v48  ;;  %v2385_v52 = vld [vmem:[#allocation10 + $0x18] sm:$0xf0]  ;;  %v2375_v53 = vld [vmem:[#allocation10] sm:$0xf]  ;;  %vm948_vm4 = vcmask 261120  }
  0x90   : > { %v2748_v54 = vld [vmem:[#allocation10 + $0x4] sm:$0xf0]  ;;  %v2388_v55 = vor.u32 %v2749_v50, %v2385_v52  ;;  %v2747_v56 = vld [vmem:[#allocation10 + $0x4] sm:$0xf]  ;;  %v2377_v57 = vld [vmem:[#allocation10 + $0x8] sm:$0xf0] }
  0x91   : > { %v746_v11 = vmul.f32 %v2985_v8, %v745_v10  ;;  %883 = vmatpush.bf16.msra.mxu0 %v2416_v27  ;;  %v2376_v58 = vor.u32 %v2748_v54, %v2375_v53  ;;  %v2380_v59 = vor.u32 %v2747_v56, %v2377_v57  ;;  %v2978_v6 = vld [vmem:[%s3958_s4] ss:$0 sm:$0xff]  ;;  %v2979_v9 = vld [vmem:[#allocation8] ss:$0 sm:$0xff]  ;;  %s3414_s9 = smov 96   ;;  %s3415_s23 = smov 32  }
  0x92   : > { %896 = vmatpush.bf16.msra.mxu1 %v2420_v29  ;;  %v732_v25 = vld [vmem:[%s3701_s18 + $0x4] sm:$0xf]  ;;  %v733_v38 = vld [vmem:[%s3701_s18 + $0x8] sm:$0xf]  ;;  %p726_p13 = scmp.lt.s32.totalorder %s3526_s28, 1  ;;  %vm1055_vm7 = vcmask 64512  }
  0x93   : > { %v747_v12 = vadd.f32 %v2985_v8, %v746_v11  ;;  %v1101_v28 = vunpack.c.l.bf16 %v732_v25  ;;  %v978_v36 = vsel %vm948_vm4, %v732_v25, 0  ;;  %s4029_s11 = sld [smem:[#allocation36_spill]]  ;;  %s725_s30 = scalar_lea.vmem [#allocation17], %s2363_s8 }
  0x94   : > { %s727_s12 = scalar_select %p726_p13, %s3526_s28, 1 }
  0x95   : > { %v3724_v13 = vsel %vm748_vm0, %v2985_v8, %v747_v12  ;;  %884 = vmatpush.bf16.msra.mxu0 %v2408_v33  ;;  %s4030_s17 = sld [smem:[#allocation37_spill]]  ;;  %s2163_s1 = sshll.u32 %s725_s30, 4  ;;  %s2164_s1 = int_to_ptr.vmem [resolvable:$true] %s2163_s1 }
  0x96   : > { %897 = vmatpush.bf16.msra.mxu1 %v2412_v35  ;;  %s728_s19 = scalar_lea.vmem %s3957_s3, %s727_s12  ;;  %s4031_s21 = sld [smem:[#allocation38_spill]] }
  0x97   : > { %s4034_s0 = sld [smem:[#allocation42_spill]] }
  0x99   : > { %885 = vmatpush.bf16.msra.mxu0 %v2400_v39  ;;  %v734_v39 = vld [vmem:[%s3701_s18 + $0xc] sm:$0xf] }
  0x9a   : > { %898 = vmatpush.bf16.msra.mxu1 %v2404_v41  ;;  %v1102_v41 = vunpack.c.l.bf16 %v733_v38  ;;  %v1103_v42 = vunpack.c.l.bf16 %v734_v39 }
  0x9c   : > { %v2973_v43 = vpack.i.bf16 %v1103_v42, %v1102_v41 }
  0x9d   : > { %886 = vmatpush.bf16.msra.mxu0 %v2392_v45  ;;  %s3336_s25 = scalar_lea.hbm %s4034_s0, 16 }
  0x9e   : > { %899 = vmatpush.bf16.msra.mxu1 %v2396_v47 }
  0xa1   : > { %887 = vmatpush.bf16.msra.mxu0 %v2384_v51 }
  0xa2   : > { %900 = vmatpush.bf16.msra.mxu1 %v2388_v55  ;;  %v1028_v55 = vsel %vm948_vm4, %v734_v39, 0 }
  0xa5   : > { %888 = vmatpush.bf16.msra.mxu0 %v2376_v58 }
  0xa6   : > { %901 = vmatpush.bf16.msra.mxu1 %v2380_v59 }
  0xf9   : > { %v742_v14 = vpop.xlane.xlu0 %741 }
  0xfa   : > { %v750_v15 = vmul.f32 %v3724_v13, %v742_v14  ;;  %v731_v14 = vld [vmem:[%s3701_s18] sm:$0xf] }
  0xfb   : > { %v1100_v27 = vunpack.c.l.bf16 %v731_v14 }
  0xfc   : > { %v3728_v16 = vsub.f32 %v3721_v0, %v750_v15  ;;  %v953_v15 = vsel %vm948_vm4, %v731_v14, 0 }
  0xfd   : > { %962 = vmatpush.bf16.xpose.msra.mxu3 %v953_v15  ;;  %v2968_v29 = vpack.i.bf16 %v1101_v28, %v1100_v27 }
  0xfe   : > { %v752_v17 = vmul.f32 %v3728_v16, %v3728_v16 }
 0x100   : > { %753 = vadd.xlane.f32.xlu0 %v752_v17  ;;  %v795_v17 = vld [vmem:[#allocation11] sm:$0x3] }
 0x101   : > { %v797_v18 = vperm.slane %v795_v17, 0  ;;  %v798_v22 = vperm.slane %v795_v17, 1 }
 0x105   : > { %987 = vmatpush.bf16.xpose.msrb.mxu3 %v978_v36 }
 0x173   : > { %v754_v60 = vpop.xlane.xlu0 %753 }
 0x174   : > { %v755_v61 = vmul.f32 %v754_v60, %v3724_v13 }
 0x176   : > { %v756_v62 = vadd.f32 1e-05, %v755_v61  ;;  %v1003_v61 = vsel %vm948_vm4, %v733_v38, 0 }
 0x177   : > { %1012 = vmatpush.bf16.xpose.msra.mxu2 %v1003_v61 }
 0x178   : > { %2986 = vrsqrt.f32 %v756_v62  ;;  %vm763_vm2 = vweird.f32 %v756_v62 }
 0x17e   : > { %v2987_v63 = vpop.eup %2986 }
 0x17f   : > { %v758_v1 = vmul.f32 %v2987_v63, %v756_v62  ;;  %vm764_vm1 = vweird.f32 %v2987_v63 }
 0x180   : > { %vm765_vm3 = vmor %vm763_vm2, %vm764_vm1 }
 0x181   : > { %v759_v2 = vmul.f32 %v2987_v63, %v758_v1 }
 0x183   : > { %v760_v3 = vmul.f32 0.5, %v759_v2 }
 0x185   : > { %v761_v4 = vsub.f32 1.5, %v760_v3 }
 0x187   : > { %v762_v5 = vmul.f32 %v2987_v63, %v761_v4 }
 0x189   : > { %v766_v7 = vsel %vm765_vm3, %v2987_v63, %v762_v5 }
 0x18a   : > { %v767_v8 = vmul.f32 %v766_v7, %v3728_v16 }
 0x18c   : > { %v772_v10 = vmul.f32 %v2978_v6, %v767_v8 }
 0x18e   : > { %v777_v11 = vadd.f32 %v2979_v9, %v772_v10 }
 0x190   : > { %v778_v12 = vpack.c.bf16 %v777_v11, %v777_v11 }
 0x192   : > { %889 = vmatmul.bf16.vlgmr.msra.gmra.mxu0 %v778_v12  ;;  %902 = vmatmul.bf16.vlgmr.msra.gmra.mxu1 %v778_v12 }
 0x20f   : > { %v890_v19 = vpop.f32.mrf.mxu0  ;;  %v903_v20 = vpop.f32.mrf.mxu1 }
 0x210   : > { %v891_v21 = vadd.f32 %v890_v19, %v797_v18  ;;  %v3742_v26 = vadd.f32 %v903_v20, %v798_v22  ;;  %v739_v22 = vld [vmem:[%s728_s19] sm:$0x1] }
 0x211   : > { %vm740_vm5 = vcmp.gt.f32.partialorder %v739_v22, 0.5 }
 0x212   : > { %908 = vrot.lane.b32.xlu1 %v891_v21, %s3413_s20  ;;  %v915_v16 = vmul.f32 0.17677669, %v891_v21  ;;  %v935_v30 = vpack.c.bf16 %v891_v21, %v891_v21  ;;  %v917_v46 = vmul.f32 0.17677669, %v3742_v26  ;;  %v939_v11 = vpack.c.bf16 %v3742_v26, %v3742_v26 }
 0x214   : > { %923 = vrot.lane.b32.xlu2 %v915_v16, %s3414_s9  ;;  %v945_v33 = vunpack.c.l.b16 %v935_v30  ;;  %v996_v19 = vunpack.c.l.b16 %v939_v11 }
 0x217   : > { %v892_v23 = vpop.f32.mrf.mxu0  ;;  %v905_v24 = vpop.f32.mrf.mxu1 }
 0x218   : > { %v3416_v24 = vmov 0  }
 0x219   : > { %v1048_v25 = vsel %vm740_vm5, 1, %v3416_v24  ;;  %vm1289_vm5 = vcmask 1043456  }
 0x21a   : > { %912 = vrot.lane.b32.xlu1 %v3742_v26, %s3413_s20 }
 0x222   : > { %2969 = vrot.lane.b32.xlu1 %v2968_v29, %s3415_s23 }
 0x26e   : > { %v924_v31 = vpop.permute.xlu2 %923 }
 0x26f   : > { %v936_v32 = vpack.c.bf16 %v924_v31, %v924_v31 }
 0x271   : > { %v946_v34 = vunpack.c.l.b16 %v936_v32 }
 0x273   : > { %v947_v35 = vpack.c.b16 %v946_v34, %v945_v33 }
 0x275   : > { %2437 = vmatmul.msk.bf16.vlgmr.msra.gmra.mxu3 %vm948_vm4, %v947_v35 }
 0x276   : > { %1037 = vmatpush.bf16.xpose.msra.mxu3 %v1028_v55 }
 0x284   : > { %v909_v37 = vpop.permute.xlu1 %908 }
 0x285   : > { %v916_v40 = vmul.f32 0.17677669, %v909_v37  ;;  %v937_v56 = vpack.c.bf16 %v909_v37, %v909_v37 }
 0x287   : > { %925 = vrot.lane.b32.xlu2 %v916_v40, %s3414_s9  ;;  %v971_v59 = vunpack.c.l.b16 %v937_v56 }
 0x28c   : > { %v913_v44 = vpop.permute.xlu1 %912 }
 0x28d   : > { %v918_v45 = vmul.f32 0.17677669, %v913_v44  ;;  %v941_v8 = vpack.c.bf16 %v913_v44, %v913_v44 }
 0x28f   : > { %2974 = vrot.lane.b32.xlu2 %v2973_v43, %s3415_s23  ;;  %v2963_v47 = vpack.i.bf16 %v918_v45, %v917_v46  ;;  %v1021_v15 = vunpack.c.l.b16 %v941_v8 }
 0x291   : > { %2964 = vrot.lane.b32.xlu0 %v2963_v47, %s3414_s9 }
 0x294   : > { %v2970_v48 = vpop.permute.xlu1 %2969 }
 0x295   : > { %v2972_v49 = vunpack.i.h.bf16 %v2970_v48  ;;  %v2971_v50 = vunpack.i.l.bf16 %v2970_v48 }
 0x297   : > { %v1121_v51 = vsub.f32 %v909_v37, %v2972_v49  ;;  %v1120_v52 = vsub.f32 %v891_v21, %v2971_v50 }
 0x299   : > { %v1124_v53 = vand.u32 2147483647, %v1120_v52  ;;  %v1125_v54 = vand.u32 2147483647, %v1121_v51 }
 0x29b   : > { %1132 = vrot.lane.b32.xlu1 %v1124_v53, %s3414_s9  ;;  %1134 = vrot.lane.b32.xlu2 %v1125_v54, %s3414_s9 }
 0x2e1   : > { %v926_v57 = vpop.permute.xlu2 %925 }
 0x2e2   : > { %v938_v58 = vpack.c.bf16 %v926_v57, %v926_v57 }
 0x2e4   : > { %v972_v60 = vunpack.c.l.b16 %v938_v58 }
 0x2e6   : > { %v973_v62 = vpack.c.b16 %v972_v60, %v971_v59 }
 0x2e8   : > { %2438 = vmatmul.msk.bf16.vlgmr.msrb.gmra.mxu3 %vm948_vm4, %v973_v62 }
 0x2e9   : > { %v2975_v63 = vpop.permute.xlu2 %2974 }
 0x2ea   : > { %v2977_v1 = vunpack.i.h.bf16 %v2975_v63  ;;  %v2976_v2 = vunpack.i.l.bf16 %v2975_v63 }
 0x2ec   : > { %v1123_v3 = vsub.f32 %v913_v44, %v2977_v1  ;;  %v1122_v4 = vsub.f32 %v3742_v26, %v2976_v2  ;;  %v1049_v26 = vperm.slane %v1048_v25, 0 }
 0x2ee   : > { %v1127_v5 = vand.u32 2147483647, %v1123_v3  ;;  %v1126_v6 = vand.u32 2147483647, %v1122_v4  ;;  %vm3774_vm6 = vcmp.eq.s32.totalorder %v1049_v26, 1 }
 0x2f0   : > { %1138 = vrot.lane.b32.xlu2 %v1127_v5, %s3414_s9  ;;  %1136 = vrot.lane.b32.xlu1 %v1126_v6, %s3414_s9 }
 0x2f5   : > { %v1135_v31 = vpop.permute.xlu2 %1134 }
 0x2f6   : > { %v1147_v44 = vsel %vm948_vm4, %v1135_v31, 0.0 }
 0x2f8   : > { %v964_v16 = vpop.f32.mrf.mxu3 }
 0x2f9   : > { %v1051_v46 = vsel %vm3774_vm6, %v964_v16, -1e+30 }
 0x2fa   : > { %v1056_v47 = vsel %vm1055_vm7, %v1051_v46, -inf }
 0x300   : > { %v3772_v23 = vpop.f32.mrf.mxu3 }
 0x303   : > { %v2965_v7 = vpop.permute.xlu0 %2964 }
 0x304   : > { %v2967_v9 = vunpack.i.h.bf16 %v2965_v7  ;;  %v2966_v10 = vunpack.i.l.bf16 %v2965_v7 }
 0x306   : > { %v942_v12 = vpack.c.bf16 %v2967_v9, %v2967_v9  ;;  %v940_v14 = vpack.c.bf16 %v2966_v10, %v2966_v10 }
 0x308   : > { %v1022_v17 = vunpack.c.l.b16 %v942_v12  ;;  %v997_v18 = vunpack.c.l.b16 %v940_v14 }
 0x30a   : > { %v1023_v20 = vpack.c.b16 %v1022_v17, %v1021_v15  ;;  %v998_v21 = vpack.c.b16 %v997_v18, %v996_v19 }
 0x30c   : > { %2439 = vmatmul.msk.bf16.vlgmr.msra.gmra.mxu2 %vm948_vm4, %v998_v21  ;;  %2440 = vmatmul.msk.bf16.vlgmr.msra.gmra.mxu3 %vm948_vm4, %v1023_v20 }
 0x30d   : > { %v1133_v32 = vpop.permute.xlu1 %1132 }
 0x30e   : > { %v1144_v33 = vsel %vm948_vm4, %v1133_v32, 0.0 }
 0x34a   : > { %v1139_v34 = vpop.permute.xlu2 %1138 }
 0x34b   : > { %v1153_v35 = vsel %vm948_vm4, %v1139_v34, 0.0 }
 0x362   : > { %v1137_v43 = vpop.permute.xlu1 %1136 }
 0x363   : > { %v1150_v45 = vsel %vm948_vm4, %v1137_v43, 0.0 }
 0x36b   : > { %v989_v28 = vpop.f32.mrf.mxu3 }
 0x36c   : > { %v1052_v29 = vsel %vm3774_vm6, %v989_v28, -1e+30 }
 0x36d   : > { %v1059_v30 = vsel %vm1055_vm7, %v1052_v29, -inf }
 0x36e   : > { %1060 = vmax.xlane.f32.xlu0 %v1059_v30 }
 0x373   : > { %v3783_v36 = vpop.f32.mrf.mxu3 }
 0x376   : > { %1145 = vadd.xlane.f32.xlu0 %v1144_v33 }
 0x37e   : > { %1154 = vadd.xlane.f32.xlu0 %v1153_v35 }
 0x38f   : > { %v1014_v37 = vpop.f32.mrf.mxu2  ;;  %v1039_v38 = vpop.f32.mrf.mxu3 }
 0x390   : > { %v1053_v39 = vsel %vm3774_vm6, %v1014_v37, -1e+30  ;;  %v1054_v40 = vsel %vm3774_vm6, %v1039_v38, -1e+30 }
 0x391   : > { %v1065_v41 = vsel %vm1055_vm7, %v1054_v40, -inf  ;;  %v1062_v42 = vsel %vm1055_vm7, %v1053_v39, -inf }
 0x392   : > { %1066 = vmax.xlane.f32.xlu2 %v1065_v41  ;;  %1063 = vmax.xlane.f32.xlu1 %v1062_v42 }
 0x39a   : > { %1148 = vadd.xlane.f32.xlu2 %v1147_v44  ;;  %1151 = vadd.xlane.f32.xlu1 %v1150_v45 }
 0x3a2   : > { %1057 = vmax.xlane.f32.xlu2 %v1056_v47 }
 0x3e1   : > { %v1061_v48 = vpop.xlane.xlu0 %1060 }
 0x3e2   : > { %v1069_v49 = vsub.f32 %v1052_v29, %v1061_v48 }
 0x3e4   : > { %v1074_v50 = vmul.f32 1.442695, %v1069_v49 }
 0x3e6   : > { %2988 = vpow2.f32 %v1074_v50 }
 0x3e9   : > { %v1146_v61 = vpop.xlane.xlu0 %1145 }
 0x3ea   : > { %v1156_v6 = vsub.f32 0.0, %v1146_v61 }
 0x3ec   : > { %v3796_v51 = vpop.eup %2988  ;;  %v2441_v11 = vmul.f32 -0.17677669, %v1156_v6 }
 0x3ed   : > { %v1083_v52 = vsel %vm1055_vm7, %v3796_v51, 0.0 }
 0x3ee   : > { %1084 = vadd.xlane.f32.xlu1 %v1083_v52  ;;  %v1168_v17 = vmul.f32 1.442695, %v2441_v11 }
 0x3f1   : > { %v1155_v10 = vpop.xlane.xlu0 %1154 }
 0x3f2   : > { %v1159_v14 = vsub.f32 0.0, %v1155_v10  ;;  %v736_v10 = vld [vmem:[%s3707_s27 + $0x4] sm:$0xf] }
 0x3f4   : > { %v2444_v20 = vmul.f32 -0.17677669, %v1159_v14  ;;  %v1310_v14 = vsel %vm1289_vm5, %v736_v10, 0 }
 0x3f5   : > { %1319 = vmatpush.bf16.msrb.mxu3 %v1310_v14 }
 0x3f6   : > { %v1174_v16 = vmul.f32 1.442695, %v2444_v20 }
 0x405   : > { %v1067_v53 = vpop.xlane.xlu2 %1066  ;;  %v1064_v54 = vpop.xlane.xlu1 %1063 }
 0x406   : > { %v1071_v55 = vsub.f32 %v1054_v40, %v1067_v53  ;;  %v1070_v56 = vsub.f32 %v1053_v39, %v1064_v54 }
 0x408   : > { %v1078_v57 = vmul.f32 1.442695, %v1071_v55  ;;  %v1076_v58 = vmul.f32 1.442695, %v1070_v56 }
 0x40a   : > { %2990 = vpow2.f32 %v1078_v57 }
 0x40b   : > { %2992 = vpow2.f32 %v1076_v58 }
 0x40d   : > { %v1149_v59 = vpop.xlane.xlu2 %1148  ;;  %v1152_v3 = vpop.xlane.xlu1 %1151 }
 0x40e   : > { %v1157_v2 = vsub.f32 0.0, %v1149_v59  ;;  %v1158_v7 = vsub.f32 0.0, %v1152_v3 }
 0x410   : > { %v3800_v60 = vpop.eup %2990  ;;  %v2442_v9 = vmul.f32 -0.17677669, %v1157_v2  ;;  %v2443_v12 = vmul.f32 -0.17677669, %v1158_v7  ;;  %v1248_v2 = vlaneseq }
 0x411   : > { %v3802_v62 = vpop.eup %2992  ;;  %v1089_v63 = vsel %vm1055_vm7, %v3800_v60, 0.0 }
 0x412   : > { %1090 = vadd.xlane.f32.xlu2 %v1089_v63  ;;  %v1086_v1 = vsel %vm1055_vm7, %v3802_v62, 0.0  ;;  %v1170_v15 = vmul.f32 1.442695, %v2442_v9  ;;  %v1172_v19 = vmul.f32 1.442695, %v2443_v12  ;;  %v1249_v20 = vand.u32 127, %v1248_v2 }
 0x413   : > { %1087 = vadd.xlane.f32.xlu0 %v1086_v1 }
 0x415   : > { %v1058_v4 = vpop.xlane.xlu2 %1057 }
 0x416   : > { %v1068_v5 = vsub.f32 %v1051_v46, %v1058_v4 }
 0x418   : > { %v1072_v8 = vmul.f32 1.442695, %v1068_v5 }
 0x41a   : > { %2994 = vpow2.f32 %v1072_v8 }
 0x41b   : > { %2996 = vpow2.f32 %v1170_v15 }
 0x41c   : > { %2998 = vpow2.f32 %v1168_v17 }
 0x41d   : > { %3000 = vpow2.f32 %v1172_v19 }
 0x41e   : > { %3002 = vpow2.f32 %v1174_v16 }
 0x420   : > { %v3808_v18 = vpop.eup %2994 }
 0x421   : > { %v1080_v21 = vsel %vm1055_vm7, %v3808_v18, 0.0  ;;  %v2997_v22 = vpop.eup %2996 }
 0x422   : > { %1081 = vadd.xlane.f32.xlu1 %v1080_v21  ;;  %v2999_v24 = vpop.eup %2998  ;;  %v1177_v26 = vadd.f32 1.0, %v2997_v22  ;;  %v738_v22 = vld [vmem:[%s3707_s27 + $0xc] sm:$0xf] }
 0x423   : > { %v3001_v25 = vpop.eup %3000  ;;  %v1176_v28 = vadd.f32 1.0, %v2999_v24 }
 0x424   : > { %v1178_v29 = vadd.f32 1.0, %v3001_v25  ;;  %3004 = vrcp.f32 %v1177_v26  ;;  %v3003_v30 = vpop.eup %3002  ;;  %v1206_v49 = vand.u32 2147483648, %v1177_v26  ;;  %vm1200_vm10 = vweird.f32 %v1177_v26 }
 0x425   : > { %3006 = vrcp.f32 %v1176_v28  ;;  %v3812_v31 = vadd.f32 1.0, %v3003_v30  ;;  %v1204_v52 = vand.u32 2147483647, %v1177_v26  ;;  %v1189_v53 = vand.u32 2147483647, %v1176_v28 }
 0x426   : > { %3008 = vrcp.f32 %v1178_v29  ;;  %v1191_v54 = vand.u32 2147483648, %v1176_v28  ;;  %vm1185_vm13 = vweird.f32 %v1176_v28  ;;  %v1221_v59 = vand.u32 2147483648, %v1178_v29 }
 0x427   : > { %3010 = vrcp.f32 %v3812_v31  ;;  %v1207_v63 = vor.u32 1.1754944e-38, %v1206_v49  ;;  %vm1215_vm15 = vweird.f32 %v1178_v29  ;;  %v1219_v1 = vand.u32 2147483647, %v1178_v29  ;;  %v735_v49 = vld [vmem:[%s3707_s27] sm:$0xf] }
 0x428   : > { %vm1205_vm0 = vcmp.eq.f32.partialorder %v1204_v52, 8.507059e+37  ;;  %vm1190_vm2 = vcmp.eq.f32.partialorder %v1189_v53, 8.507059e+37  ;;  %v1192_v5 = vor.u32 1.1754944e-38, %v1191_v54  ;;  %v1222_v9 = vor.u32 1.1754944e-38, %v1221_v59  ;;  %v1041_v52 = vpop.f32.mrf.mxu3 }
 0x429   : > { %v1236_v12 = vand.u32 2147483648, %v3812_v31  ;;  %v1234_v15 = vand.u32 2147483647, %v3812_v31  ;;  %3012 = vtanh.f32 %v3783_v36  ;;  %v1291_v36 = vsel %vm1289_vm5, %v735_v49, 0  ;;  %v2597_v49 = vld [vmem:[#allocation14 + $0xf0] sm:$0xf0] }
 0x42a   : > { %v3005_v32 = vpop.eup %3004  ;;  %1300 = vmatpush.bf16.msrb.mxu2 %v1291_v36  ;;  %v2603_v36 = vld [vmem:[#allocation14 + $0xe8] sm:$0xf] }
 0x42b   : > { %v3007_v33 = vpop.eup %3006  ;;  %v1196_v35 = vmul.f32 %v3005_v32, %v1177_v26  ;;  %vm1201_vm8 = vweird.f32 %v3005_v32  ;;  %v1237_v24 = vor.u32 1.1754944e-38, %v1236_v12  ;;  %v1348_v26 = vsel %vm1289_vm5, %v738_v22, 0 }
 0x42c   : > { %v3009_v34 = vpop.eup %3008  ;;  %v1181_v37 = vmul.f32 %v3007_v33, %v1176_v28  ;;  %vm1186_vm9 = vweird.f32 %v3007_v33  ;;  %vm3819_vm11 = vmor %vm1200_vm10, %vm1201_vm8  ;;  %vm1220_vm8 = vcmp.eq.f32.partialorder %v1219_v1, 8.507059e+37  ;;  %1357 = vmatpush.bf16.msrb.mxu1 %v1348_v26  ;;  %v2768_v26 = vld [vmem:[#allocation13 + $0x28] sm:$0xff] }
 0x42d   : > { %v1211_v38 = vmul.f32 %v3009_v34, %v1178_v29  ;;  %v1197_v39 = vsub.f32 1.0, %v1196_v35  ;;  %v3815_v40 = vpop.eup %3010  ;;  %vm1216_vm12 = vweird.f32 %v3009_v34  ;;  %vm3826_vm14 = vmor %vm1185_vm13, %vm1186_vm9  ;;  %vm1230_vm9 = vweird.f32 %v3812_v31 }
 0x42e   : > { %v1182_v41 = vsub.f32 1.0, %v1181_v37  ;;  %v1226_v43 = vmul.f32 %v3815_v40, %v3812_v31  ;;  %vm3832_vm1 = vmor %vm1215_vm15, %vm1216_vm12  ;;  %vm1231_vm3 = vweird.f32 %v3815_v40  ;;  %vm1254_vm12 = vcmask 1041409  }
 0x42f   : > { %v1212_v42 = vsub.f32 1.0, %v1211_v38  ;;  %v1198_v44 = vmul.f32 %v3005_v32, %v1197_v39  ;;  %vm1232_vm10 = vmor %vm1230_vm9, %vm1231_vm3  ;;  %vm1256_vm13 = vcmask 1042434  }
 0x430   : > { %v1183_v45 = vmul.f32 %v3007_v33, %v1182_v41  ;;  %v1227_v47 = vsub.f32 1.0, %v1226_v43 }
 0x431   : > { %v1213_v46 = vmul.f32 %v3009_v34, %v1212_v42  ;;  %v1199_v48 = vadd.f32 %v3005_v32, %v1198_v44  ;;  %v3013_v42 = vpop.eup %3012 }
 0x432   : > { %v1184_v50 = vadd.f32 %v3007_v33, %v1183_v45  ;;  %v1228_v57 = vmul.f32 %v3815_v40, %v1227_v47 }
 0x433   : > { %v1214_v56 = vadd.f32 %v3009_v34, %v1213_v46  ;;  %v1203_v58 = vsel %vm3819_vm11, %v3005_v32, %v1199_v48  ;;  %vm1235_vm11 = vcmp.eq.f32.partialorder %v1234_v15, 8.507059e+37  ;;  %v737_v48 = vld [vmem:[%s3707_s27 + $0x8] sm:$0xf]  ;;  %s4032_s27 = sld [smem:[#allocation40_spill]] }
 0x434   : > { %v1188_v3 = vsel %vm3826_vm14, %v3007_v33, %v1184_v50  ;;  %v1208_v6 = vsel %vm1205_vm0, %v1207_v63, %v1203_v58  ;;  %v1229_v8 = vadd.f32 %v3815_v40, %v1228_v57  ;;  %vm1258_vm14 = vcmask 1043459   ;;  %v1016_v50 = vpop.f32.mrf.mxu2 }
 0x435   : > { %v1218_v7 = vsel %vm3832_vm1, %v3009_v34, %v1214_v56  ;;  %v1193_v11 = vsel %vm1190_vm2, %v1192_v5, %v1188_v3  ;;  %v1241_v17 = vmul.f32 2.0, %v1208_v6  ;;  %v1329_v27 = vsel %vm1289_vm5, %v737_v48, 0  ;;  %v2799_v48 = vld [vmem:[#allocation14 + $0xe4] sm:$0xf] }
 0x436   : > { %v1223_v19 = vsel %vm1220_vm8, %v1222_v9, %v1218_v7  ;;  %v1240_v21 = vmul.f32 2.0, %v1193_v11  ;;  %v1233_v16 = vsel %vm1232_vm10, %v3815_v40, %v1229_v8  ;;  %1338 = vmatpush.bf16.msrb.mxu0 %v1329_v27 }
 0x437   : > { %v1242_v25 = vmul.f32 2.0, %v1223_v19  ;;  %v1251_v28 = vperm.slane %v1241_v17, %v1249_v20  ;;  %v1238_v29 = vsel %vm1235_vm11, %v1237_v24, %v1233_v16 }
 0x438   : > { %v1250_v30 = vperm.slane %v1240_v21, %v1249_v20  ;;  %v1243_v32 = vmul.f32 2.0, %v1238_v29  ;;  %v2766_v29 = vld [vmem:[#allocation13 + $0x18] sm:$0xff] }
 0x439   : > { %v1252_v31 = vperm.slane %v1242_v25, %v1249_v20  ;;  %v2769_v25 = vld [vmem:[#allocation13 + $0x30] sm:$0xff] }
 0x43a   : > { %v1255_v33 = vsel %vm1254_vm12, %v1251_v28, %v1250_v30  ;;  %v1253_v35 = vperm.slane %v1243_v32, %v1249_v20  ;;  %v2767_v28 = vld [vmem:[#allocation13 + $0x20] sm:$0xff]  ;;  %v2765_v30 = vld [vmem:[#allocation13 + $0x10] sm:$0xff] }
 0x43b   : > { %v1257_v34 = vsel %vm1256_vm13, %v1252_v31, %v1255_v33  ;;  %v2764_v31 = vld [vmem:[#allocation13 + $0x8] sm:$0xff]  ;;  %v2763_v32 = vld [vmem:[#allocation13] sm:$0xff] }
 0x43c   : > { %v1259_v37 = vsel %vm1258_vm14, %v1253_v35, %v1257_v34 }
 0x43d   : > { %v1261_v38 = vsel %vm3774_vm6, %v1259_v37, 0.0  ;;  %vm1376_vm6 = vcmask 523264  }
 0x43e   : > { %v1263_v39 = vrot.slane %v1261_v38, 1  ;;  %v1265_v54 = vrot.slane %v1261_v38, 3  ;;  %v1264_v55 = vrot.slane %v1261_v38, 2  ;;  %v1266_v10 = vperm.slane %v1261_v38, 0 }
 0x440   : > { %v1267_v41 = vperm.slane %v1263_v39, 0  ;;  %v1269_v56 = vperm.slane %v1265_v54, 0  ;;  %v1268_v58 = vperm.slane %v1264_v55, 0  ;;  %v2800_v54 = vld [vmem:[#allocation14 + $0xec] sm:$0xf] }
 0x442   : > { %v1275_v44 = vmul.f32 %v3013_v42, %v1267_v41  ;;  %v2980_v41 = vld [vmem:[%s4029_s11] ss:$0 sm:$0xff] }
 0x461   : > { %v1085_v40 = vpop.xlane.xlu1 %1084 }
 0x462   : > { %3014 = vrcp.f32 %v1085_v40 }
 0x463   : > { %3016 = vtanh.f32 %v1016_v50  ;;  %v2802_v50 = vld [vmem:[#allocation14 + $0xf4] sm:$0xf0] }
 0x464   : > { %3018 = vtanh.f32 %v1041_v52  ;;  %v2600_v52 = vor.u32 %v2799_v48, %v2597_v49  ;;  %v2515_v48 = vld [vmem:[#allocation14 + $0x40] sm:$0xf]  ;;  %v2779_v49 = vld [vmem:[#allocation14 + $0x44] sm:$0xf] }
 0x466   : > { %1709 = vmatpush.bf16.msra.mxu0 %v2600_v52  ;;  %v2523_v52 = vld [vmem:[#allocation14 + $0x48] sm:$0xf] }
 0x468   : > { %v3015_v43 = vpop.eup %3014 }
 0x469   : > { %v1097_v45 = vmul.f32 %v3015_v43, %v3796_v51  ;;  %v3017_v57 = vpop.eup %3016 }
 0x46a   : > { %v3019_v59 = vpop.eup %3018  ;;  %v1276_v4 = vmul.f32 %v3017_v57, %v1268_v58 }
 0x46b   : > { %v1279_v46 = vadd.f32 %v1275_v44, %v1097_v45  ;;  %v1277_v2 = vmul.f32 %v3019_v59, %v1269_v56  ;;  %v2579_v59 = vld [vmem:[#allocation14 + $0xc0] sm:$0xf] }
 0x46d   : > { %v1283_v47 = vpack.c.bf16 %v1279_v46, %v1279_v46  ;;  %v2595_v46 = vld [vmem:[#allocation14 + $0xe0] sm:$0xf] }
 0x46f   : > { %2446 = vmatmul.msk.bf16.vlgmr.msrb.gmra.mxu3 %vm1055_vm7, %v1283_v47  ;;  %v2801_v47 = vld [vmem:[#allocation14 + $0xec] sm:$0xf0] }
 0x470   : > { %v2596_v27 = vor.u32 %v2801_v47, %v2595_v46  ;;  %v2541_v46 = vld [vmem:[#allocation14 + $0x78] sm:$0xf0] }
 0x472   : > { %1696 = vmatpush.bf16.msra.mxu3 %v2596_v27  ;;  %v2781_v27 = vld [vmem:[#allocation14 + $0x4c] sm:$0xf0] }
 0x485   : > { %v1091_v53 = vpop.xlane.xlu2 %1090 }
 0x486   : > { %3020 = vrcp.f32 %v1091_v53  ;;  %v1088_v51 = vpop.xlane.xlu0 %1087  ;;  %v2604_v53 = vor.u32 %v2802_v50, %v2603_v36  ;;  %v2516_v36 = vor.u32 %v2781_v27, %v2515_v48  ;;  %v2517_v50 = vld [vmem:[#allocation14 + $0x50] sm:$0xf0]  ;;  %v2823_v48 = vld [vmem:[#allocation16 + $0xa0] sm:$0xff]  ;;  %v2808_v27 = vld [vmem:[#allocation16 + $0x28] sm:$0xff] }
 0x487   : > { %3022 = vrcp.f32 %v1088_v51  ;;  %v2605_v51 = vld [vmem:[#allocation14 + $0xf8] sm:$0xf0] }
 0x488   : > { %3024 = vtanh.f32 %v3772_v23  ;;  %v2608_v55 = vor.u32 %v2800_v54, %v2605_v51  ;;  %1722 = vmatpush.bf16.msra.mxu1 %v2604_v53  ;;  %v2782_v53 = vld [vmem:[#allocation14 + $0x54] sm:$0xf0]  ;;  %v2520_v54 = vor.u32 %v2779_v49, %v2517_v50  ;;  %v2832_v49 = vld [vmem:[#allocation16 + $0xe8] sm:$0xff] }
 0x489   : > { %v2524_v51 = vor.u32 %v2782_v53, %v2523_v52  ;;  %v2822_v50 = vld [vmem:[#allocation16 + $0x98] sm:$0xff]  ;;  %v2807_v52 = vld [vmem:[#allocation16 + $0x20] sm:$0xff] }
 0x48a   : > { %v2831_v53 = vld [vmem:[#allocation16 + $0xe0] sm:$0xff] }
 0x48c   : > { %v3021_v61 = vpop.eup %3020 }
 0x48d   : > { %v3023_v63 = vpop.eup %3022  ;;  %v1099_v1 = vmul.f32 %v3021_v61, %v3800_v60  ;;  %v2797_v61 = vld [vmem:[#allocation14 + $0xcc] sm:$0xf0] }
 0x48e   : > { %v1098_v3 = vmul.f32 %v3023_v63, %v3802_v62  ;;  %v3025_v11 = vpop.eup %3024  ;;  %v2795_v63 = vld [vmem:[#allocation14 + $0xc4] sm:$0xf] }
 0x48f   : > { %v1281_v5 = vadd.f32 %v1277_v2, %v1099_v1  ;;  %v1274_v14 = vmul.f32 %v3025_v11, %v1266_v10  ;;  %v2580_v1 = vor.u32 %v2797_v61, %v2579_v59  ;;  %v2581_v2 = vld [vmem:[#allocation14 + $0xd0] sm:$0xf0]  ;;  %v2563_v10 = vld [vmem:[#allocation14 + $0xa0] sm:$0xf]  ;;  %v2793_v11 = vld [vmem:[#allocation14 + $0xac] sm:$0xf0] }
 0x490   : > { %v1280_v6 = vadd.f32 %v1276_v4, %v1098_v3  ;;  %v2587_v3 = vld [vmem:[#allocation14 + $0xc8] sm:$0xf]  ;;  %v2798_v4 = vld [vmem:[#allocation14 + $0xd4] sm:$0xf0]  ;;  %v2777_v59 = vld [vmem:[#allocation14 + $0x2c] sm:$0xf0] }
 0x491   : > { %v1285_v7 = vpack.c.bf16 %v1281_v5, %v1281_v5  ;;  %v2584_v5 = vor.u32 %v2795_v63, %v2581_v2  ;;  %1697 = vmatpush.bf16.msra.mxu3 %v2580_v1  ;;  %v2775_v61 = vld [vmem:[#allocation14 + $0x24] sm:$0xf]  ;;  %v2501_v1 = vld [vmem:[#allocation14 + $0x30] sm:$0xf0]  ;;  %v2507_v2 = vld [vmem:[#allocation14 + $0x28] sm:$0xf] }
 0x492   : > { %v1284_v8 = vpack.c.bf16 %v1280_v6, %v1280_v6  ;;  %v2588_v6 = vor.u32 %v2798_v4, %v2587_v3  ;;  %v2778_v3 = vld [vmem:[#allocation14 + $0x34] sm:$0xf0]  ;;  %v2504_v4 = vor.u32 %v2775_v61, %v2501_v1  ;;  %v2812_v61 = vld [vmem:[#allocation16 + $0x48] sm:$0xff] }
 0x493   : > { %2448 = vmatmul.msk.bf16.vlgmr.msrb.gmra.mxu1 %vm1055_vm7, %v1285_v7  ;;  %v2796_v7 = vld [vmem:[#allocation14 + $0xcc] sm:$0xf]  ;;  %1710 = vmatpush.bf16.msra.mxu0 %v2584_v5  ;;  %v2508_v5 = vor.u32 %v2778_v3, %v2507_v2 }
 0x494   : > { %2447 = vmatmul.msk.bf16.vlgmr.msrb.gmra.mxu0 %vm1055_vm7, %v1284_v8  ;;  %v2589_v8 = vld [vmem:[#allocation14 + $0xd8] sm:$0xf0]  ;;  %1723 = vmatpush.bf16.msra.mxu1 %v2588_v6  ;;  %v2776_v6 = vld [vmem:[#allocation14 + $0x2c] sm:$0xf] }
 0x495   : > { %v1082_v9 = vpop.xlane.xlu1 %1081 }
 0x496   : > { %3026 = vrcp.f32 %v1082_v9  ;;  %v2592_v9 = vor.u32 %v2796_v7, %v2589_v8  ;;  %v2509_v7 = vld [vmem:[#allocation14 + $0x38] sm:$0xf0]  ;;  %v2483_v8 = vld [vmem:[#allocation14] sm:$0xf] }
 0x49c   : > { %v3027_v12 = vpop.eup %3026 }
 0x49d   : > { %v1096_v60 = vmul.f32 %v3027_v12, %v3808_v18  ;;  %v2770_v18 = vld [vmem:[#allocation13 + $0x38] sm:$0xff]  ;;  %v2791_v12 = vld [vmem:[#allocation14 + $0xa4] sm:$0xf] }
 0x49e   : > { %1449 = vmatpush.bf16.msra.mxu2 %v2770_v18 }
 0x49f   : > { %v1278_v62 = vadd.f32 %v1274_v14, %v1096_v60  ;;  %v2564_v60 = vor.u32 %v2793_v11, %v2563_v10  ;;  %v2565_v14 = vld [vmem:[#allocation14 + $0xb0] sm:$0xf0]  ;;  %v2773_v10 = vld [vmem:[#allocation14 + $0xc] sm:$0xf0]  ;;  %v2771_v11 = vld [vmem:[#allocation14 + $0x4] sm:$0xf] }
 0x4a1   : > { %v1282_v15 = vpack.c.bf16 %v1278_v62, %v1278_v62  ;;  %v2571_v62 = vld [vmem:[#allocation14 + $0xa8] sm:$0xf]  ;;  %1698 = vmatpush.bf16.msra.mxu3 %v2564_v60  ;;  %v2484_v60 = vor.u32 %v2773_v10, %v2483_v8  ;;  %v2819_v10 = vld [vmem:[#allocation16 + $0x80] sm:$0xff] }
 0x4a2   : > { %1450 = vmatpush.bf16.msra.mxu2 %v2769_v25  ;;  %v2549_v25 = vld [vmem:[#allocation14 + $0x90] sm:$0xf0] }
 0x4a3   : > { %2445 = vmatmul.msk.bf16.vlgmr.msrb.gmra.mxu2 %vm1055_vm7, %v1282_v15  ;;  %vm1378_vm7 = vcmask 785408   ;;  %v2794_v15 = vld [vmem:[#allocation14 + $0xb4] sm:$0xf0] }
 0x4a6   : > { %1451 = vmatpush.bf16.msra.mxu2 %v2768_v26  ;;  %v2555_v26 = vld [vmem:[#allocation14 + $0x88] sm:$0xf] }
 0x4aa   : > { %1452 = vmatpush.bf16.msra.mxu2 %v2767_v28  ;;  %v2790_v28 = vld [vmem:[#allocation14 + $0x94] sm:$0xf0] }
 0x4ae   : > { %1453 = vmatpush.bf16.msra.mxu2 %v2766_v29 }
 0x4b2   : > { %1454 = vmatpush.bf16.msra.mxu2 %v2765_v30  ;;  %v2556_v30 = vor.u32 %v2790_v28, %v2555_v26 }
 0x4b6   : > { %1455 = vmatpush.bf16.msra.mxu2 %v2764_v31  ;;  %v2788_v31 = vld [vmem:[#allocation14 + $0x8c] sm:$0xf] }
 0x4ba   : > { %1456 = vmatpush.bf16.msra.mxu2 %v2763_v32  ;;  %v2557_v32 = vld [vmem:[#allocation14 + $0x98] sm:$0xf0] }
 0x4be   : > { %1735 = vmatpush.bf16.msrb.mxu2 %v2608_v55  ;;  %v2780_v55 = vld [vmem:[#allocation14 + $0x4c] sm:$0xf] }
 0x4c2   : > { %1736 = vmatpush.bf16.msrb.mxu2 %v2592_v9  ;;  %v2512_v9 = vor.u32 %v2776_v6, %v2509_v7 }
 0x4f2   : > { %v1321_v17 = vpop.f32.mrf.mxu3 }
 0x4f3   : > { %1364 = vrot.lane.b32.xlu0 %v1321_v17, %s3415_s23  ;;  %v2568_v17 = vor.u32 %v2791_v12, %v2565_v14  ;;  %v2485_v12 = vld [vmem:[#allocation14 + $0x10] sm:$0xf0] }
 0x4f4   : > { %v2488_v14 = vor.u32 %v2771_v11, %v2485_v12 }
 0x4f5   : > { %1711 = vmatpush.bf16.msra.mxu0 %v2568_v17  ;;  %v2772_v17 = vld [vmem:[#allocation14 + $0xc] sm:$0xf] }
 0x4fa   : > { %v1323_v19 = vpop.f32.mrf.mxu3 }
 0x4fb   : > { %v2572_v19 = vor.u32 %v2794_v15, %v2571_v62  ;;  %v2491_v62 = vld [vmem:[#allocation14 + $0x8] sm:$0xf]  ;;  %v2774_v15 = vld [vmem:[#allocation14 + $0x14] sm:$0xf0] }
 0x4fd   : > { %1724 = vmatpush.bf16.msra.mxu1 %v2572_v19  ;;  %v2492_v19 = vor.u32 %v2774_v15, %v2491_v62  ;;  %v2828_v62 = vld [vmem:[#allocation16 + $0xc8] sm:$0xff] }
 0x501   : > { %1725 = vmatpush.bf16.msra.mxu1 %v2556_v30  ;;  %v2981_v30 = vld [vmem:[%s4030_s17] ss:$0 sm:$0xff] }
 0x510   : > { %v1359_v20 = vpop.f32.mrf.mxu1 }
 0x511   : > { %v1340_v21 = vpop.f32.mrf.mxu0  ;;  %1372 = vrot.lane.b32.xlu1 %v1359_v20, %s3414_s9  ;;  %v2792_v20 = vld [vmem:[#allocation14 + $0xac] sm:$0xf]  ;;  %s2742_s9 = sshll.u32 %s3526_s28, 3  ;;  %s2151_s28 = scalar_lea.sflag [#allocation4], %s3689_s6 }
 0x512   : > { %1368 = vrot.lane.b32.xlu2 %v1340_v21, %s3413_s20  ;;  %v2573_v21 = vld [vmem:[#allocation14 + $0xb8] sm:$0xf0]  ;;  %s4033_s20 = sld [smem:[#allocation41_spill]]  ;;  %s2161_s26 = scalar_lea.hbm %s4034_s0, %s2742_s9 }
 0x513   : > { %s2165_s11 = sshll.u32 %s2161_s26, 4  ;;  %s2166_s11 = int_to_ptr.hbm [resolvable:$true] %s2165_s11 }
 0x514   : > { %s3330_s15 = sshra.s32 %s2166_s11, 4  ;;  %s3331_s15 = int_to_ptr.hbm [resolvable:$true] %s3330_s15 }
 0x515   : > { %s3332_s10 = scalar_lea.hbm %s3331_s15, 8  ;;  %p3337_p10 = scmp.lt.s32.totalorder %s3331_s15, %s4034_s0 }
 0x516   : > { %p3333_p4 = scmp.ne.s32.totalorder %s3331_s15, %s3332_s10  ;;  %p3338_p11 = scmp.lt.s32.totalorder %s3336_s25, %s3332_s10 }
 0x518   : > { %v1361_v23 = vpop.f32.mrf.mxu1  ;;  %p3334_p9 = pnand %p3333_p4, %p3578_p0  ;;  %p3339_p3 = por %p3338_p11, %p3337_p10 }
 0x519   : > { %v1342_v16 = vpop.f32.mrf.mxu0  ;;  %v2576_v23 = vor.u32 %v2792_v20, %v2573_v21  ;;  %v2493_v20 = vld [vmem:[#allocation14 + $0x18] sm:$0xf0] }
 0x51a   : > { %v2547_v16 = vld [vmem:[#allocation14 + $0x80] sm:$0xf]  ;;  %v2496_v21 = vor.u32 %v2772_v17, %v2493_v20  ;;  %p3335_p6 = pneg %p3334_p9 }
 0x51b   : > { %1737 = vmatpush.bf16.msrb.mxu2 %v2576_v23 }
 0x51c   : > { %p3340_p8 = pnand %p3339_p3, %p3335_p6 }
 0x526   : > { %v1302_v22 = vpop.f32.mrf.mxu2 }
 0x52e   : > { %v1304_v24 = vpop.f32.mrf.mxu2 }
 0x52f   : > { %v2787_v24 = vld [vmem:[#allocation14 + $0x84] sm:$0xf] }
 0x530   : > { %v2552_v29 = vor.u32 %v2787_v24, %v2549_v25 }
 0x532   : > { %1712 = vmatpush.bf16.msra.mxu0 %v2552_v29 }
 0x565   : > { %v1365_v33 = vpop.permute.xlu0 %1364 }
 0x566   : > { %v1375_v35 = vsel %vm948_vm4, %v1302_v22, %v1365_v33  ;;  %v2789_v22 = vld [vmem:[#allocation14 + $0x8c] sm:$0xf0]  ;;  %v2560_v33 = vor.u32 %v2788_v31, %v2557_v32 }
 0x567   : > { %v2548_v18 = vor.u32 %v2789_v22, %v2547_v16 }
 0x568   : > { %1738 = vmatpush.bf16.msrb.mxu2 %v2560_v33 }
 0x569   : > { %1699 = vmatpush.bf16.msra.mxu3 %v2548_v18 }
 0x56c   : > { %v1369_v34 = vpop.permute.xlu2 %1368 }
 0x56d   : > { %v1377_v37 = vsel %vm1376_vm6, %v1375_v35, %v1369_v34  ;;  %v2531_v34 = vld [vmem:[#allocation14 + $0x60] sm:$0xf]  ;;  %v2785_v35 = vld [vmem:[#allocation14 + $0x6c] sm:$0xf0] }
 0x583   : > { %v1373_v38 = vpop.permute.xlu1 %1372 }
 0x584   : > { %v1379_v39 = vsel %vm1378_vm7, %v1377_v37, %v1373_v38  ;;  %v2783_v37 = vld [vmem:[#allocation14 + $0x64] sm:$0xf]  ;;  %v2532_v38 = vor.u32 %v2785_v35, %v2531_v34 }
 0x585   : > { %v1380_v40 = vpack.c.bf16 %v1379_v39, %v1379_v39  ;;  %v2533_v39 = vld [vmem:[#allocation14 + $0x70] sm:$0xf0] }
 0x586   : > { %1700 = vmatpush.bf16.msra.mxu3 %v2532_v38  ;;  %v2826_v38 = vld [vmem:[#allocation16 + $0xb8] sm:$0xff] }
 0x587   : > { %1457 = vmatmul.bf16.vlgmr.msra.gmra.mxu2 %v1380_v40  ;;  %v2539_v40 = vld [vmem:[#allocation14 + $0x68] sm:$0xf] }
 0x58a   : > { %1701 = vmatpush.bf16.msra.mxu3 %v2516_v36  ;;  %v2814_v36 = vld [vmem:[#allocation16 + $0x58] sm:$0xff] }
 0x60a   : > { %v1458_v42 = vpop.f32.mrf.mxu2 }
 0x60b   : > { %v1459_v43 = vadd.f32 %v2980_v41, %v1458_v42  ;;  %v2786_v41 = vld [vmem:[#allocation14 + $0x74] sm:$0xf0]  ;;  %v2536_v42 = vor.u32 %v2783_v37, %v2533_v39  ;;  %v2817_v39 = vld [vmem:[#allocation16 + $0x70] sm:$0xff] }
 0x60c   : > { %v2818_v37 = vld [vmem:[#allocation16 + $0x78] sm:$0xff] }
 0x60d   : > { %v3872_v44 = vadd.f32 %v1459_v43, %v3721_v0  ;;  %v2540_v43 = vor.u32 %v2786_v41, %v2539_v40  ;;  %1713 = vmatpush.bf16.msra.mxu0 %v2536_v42  ;;  %v2825_v40 = vld [vmem:[#allocation16 + $0xb0] sm:$0xff]  ;;  %v2834_v41 = vld [vmem:[#allocation16 + $0xf8] sm:$0xff]  ;;  %v2816_v42 = vld [vmem:[#allocation16 + $0x68] sm:$0xff] }
 0x60f   : > { %1463 = vadd.xlane.f32.xlu0 %v3872_v44  ;;  %1726 = vmatpush.bf16.msra.mxu1 %v2540_v43  ;;  %v2824_v43 = vld [vmem:[#allocation16 + $0xa8] sm:$0xff] }
 0x611   : > { %1714 = vmatpush.bf16.msra.mxu0 %v2520_v54  ;;  %v1526_v54 = vld [vmem:[%s4032_s27] sm:$0xf] }
 0x612   : > { %v1460_v45 = vpop.f32.mrf.mxu2  ;;  %v1528_v8 = vperm.slane %v1526_v54, 0  ;;  %v1531_v12 = vperm.slane %v1526_v54, 3 }
 0x613   : > { %v2784_v45 = vld [vmem:[#allocation14 + $0x6c] sm:$0xf]  ;;  %1727 = vmatpush.bf16.msra.mxu1 %v2524_v51  ;;  %v2813_v51 = vld [vmem:[#allocation16 + $0x50] sm:$0xff] }
 0x614   : > { %v2544_v47 = vor.u32 %v2784_v45, %v2541_v46  ;;  %v2809_v45 = vld [vmem:[#allocation16 + $0x30] sm:$0xff] }
 0x615   : > { %1715 = vmatpush.bf16.msra.mxu0 %v2504_v4  ;;  %v2833_v46 = vld [vmem:[#allocation16 + $0xf0] sm:$0xff] }
 0x616   : > { %1739 = vmatpush.bf16.msrb.mxu2 %v2544_v47  ;;  %v2815_v47 = vld [vmem:[#allocation16 + $0x60] sm:$0xff]  ;;  %v2805_v4 = vld [vmem:[#allocation16 + $0x10] sm:$0xff] }
 0x617   : > { %1728 = vmatpush.bf16.msra.mxu1 %v2508_v5  ;;  %v2829_v5 = vld [vmem:[#allocation16 + $0xd0] sm:$0xff] }
 0x619   : > { %1716 = vmatpush.bf16.msra.mxu0 %v2488_v14  ;;  %v2804_v14 = vld [vmem:[#allocation16 + $0x8] sm:$0xff] }
 0x61b   : > { %1729 = vmatpush.bf16.msra.mxu1 %v2492_v19 }
 0x61d   : > { %2109 = vmatpush.bf16.msrb.mxu0 %v2818_v37 }
 0x61f   : > { %2122 = vmatpush.bf16.msrb.mxu1 %v2826_v38 }
 0x621   : > { %2110 = vmatpush.bf16.msrb.mxu0 %v2817_v39 }
 0x623   : > { %2123 = vmatpush.bf16.msrb.mxu1 %v2825_v40 }
 0x625   : > { %2111 = vmatpush.bf16.msrb.mxu0 %v2816_v42 }
 0x627   : > { %2124 = vmatpush.bf16.msrb.mxu1 %v2824_v43 }
 0x629   : > { %2112 = vmatpush.bf16.msrb.mxu0 %v2815_v47 }
 0x62b   : > { %2125 = vmatpush.bf16.msrb.mxu1 %v2823_v48 }
 0x62d   : > { %2113 = vmatpush.bf16.msrb.mxu0 %v2814_v36 }
 0x62f   : > { %2126 = vmatpush.bf16.msrb.mxu1 %v2822_v50 }
 0x631   : > { %2114 = vmatpush.bf16.msrb.mxu0 %v2813_v51 }
 0x635   : > { %2115 = vmatpush.bf16.msrb.mxu0 %v2812_v61 }
 0x682   : > { %v1464_v0 = vpop.xlane.xlu0 %1463 }
 0x683   : > { %v1465_v56 = vmul.f32 %v1464_v0, %v3724_v13  ;;  %v2525_v0 = vld [vmem:[#allocation14 + $0x58] sm:$0xf0] }
 0x685   : > { %v3877_v57 = vsub.f32 %v3872_v44, %v1465_v56  ;;  %v2528_v56 = vor.u32 %v2780_v55, %v2525_v0  ;;  %v2821_v55 = vld [vmem:[#allocation16 + $0x90] sm:$0xff]  ;;  %v1529_v0 = vperm.slane %v1526_v54, 1 }
 0x686   : > { %2127 = vmatpush.bf16.msrb.mxu1 %v2821_v55 }
 0x687   : > { %v1467_v58 = vmul.f32 %v3877_v57, %v3877_v57  ;;  %1740 = vmatpush.bf16.msrb.mxu2 %v2528_v56  ;;  %v2806_v56 = vld [vmem:[#allocation16 + $0x18] sm:$0xff] }
 0x689   : > { %1468 = vadd.xlane.f32.xlu2 %v1467_v58  ;;  %v2499_v58 = vld [vmem:[#allocation14 + $0x20] sm:$0xf] }
 0x68a   : > { %v2500_v63 = vor.u32 %v2777_v59, %v2499_v58  ;;  %v2830_v58 = vld [vmem:[#allocation16 + $0xd8] sm:$0xff]  ;;  %v1530_v59 = vperm.slane %v1526_v54, 2 }
 0x68b   : > { %1741 = vmatpush.bf16.msrb.mxu2 %v2512_v9  ;;  %v2811_v9 = vld [vmem:[#allocation16 + $0x40] sm:$0xff] }
 0x68c   : > { %1702 = vmatpush.bf16.msra.mxu3 %v2500_v63  ;;  %v2820_v63 = vld [vmem:[#allocation16 + $0x88] sm:$0xff]  ;;  %2116 = vmatpush.bf16.msrb.mxu0 %v2811_v9 }
 0x68d   : > { %2128 = vmatpush.bf16.msrb.mxu1 %v2820_v63 }
 0x68f   : > { %1742 = vmatpush.bf16.msrb.mxu2 %v2496_v21 }
 0x690   : > { %1703 = vmatpush.bf16.msra.mxu3 %v2484_v60 }
 0x691   : > { %2129 = vmatpush.bf16.msrb.mxu1 %v2819_v10 }
 0x693   : > { %2135 = vmatpush.bf16.msra.mxu2 %v2834_v41 }
 0x697   : > { %2136 = vmatpush.bf16.msra.mxu2 %v2833_v46 }
 0x69b   : > { %2137 = vmatpush.bf16.msra.mxu2 %v2832_v49 }
 0x69f   : > { %2138 = vmatpush.bf16.msra.mxu2 %v2831_v53 }
 0x6a3   : > { %2139 = vmatpush.bf16.msra.mxu2 %v2830_v58 }
 0x6a7   : > { %2140 = vmatpush.bf16.msra.mxu2 %v2829_v5 }
 0x6ab   : > { %2141 = vmatpush.bf16.msra.mxu2 %v2828_v62 }
 0x6fc   : > { %v1469_v23 = vpop.xlane.xlu2 %1468 }
 0x6fd   : > { %v1470_v16 = vmul.f32 %v1469_v23, %v3724_v13  ;;  %v2982_v13 = vld [vmem:[%s4031_s21] ss:$0 sm:$0xff] }
 0x6ff   : > { %v1471_v22 = vadd.f32 1e-05, %v1470_v16 }
 0x701   : > { %3028 = vrsqrt.f32 %v1471_v22  ;;  %vm1478_vm15 = vweird.f32 %v1471_v22 }
 0x707   : > { %v3029_v24 = vpop.eup %3028 }
 0x708   : > { %v1473_v18 = vmul.f32 %v3029_v24, %v1471_v22  ;;  %vm1479_vm4 = vweird.f32 %v3029_v24 }
 0x709   : > { %vm1480_vm0 = vmor %vm1478_vm15, %vm1479_vm4 }
 0x70a   : > { %v1474_v25 = vmul.f32 %v3029_v24, %v1473_v18  ;;  %v2827_v18 = vld [vmem:[#allocation16 + $0xc0] sm:$0xff] }
 0x70b   : > { %2142 = vmatpush.bf16.msra.mxu2 %v2827_v18 }
 0x70c   : > { %v1475_v26 = vmul.f32 0.5, %v1474_v25 }
 0x70e   : > { %v1476_v28 = vsub.f32 1.5, %v1475_v26 }
 0x710   : > { %v1477_v29 = vmul.f32 %v3029_v24, %v1476_v28 }
 0x712   : > { %v1481_v31 = vsel %vm1480_vm0, %v3029_v24, %v1477_v29  ;;  %v2803_v24 = vld [vmem:[#allocation16] sm:$0xff] }
 0x713   : > { %v1482_v32 = vmul.f32 %v1481_v31, %v3877_v57  ;;  %v2810_v57 = vld [vmem:[#allocation16 + $0x38] sm:$0xff] }
 0x714   : > { %2096 = vmatpush.bf16.msrb.mxu3 %v2810_v57 }
 0x715   : > { %v1487_v33 = vmul.f32 %v2981_v30, %v1482_v32 }
 0x717   : > { %v1492_v34 = vadd.f32 %v2982_v13, %v1487_v33 }
 0x718   : > { %2097 = vmatpush.bf16.msrb.mxu3 %v2809_v45 }
 0x719   : > { %v1493_v35 = vpack.c.bf16 %v1492_v34, %v1492_v34 }
 0x71b   : > { %1704 = vmatmul.bf16.vlgmr.msra.gmra.mxu3 %v1493_v35  ;;  %1717 = vmatmul.bf16.vlgmr.msra.gmra.mxu0 %v1493_v35 }
 0x71c   : > { %1730 = vmatmul.bf16.vlgmr.msra.gmra.mxu1 %v1493_v35  ;;  %1743 = vmatmul.bf16.vlgmr.msrb.gmra.mxu2 %v1493_v35 }
 0x71d   : > { %2098 = vmatpush.bf16.msrb.mxu3 %v2808_v27 }
 0x721   : > { %2099 = vmatpush.bf16.msrb.mxu3 %v2807_v52 }
 0x725   : > { %2100 = vmatpush.bf16.msrb.mxu3 %v2806_v56 }
 0x729   : > { %2101 = vmatpush.bf16.msrb.mxu3 %v2805_v4 }
 0x72d   : > { %2102 = vmatpush.bf16.msrb.mxu3 %v2804_v14 }
 0x731   : > { %2103 = vmatpush.bf16.msrb.mxu3 %v2803_v24 }
 0x798   : > { %v1718_v1 = vpop.f32.mrf.mxu0 }
 0x799   : > { %v3892_v2 = vadd.f32 %v1718_v1, %v1529_v0  ;;  %v1731_v3 = vpop.f32.mrf.mxu1 }
 0x79a   : > { %v3894_v6 = vadd.f32 %v1731_v3, %v1530_v59 }
 0x79b   : > { %v2610_v7 = vmul.f32 -1.702, %v3892_v2 }
 0x79c   : > { %v2611_v11 = vmul.f32 -1.702, %v3894_v6 }
 0x79d   : > { %v1758_v60 = vmul.f32 1.442695, %v2610_v7 }
 0x79e   : > { %v1760_v15 = vmul.f32 1.442695, %v2611_v11  ;;  %v1705_v17 = vpop.f32.mrf.mxu3 }
 0x79f   : > { %3030 = vpow2.f32 %v1758_v60  ;;  %v3898_v19 = vadd.f32 %v1705_v17, %v1528_v8  ;;  %v1744_v20 = vpop.f32.mrf.mxu2 }
 0x7a0   : > { %3032 = vpow2.f32 %v1760_v15  ;;  %v3900_v21 = vadd.f32 %v1744_v20, %v1531_v12  ;;  %v1720_v23 = vpop.f32.mrf.mxu0 }
 0x7a1   : > { %v2609_v16 = vmul.f32 -1.702, %v3898_v19  ;;  %v1733_v22 = vpop.f32.mrf.mxu1 }
 0x7a2   : > { %v2612_v25 = vmul.f32 -1.702, %v3900_v21 }
 0x7a3   : > { %v1756_v26 = vmul.f32 1.442695, %v2609_v16 }
 0x7a4   : > { %v1762_v28 = vmul.f32 1.442695, %v2612_v25 }
 0x7a5   : > { %v3031_v29 = vpop.eup %3030  ;;  %3034 = vpow2.f32 %v1756_v26 }
 0x7a6   : > { %v3033_v30 = vpop.eup %3032  ;;  %v1765_v31 = vadd.f32 1.0, %v3031_v29  ;;  %3036 = vpow2.f32 %v1762_v28  ;;  %v1707_v32 = vpop.f32.mrf.mxu3 }
 0x7a7   : > { %v1766_v13 = vadd.f32 1.0, %v3033_v30  ;;  %v1746_v33 = vpop.f32.mrf.mxu2  ;;  %v2983_v30 = vld [vmem:[%s4033_s20] ss:$0 sm:$0xff] }
 0x7a8   : > { %3038 = vrcp.f32 %v1765_v31  ;;  %v1792_v43 = vand.u32 2147483647, %v1765_v31  ;;  %v1794_v45 = vand.u32 2147483648, %v1765_v31  ;;  %vm1788_vm2 = vweird.f32 %v1765_v31 }
 0x7a9   : > { %3040 = vrcp.f32 %v1766_v13  ;;  %v1807_v47 = vand.u32 2147483647, %v1766_v13  ;;  %v1809_v48 = vand.u32 2147483648, %v1766_v13  ;;  %vm1803_vm3 = vweird.f32 %v1766_v13 }
 0x7aa   : > { %vm1793_vm8 = vcmp.eq.f32.partialorder %v1792_v43, 8.507059e+37  ;;  %v1795_v53 = vor.u32 1.1754944e-38, %v1794_v45 }
 0x7ab   : > { %v3035_v34 = vpop.eup %3034  ;;  %vm1808_vm10 = vcmp.eq.f32.partialorder %v1807_v47, 8.507059e+37  ;;  %v1810_v55 = vor.u32 1.1754944e-38, %v1809_v48 }
 0x7ac   : > { %v3037_v35 = vpop.eup %3036  ;;  %v1764_v37 = vadd.f32 1.0, %v3035_v34 }
 0x7ad   : > { %v3904_v38 = vadd.f32 1.0, %v3037_v35 }
 0x7ae   : > { %v3039_v39 = vpop.eup %3038  ;;  %3042 = vrcp.f32 %v1764_v37  ;;  %v1777_v59 = vand.u32 2147483647, %v1764_v37  ;;  %v1779_v61 = vand.u32 2147483648, %v1764_v37  ;;  %vm1773_vm14 = vweird.f32 %v1764_v37 }
 0x7af   : > { %v3041_v40 = vpop.eup %3040  ;;  %v1784_v57 = vmul.f32 %v3039_v39, %v1765_v31  ;;  %3044 = vrcp.f32 %v3904_v38  ;;  %vm1789_vm1 = vweird.f32 %v3039_v39  ;;  %v1824_v4 = vand.u32 2147483648, %v3904_v38 }
 0x7b0   : > { %v1799_v41 = vmul.f32 %v3041_v40, %v1766_v13  ;;  %vm1804_vm5 = vweird.f32 %v3041_v40  ;;  %vm1790_vm9 = vmor %vm1788_vm2, %vm1789_vm1  ;;  %v1822_v11 = vand.u32 2147483647, %v3904_v38  ;;  %v1780_v62 = vor.u32 1.1754944e-38, %v1779_v61 }
 0x7b1   : > { %v1785_v42 = vsub.f32 1.0, %v1784_v57  ;;  %vm1805_vm11 = vmor %vm1803_vm3, %vm1804_vm5  ;;  %vm1818_vm7 = vweird.f32 %v3904_v38  ;;  %vm1778_vm4 = vcmp.eq.f32.partialorder %v1777_v59, 8.507059e+37 }
 0x7b2   : > { %v1800_v46 = vsub.f32 1.0, %v1799_v41  ;;  %vm1823_vm0 = vcmp.eq.f32.partialorder %v1822_v11, 8.507059e+37 }
 0x7b3   : > { %v1786_v27 = vmul.f32 %v3039_v39, %v1785_v42 }
 0x7b4   : > { %v3043_v49 = vpop.eup %3042  ;;  %v1801_v36 = vmul.f32 %v3041_v40, %v1800_v46 }
 0x7b5   : > { %v3045_v50 = vpop.eup %3044  ;;  %v1787_v52 = vadd.f32 %v3039_v39, %v1786_v27  ;;  %v1769_v54 = vmul.f32 %v3043_v49, %v1764_v37  ;;  %vm1774_vm12 = vweird.f32 %v3043_v49 }
 0x7b6   : > { %v1802_v51 = vadd.f32 %v3041_v40, %v1801_v36  ;;  %v1814_v0 = vmul.f32 %v3045_v50, %v3904_v38  ;;  %vm1819_vm13 = vweird.f32 %v3045_v50  ;;  %vm1775_vm6 = vmor %vm1773_vm14, %vm1774_vm12 }
 0x7b7   : > { %v1791_v56 = vsel %vm1790_vm9, %v3039_v39, %v1787_v52  ;;  %v1770_v58 = vsub.f32 1.0, %v1769_v54  ;;  %vm1820_vm15 = vmor %vm1818_vm7, %vm1819_vm13 }
 0x7b8   : > { %v1796_v63 = vsel %vm1793_vm8, %v1795_v53, %v1791_v56  ;;  %v1806_v1 = vsel %vm1805_vm11, %v3041_v40, %v1802_v51  ;;  %v1815_v3 = vsub.f32 1.0, %v1814_v0 }
 0x7b9   : > { %v1829_v5 = vmul.f32 %v1796_v63, %v3892_v2  ;;  %v1811_v7 = vsel %vm1808_vm10, %v1810_v55, %v1806_v1  ;;  %v1771_v8 = vmul.f32 %v3043_v49, %v1770_v58  ;;  %v1825_v2 = vor.u32 1.1754944e-38, %v1824_v4 }
 0x7ba   : > { %v1830_v9 = vmul.f32 %v1811_v7, %v3894_v6  ;;  %v1816_v10 = vmul.f32 %v3045_v50, %v1815_v3 }
 0x7bb   : > { %v1833_v12 = vpack.c.bf16 %v1829_v5, %v1829_v5  ;;  %v1772_v60 = vadd.f32 %v3043_v49, %v1771_v8 }
 0x7bc   : > { %v1834_v14 = vpack.c.bf16 %v1830_v9, %v1830_v9  ;;  %v1817_v15 = vadd.f32 %v3045_v50, %v1816_v10 }
 0x7bd   : > { %v1776_v17 = vsel %vm1775_vm6, %v3043_v49, %v1772_v60  ;;  %2117 = vmatmul.bf16.vlgmr.msrb.gmra.mxu0 %v1833_v12 }
 0x7be   : > { %v1781_v20 = vsel %vm1778_vm4, %v1780_v62, %v1776_v17  ;;  %v1821_v6 = vsel %vm1820_vm15, %v3045_v50, %v1817_v15  ;;  %2130 = vmatmul.bf16.vlgmr.msrb.gmra.mxu1 %v1834_v14 }
 0x7bf   : > { %v1828_v23 = vmul.f32 %v1781_v20, %v3898_v19  ;;  %v1826_v16 = vsel %vm1823_vm0, %v1825_v2, %v1821_v6 }
 0x7c0   : > { %v1831_v22 = vmul.f32 %v1826_v16, %v3900_v21 }
 0x7c1   : > { %v1832_v24 = vpack.c.bf16 %v1828_v23, %v1828_v23 }
 0x7c2   : > { %v1835_v18 = vpack.c.bf16 %v1831_v22, %v1831_v22 }
 0x7c3   : > { %2104 = vmatmul.bf16.vlgmr.msrb.gmra.mxu3 %v1832_v24 }
 0x7c4   : > { %2143 = vmatmul.bf16.vlgmr.msra.gmra.mxu2 %v1835_v18 }
 0x83a   : > { %v2118_v25 = vpop.f32.mrf.mxu0 }
 0x83b   : > { %v2131_v26 = vpop.f32.mrf.mxu1 }
 0x842   : > { %v2120_v28 = vpop.f32.mrf.mxu0 }
 0x843   : > { %v2133_v29 = vpop.f32.mrf.mxu1 }
 0x846   : > { %v2105_v31 = vpop.f32.mrf.mxu3 }
 0x847   : > { %v2106_v19 = vadd.f32 %v2983_v30, %v2105_v31  ;;  %v2144_v32 = vpop.f32.mrf.mxu2 }
 0x849   : > { %v2119_v13 = vadd.f32 %v2118_v25, %v2106_v19 }
 0x84b   : > { %v2132_v21 = vadd.f32 %v2131_v26, %v2119_v13 }
 0x84d   : > { %v2145_v33 = vadd.f32 %v2144_v32, %v2132_v21 }
 0x84e   : > { %v2107_v34 = vpop.f32.mrf.mxu3 }
 0x84f   : > { %v2148_v35 = vadd.f32 %v2145_v33, %v3872_v44  ;;  %v2146_v37 = vpop.f32.mrf.mxu2 }
 0x851   : > { %2149 = vst [vmem:[%s725_s30] sm:$0xff] %v2148_v35 }
 0x852   : > { %3343 = shalt.err (!%p3340_p8)
}
 0x853   : > { %2865 = dma.vmem_to_hbm [thread:$0]  (%p3578_p0), %s2164_s1, 128, %s2166_s11, %s2151_s28  }
 0x854 PF: > { %s4036_s6 = sld [smem:[#allocation24_spill]]  ;;  %p4038_p7 = scmp.ge.s32.totalorder %s3398_s24, 2 }
 0x856   : > { %p2897_p12 = pnand %p4038_p7, %p3582_p5 }
 0x858   : > { %p2898_p2 = pneg %p2897_p12 }
 0x85a   : > { %s2177_s18 = sand.u32 1, %s4036_s6  }
 0x85b   : > { %s2178_s27 = scalar_lea.sflag [#allocation4], %s2177_s18 }
 0x85c   : > { %3381 = dma.done.wait (%p2898_p2), %s2178_s27, 128  }
 0x85d   : > { %3383 = vsyncadd (%p2898_p2), %s2178_s27, 4294967168  ;;  %s4039_s24 = sld [smem:[#allocation26_spill]]  ;;  %s4042_s21 = smov %s3390_s22 }
 0x85e   : > { %s4040_s7 = sld [smem:[#allocation25_spill]] }
 0x85f   : > { %s4041_s23 = sld [smem:[#allocation27_spill]] }
 0x863   : > { %p35_p1 = scmp.ge.s32.totalorder %s4039_s24, 4  }
 0x864   : > { %s4043_s22 = smov %s4040_s7 }
 0x865   :  { %37 = sbr.rel (!%p35_p1) target bundleno = 24 (0x18), region = 180 }
 0x86a   :  { %2184 = vsyncpa [#allocation3], 1 }
 0x86b   :  { %2186 = vsyncpa [#allocation3 + $0x1], 1 }
 0x86c   :  { %2187 = vsyncpa [#allocation6], 1 }
 0x86d   :  { %2189 = vsyncpa [#allocation6 + $0x1], 1 }
 0x86e   :  { %2190 = vsyncpa [#allocation9], 1 }
 0x86f   :  { %2191 = vsyncpa [#allocation12], 1 }
 0x870   :  { %2192 = vsyncpa [#allocation15], 1 }
 0x871   :  { %2193 = vsyncpa [#allocation4], 1 }
 0x872   :  { %2195 = vsyncpa [#allocation4 + $0x1], 1 }

// kernel: tpu_custom_call.1
= control target key start
LH: loop header
LB: loop body
LE: loop exit
PB: predicated region body
PF: predicated region fallthrough
CT: control target
= control target key end

     0   :  { %s3954_s0 = inlined_call_operand.hbm [shape: f32[2,8,128], index: 0, kind: input, shape index: {}]   ;;  %s3955_s1 = inlined_call_operand.hbm [shape: bf16[2,4,8,32], index: 1, kind: input, shape index: {}]   ;;  %s3956_s2 = inlined_call_operand.hbm [shape: bf16[2,4,8,32], index: 2, kind: input, shape index: {}]   ;;  %s3957_s3 = inlined_call_operand.vmem [shape: f32[2,1,8], index: 3, kind: input, shape index: {}]   ;;  %s3958_s4 = inlined_call_operand.vmem [shape: f32[1,128], index: 4, kind: input, shape index: {}]   ;;  %s3959_s5 = inlined_call_operand.hbm [shape: f32[1,128], index: 5, kind: input, shape index: {}]   ;;  %s3960_s6 = inlined_call_operand.hbm [shape: bf16[128,256], index: 6, kind: input, shape index: {}]   ;;  %s3961_s7 = inlined_call_operand.hbm [shape: f32[1,256], index: 7, kind: input, shape index: {}]   ;;  %s3962_s8 = inlined_call_operand.hbm [shape: bf16[128,128], index: 8, kind: input, shape index: {}]   ;;  %s3963_s9 = inlined_call_operand.vmem [shape: f32[1,128], index: 9, kind: input, shape index: {}]   ;;  %s3964_s10 = inlined_call_operand.vmem [shape: f32[1,128], index: 10, kind: input, shape index: {}]   ;;  %s3965_s11 = inlined_call_operand.vmem [shape: f32[1,128], index: 11, kind: input, shape index: {}]   ;;  %s3966_s12 = inlined_call_operand.hbm [shape: bf16[128,512], index: 12, kind: input, shape index: {}]   ;;  %s3967_s13 = inlined_call_operand.vmem [shape: f32[1,512], index: 13, kind: input, shape index: {}]   ;;  %s3968_s14 = inlined_call_operand.hbm [shape: bf16[512,128], index: 14, kind: input, shape index: {}]   ;;  %s3969_s15 = inlined_call_operand.vmem [shape: f32[1,128], index: 15, kind: input, shape index: {}]   ;;  %s3970_s16 = inlined_call_operand.hbm [shape: f32[2,8,128], index: 16, kind: output, shape index: {}]  }
   0x1   :  { %3982 = sst [smem:[#allocation30_spill]] %s3954_s0 }
   0x2   :  { %3983 = sst [smem:[#allocation31_spill]] %s3955_s1 }
   0x3   :  { %3984 = sst [smem:[#allocation32_spill]] %s3959_s5 }
   0x4   :  { %3985 = sst [smem:[#allocation33_spill]] %s3960_s6 }
   0x5   :  { %3986 = sst [smem:[#allocation34_spill]] %s3961_s7 }
   0x6   :  { %3987 = sst [smem:[#allocation35_spill]] %s3962_s8 }
   0x7   :  { %3988 = sst [smem:[#allocation36_spill]] %s3963_s9 }
   0x8   :  { %3989 = sst [smem:[#allocation37_spill]] %s3964_s10 }
   0x9   :  { %3990 = sst [smem:[#allocation38_spill]] %s3965_s11 }
   0xa   :  { %3991 = sst [smem:[#allocation39_spill]] %s3966_s12 }
   0xb   :  { %3992 = sst [smem:[#allocation40_spill]] %s3967_s13 }
   0xc   :  { %3993 = sst [smem:[#allocation41_spill]] %s3969_s15 }
   0xd   :  { %3994 = sst [smem:[#allocation42_spill]] %s3970_s16 }
   0xe   :  { %21 = vsyncpa [#allocation3], 0 }
   0xf   :  { %23 = vsyncpa [#allocation3 + $0x1], 0 }
  0x10   :  { %24 = vsyncpa [#allocation6], 0 }
  0x11   :  { %26 = vsyncpa [#allocation6 + $0x1], 0 }
  0x12   :  { %27 = vsyncpa [#allocation9], 0 }
  0x13   :  { %28 = vsyncpa [#allocation12], 0 }
  0x14   :  { %29 = vsyncpa [#allocation15], 0 }
  0x15   :  { %30 = vsyncpa [#allocation4], 0 }
  0x16   :  { %32 = vsyncpa [#allocation4 + $0x1], 0  ;;  %s3502_s21 = smov 0   ;;  %s3504_s22 = smov 0  }
  0x17   :  { %s3506_s23 = smov 0   ;;  %s3508_s24 = smov 0  }
  0x18 LB: > { %3995 = sst [smem:[#allocation24_spill]] %s3386_s21  ;;  %s3526_s28 = sadd.s32 4294967295, %s3398_s24   ;;  %s3398_s24 = sphi %s3508_s24, %s4039_s24   ;;  %s3394_s23 = sphi %s3506_s23, %s4041_s23   ;;  %s3390_s22 = sphi %s3504_s22, %s4043_s22   ;;  %s3386_s21 = sphi %s3502_s21, %s4042_s21  }
  0x19   : > { %3996 = sst [smem:[#allocation25_spill]] %s3394_s23  ;;  %p2346_p0 = scmp.ge.s32.totalorder %s3398_s24, 1 }
  0x1a   : > { %s3997_s5 = sld [smem:[#allocation32_spill]]  ;;  %p3981_p1 = scmp.eq.s32.totalorder %s3526_s28, 0 }
  0x1b   : > { %p425_p2 = scmp.lt.s32.totalorder %s3398_s24, 3  ;;  %s3400_s30 = smov [#allocation8]  }
  0x1c   : > { %s442_s0 = sshll.u32 %s3400_s30, 4  ;;  %s3999_s7 = sld [smem:[#allocation34_spill]]  ;;  %s443_s0 = int_to_ptr.vmem [resolvable:$true] %s442_s0 }
  0x1d   : > { %p3531_p3 = pnand %p2346_p0, %p425_p2  ;;  %s3401_s25 = smov [#allocation11]  }
  0x1e   : > { %s468_s26 = sshll.u32 %s3401_s25, 4  ;;  %s4001_s12 = sld [smem:[#allocation39_spill]]  ;;  %s469_s26 = int_to_ptr.vmem [resolvable:$true] %s468_s26 }
  0x1f   : > { %p2867_p5 = pneg %p3531_p3  ;;  %s3403_s25 = smov 256  }
  0x20   : > { %s440_s27 = sshll.u32 %s3997_s5, 4  ;;  %s3402_s5 = smov [#allocation14]   ;;  %s441_s27 = int_to_ptr.hbm [resolvable:$true] %s440_s27 }
  0x21   : > { %p3543_p6 = pnand %p2867_p5, %p3981_p1  ;;  %s3404_s16 = smov 16  }
  0x22   : > { %s466_s19 = sshll.u32 %s3999_s7, 4  ;;  %s502_s7 = sshll.u32 %s3402_s5, 4  ;;  %s467_s19 = int_to_ptr.hbm [resolvable:$true] %s466_s19  ;;  %s503_s7 = int_to_ptr.vmem [resolvable:$true] %s502_s7 }
  0x23   : > { %2870 = dma.hbm_to_vmem [thread:$0]  (!%p3543_p6), %s441_s27, 16, %s443_s0, [#allocation9]  }
  0x24   : > { %s500_s18 = sshll.u32 %s4001_s12, 4  ;;  %s2345_s30 = sadd.s32 4294967294, %s3398_s24   ;;  %s501_s18 = int_to_ptr.hbm [resolvable:$true] %s500_s18 }
  0x25   : > { %2876 = dma.hbm_to_vmem [thread:$0]  (!%p3543_p6), %s467_s19, 32, %s469_s26, [#allocation12]  }
  0x26   : > { %2882 = dma.hbm_to_vmem [thread:$0]  (!%p3543_p6), %s501_s18, 4096, %s503_s7, [#allocation15], %s3403_s25, %s3403_s25, %s3404_s16  }
  0x27   : > { %s3558_s17 = sadd.s32 1, %s3398_s24   ;;  %s45_s27 = sadd.s32 1, %s3394_s23 }
  0x28   : > { %4002 = sst [smem:[#allocation26_spill]] %s3558_s17  ;;  %s42_s0 = ssub.s32 %s3398_s24, %s3558_s17 }
  0x29   : > { %p52_p7 = scmp.ne.s32.totalorder %s3394_s23, %s3390_s22  ;;  %p43_p8 = scmp.eq.s32.totalorder %s42_s0, 0 }
  0x2a   : > { %p53_p9 = scmp.eq.s32.totalorder %s3398_s24, 0  ;;  %p58_p10 = scmp.ne.s32.totalorder %s3390_s22, %s3386_s21 }
  0x2b   : > { %p412_p11 = scmp.eq.s32.totalorder %s3526_s28, 1  ;;  %p418_p2 = scmp.eq.s32.totalorder %s2345_s30, 1 }
  0x2c   : > { %s3570_s5 = scalar_select %p43_p8, %s3394_s23, %s45_s27  }
  0x2d   : > { %p54_p12 = por %p53_p9, %p52_p7  ;;  %p3574_p13 = por %p3981_p1, %p58_p10 }
  0x2e   : > { %4003 = sst [smem:[#allocation27_spill]] %s3570_s5  ;;  %p3578_p0 = por %p412_p11, %p52_p7 }
  0x2f   : > { %p3582_p5 = por %p418_p2, %p58_p10  ;;  %p2906_p4 = scmp.lt.s32.totalorder %s3398_s24, 2 }
  0x30   : > { %s4005_s16 = scalar_select %p3578_p0, 1, 0 }
  0x31   : > { %s4007_s19 = scalar_select %p3582_p5, 1, 0 }
  0x32   : > { %4006 = sst [smem:[#allocation28_spill]] %s4005_s16  ;;  %s3588_s26 = sand.u32 1, %s3394_s23  }
  0x33   : > { %4008 = sst [smem:[#allocation29_spill]] %s4007_s19  ;;  %s555_s18 = sand.u32 1, %s3398_s24  }
  0x34   : > { %p3591_p8 = pnand %p2906_p4, %p54_p12  ;;  %s3980_s27 = sshll.u32 %s3588_s26, 4 }
  0x35   : > { %s2745_s0 = sshll.u32 %s3398_s24, 4  ;;  %s4010_s1 = sld [smem:[#allocation31_spill]] }
  0x36   : > { %s559_s17 = scalar_lea.vmem [#allocation5], %s3980_s27  ;;  %s3602_s21 = scalar_lea.sflag [#allocation6], %s555_s18 }
  0x37   : > { %s567_s19 = sshll.u32 %s559_s17, 4  ;;  %p3140_p7 = pneg %p3591_p8  ;;  %s568_s19 = int_to_ptr.vmem [resolvable:$true] %s567_s19 }
  0x3b   : > { %s564_s5 = scalar_lea.hbm %s4010_s1, %s2745_s0  ;;  %s3143_s27 = scalar_lea.hbm %s4010_s1, 32 }
  0x3c   : > { %s565_s23 = sshll.u32 %s564_s5, 4  ;;  %s566_s23 = int_to_ptr.hbm [resolvable:$true] %s565_s23 }
  0x3d   : > { %s3136_s16 = sshra.s32 %s566_s23, 4  ;;  %s3137_s16 = int_to_ptr.hbm [resolvable:$true] %s3136_s16 }
  0x3e   : > { %s3138_s15 = scalar_lea.hbm %s3137_s16, 16  ;;  %p3144_p11 = scmp.lt.s32.totalorder %s3137_s16, %s4010_s1 }
  0x3f   : > { %p3139_p4 = scmp.ne.s32.totalorder %s3137_s16, %s3138_s15  ;;  %p3145_p12 = scmp.lt.s32.totalorder %s3143_s27, %s3138_s15 }
  0x41   : > { %p3141_p9 = pnand %p3140_p7, %p3139_p4  ;;  %p3146_p2 = por %p3145_p12, %p3144_p11 }
  0x43   : > { %p3142_p10 = pneg %p3141_p9 }
  0x45   : > { %p3147_p1 = pnand %p3146_p2, %p3142_p10 }
  0x47   : > { %3150 = shalt.err (!%p3147_p1)
}
  0x48   : > { %s3405_s18 = smov 64   ;;  %s3406_s13 = smov 4  }
  0x49   : > { %2892 = dma.hbm_to_vmem [thread:$0]  (!%p3591_p8), %s566_s23, 256, %s568_s19, %s3602_s21, %s3405_s18, %s3405_s18, %s3406_s13  }
  0x4a   : > { %s586_s17 = scalar_lea.hbm %s3956_s2, %s2745_s0  ;;  %s4011_s16 = sshll.u32 %s3588_s26, 4 }
  0x4b   : > { %s581_s15 = scalar_lea.vmem [#allocation7], %s4011_s16  ;;  %s587_s5 = sshll.u32 %s586_s17, 4  ;;  %s3628_s5 = int_to_ptr.hbm [resolvable:$true] %s587_s5 }
  0x4c   : > { %s589_s27 = sshll.u32 %s581_s15, 4  ;;  %s4012_s6 = sld [smem:[#allocation33_spill]]  ;;  %s3626_s27 = int_to_ptr.vmem [resolvable:$true] %s589_s27 }
  0x4d   : > { %s3407_s9 = smov [#allocation10]   ;;  %s3408_s19 = smov 128  }
  0x4e   : > { %s453_s23 = sshll.u32 %s3407_s9, 4  ;;  %s3409_s0 = smov 8   ;;  %s454_s23 = int_to_ptr.vmem [resolvable:$true] %s453_s23 }
  0x4f   : > { %s4013_s8 = sld [smem:[#allocation35_spill]]  ;;  %s3410_s16 = smov [#allocation13]  }
  0x50   : > { %s479_s15 = sshll.u32 %s3410_s16, 4  ;;  %s517_s9 = sshll.u32 %s3968_s14, 4  ;;  %s480_s15 = int_to_ptr.vmem [resolvable:$true] %s479_s15  ;;  %s518_s9 = int_to_ptr.hbm [resolvable:$true] %s517_s9 }
  0x51   : > { %s4014_s16 = sld [smem:[#allocation30_spill]] }
  0x52   : > { %s451_s10 = sshll.u32 %s4012_s6, 4  ;;  %s452_s10 = int_to_ptr.hbm [resolvable:$true] %s451_s10 }
  0x53   : > { %2873 = dma.hbm_to_vmem [thread:$0]  (!%p3543_p6), %s452_s10, 2048, %s454_s23, [#allocation9], %s3408_s19, %s3408_s19, %s3409_s0  }
  0x54   : > { %s3411_s10 = smov [#allocation16]   ;;  %s2354_s19 = sshll.u32 %s3588_s26, 3 }
  0x55   : > { %s477_s17 = sshll.u32 %s4013_s8, 4  ;;  %s519_s23 = sshll.u32 %s3411_s10, 4  ;;  %s478_s17 = int_to_ptr.hbm [resolvable:$true] %s477_s17  ;;  %s520_s23 = int_to_ptr.vmem [resolvable:$true] %s519_s23 }
  0x56   : > { %2879 = dma.hbm_to_vmem [thread:$0]  (!%p3543_p6), %s478_s17, 1024, %s480_s15, [#allocation12], %s3405_s18, %s3405_s18, %s3406_s13  }
  0x57   : > { %2885 = dma.hbm_to_vmem [thread:$0]  (!%p3543_p6), %s518_s9, 4096, %s520_s23, [#allocation15], %s3405_s18, %s3405_s18, %s3406_s13  }
  0x58   : > { %s2355_s0 = sshll.u32 %s3398_s24, 3  ;;  %s540_s11 = scalar_lea.vmem [#allocation2], %s2354_s19 }
  0x59   : > { %s544_s1 = scalar_lea.hbm %s4014_s16, %s2355_s0  ;;  %s548_s6 = sshll.u32 %s540_s11, 4  ;;  %s549_s6 = int_to_ptr.vmem [resolvable:$true] %s548_s6 }
  0x5a   : > { %s546_s8 = sshll.u32 %s544_s1, 4  ;;  %s537_s17 = scalar_lea.sflag [#allocation3], %s3588_s26  ;;  %s547_s8 = int_to_ptr.hbm [resolvable:$true] %s546_s8 }
  0x5b   : > { %s3256_s15 = sshra.s32 %s547_s8, 4  ;;  %s3263_s23 = scalar_lea.hbm %s4014_s16, 16  ;;  %s3257_s15 = int_to_ptr.hbm [resolvable:$true] %s3256_s15 }
  0x5c   : > { %s3258_s10 = scalar_lea.hbm %s3257_s15, 8  ;;  %p3264_p6 = scmp.lt.s32.totalorder %s3257_s15, %s4014_s16 }
  0x5d   : > { %p3259_p1 = scmp.ne.s32.totalorder %s3257_s15, %s3258_s10  ;;  %p3265_p10 = scmp.lt.s32.totalorder %s3263_s23, %s3258_s10 }
  0x5f   : > { %p3261_p4 = pnand %p3259_p1, %p3140_p7  ;;  %p3266_p11 = por %p3265_p10, %p3264_p6 }
  0x61   : > { %p3262_p9 = pneg %p3261_p4 }
  0x63   : > { %p3267_p12 = pnand %p3266_p11, %p3262_p9 }
  0x65   : > { %3270 = shalt.err (!%p3267_p12)
}
  0x66   : > { %2889 = dma.hbm_to_vmem [thread:$0]  (!%p3591_p8), %s547_s8, 128, %s549_s6, %s537_s17  }
  0x67   : > { %s3286_s26 = sshra.s32 %s3628_s5, 4  ;;  %s3293_s11 = scalar_lea.hbm %s3956_s2, 32  ;;  %s3287_s26 = int_to_ptr.hbm [resolvable:$true] %s3286_s26 }
  0x68   : > { %s3288_s19 = scalar_lea.hbm %s3287_s26, 16  ;;  %p3294_p9 = scmp.lt.s32.totalorder %s3287_s26, %s3956_s2 }
  0x69   : > { %p3289_p2 = scmp.ne.s32.totalorder %s3287_s26, %s3288_s19  ;;  %p3295_p6 = scmp.lt.s32.totalorder %s3293_s11, %s3288_s19 }
  0x6b   : > { %p3291_p1 = pnand %p3289_p2, %p3140_p7  ;;  %p3296_p10 = por %p3295_p6, %p3294_p9 }
  0x6d   : > { %p3292_p4 = pneg %p3291_p1 }
  0x6f   : > { %p3297_p11 = pnand %p3296_p10, %p3292_p4 }
  0x71   : > { %3300 = shalt.err (!%p3297_p11)
}
  0x72   : > { %2895 = dma.hbm_to_vmem [thread:$0]  (!%p3591_p8), %s3628_s5, 256, %s3626_s27, %s3602_s21, %s3405_s18, %s3405_s18, %s3406_s13  }
  0x73   : > { %607 = sbr.rel (%p3531_p3) target bundleno = 2132 (0x854), region = 84  ;;  %s3689_s6 = sand.u32 (!%p3531_p3), 1, %s3390_s22  }
  0x74   : > { %s2363_s8 = sshll.u32 (!%p3531_p3), %s3689_s6, 3  ;;  %s610_s17 = scalar_lea.sflag (!%p3531_p3), [#allocation3], %s3689_s6 }
  0x75   : > { %s613_s25 = scalar_lea.vmem (!%p3531_p3), [#allocation2], %s2363_s8 }
  0x78   : > { %3361 = dma.done.wait (%p3574_p13), %s610_s17, 128  }
  0x79   : > { %3363 = vsyncadd (%p3574_p13), %s610_s17, 4294967168  ;;  %s619_s13 = sand.u32 1, %s3526_s28   ;;  %s2364_s21 = sshll.u32 %s3689_s6, 4 }
  0x7a   : > { %s620_s29 = scalar_lea.sflag [#allocation6], %s619_s13  ;;  %s3701_s18 = scalar_lea.vmem [#allocation5], %s2364_s21 }
  0x7b   : > { %3365 = dma.done.wait (%p3574_p13), %s620_s29, 512  }
  0x7c   : > { %3367 = vsyncadd (%p3574_p13), %s620_s29, 4294966784  ;;  %s3707_s27 = scalar_lea.vmem [#allocation7], %s2364_s21  ;;  %p4015_p3 = scmp.eq.s32.totalorder %s3526_s28, 0 }
  0x7e   : > { %3369 = dma.done.wait (%p4015_p3), [#allocation9], 2064   ;;  %p4016_p8 = pmov %p4015_p3 }
  0x7f   : > { %p4017_p7 = pmov %p4015_p3 }
  0x80   : > { %3371 = vsyncadd (%p4016_p8), [#allocation9], 4294965232 }
  0x81   : > { %3373 = dma.done.wait (%p4017_p7), [#allocation12], 1056   ;;  %p4018_p12 = pmov %p4015_p3 }
  0x82   : > { %p4019_p2 = pmov %p4015_p3 }
  0x83   : > { %3375 = vsyncadd (%p4018_p12), [#allocation12], 4294966240 }
  0x84   : > { %3377 = dma.done.wait (%p4019_p2), [#allocation15], 8192   ;;  %p4020_p1 = pmov %p4019_p2 }
  0x85   : > { %v3721_v0 = vld [vmem:[%s613_s25] sm:$0xff]  ;;  %v3412_v1 = vmov 128.0   ;;  %v2423_v18 = vld [vmem:[#allocation10 + $0x60] sm:$0xf]  ;;  %v2760_v19 = vld [vmem:[#allocation10 + $0x64] sm:$0xf0] }
  0x86   : > { %3379 = vsyncadd (%p4020_p1), [#allocation15], 4294959104  ;;  %741 = vadd.xlane.f32.xlu0 %v3721_v0  ;;  %2984 = vrcp.f32 %v3412_v1  ;;  %v2431_v2 = vld [vmem:[#allocation10 + $0x70] sm:$0xf]  ;;  %v2762_v3 = vld [vmem:[#allocation10 + $0x74] sm:$0xf0]  ;;  %v2424_v21 = vor.u32 %v2760_v19, %v2423_v18 }
  0x87   : > { %v2761_v4 = vld [vmem:[#allocation10 + $0x74] sm:$0xf]  ;;  %v2432_v5 = vor.u32 %v2762_v3, %v2431_v2  ;;  %v2433_v6 = vld [vmem:[#allocation10 + $0x78] sm:$0xf0]  ;;  %v2759_v20 = vld [vmem:[#allocation10 + $0x64] sm:$0xf] }
  0x88   : > { %v2436_v7 = vor.u32 %v2761_v4, %v2433_v6  ;;  %v2425_v22 = vld [vmem:[#allocation10 + $0x68] sm:$0xf0]  ;;  %v2415_v24 = vld [vmem:[#allocation10 + $0x50] sm:$0xf]  ;;  %v2758_v25 = vld [vmem:[#allocation10 + $0x54] sm:$0xf0] }
  0x89   : > { %881 = vmatpush.bf16.msra.mxu0 %v2432_v5  ;;  %v2428_v23 = vor.u32 %v2759_v20, %v2425_v22  ;;  %v2757_v26 = vld [vmem:[#allocation10 + $0x54] sm:$0xf]  ;;  %v2416_v27 = vor.u32 %v2758_v25, %v2415_v24  ;;  %v2417_v28 = vld [vmem:[#allocation10 + $0x58] sm:$0xf0]  ;;  %v2407_v30 = vld [vmem:[#allocation10 + $0x40] sm:$0xf] }
  0x8a   : > { %894 = vmatpush.bf16.msra.mxu1 %v2436_v7  ;;  %v2420_v29 = vor.u32 %v2757_v26, %v2417_v28  ;;  %v2756_v31 = vld [vmem:[#allocation10 + $0x44] sm:$0xf0]  ;;  %v2755_v32 = vld [vmem:[#allocation10 + $0x44] sm:$0xf]  ;;  %v2409_v34 = vld [vmem:[#allocation10 + $0x48] sm:$0xf0] }
  0x8b   : > { %v2408_v33 = vor.u32 %v2756_v31, %v2407_v30  ;;  %v2412_v35 = vor.u32 %v2755_v32, %v2409_v34  ;;  %v2399_v36 = vld [vmem:[#allocation10 + $0x30] sm:$0xf]  ;;  %v2754_v37 = vld [vmem:[#allocation10 + $0x34] sm:$0xf0]  ;;  %v2753_v38 = vld [vmem:[#allocation10 + $0x34] sm:$0xf] }
  0x8c   : > { %v2985_v8 = vpop.eup %2984  ;;  %v2400_v39 = vor.u32 %v2754_v37, %v2399_v36  ;;  %v2401_v40 = vld [vmem:[#allocation10 + $0x38] sm:$0xf0]  ;;  %v2391_v42 = vld [vmem:[#allocation10 + $0x20] sm:$0xf]  ;;  %v2752_v43 = vld [vmem:[#allocation10 + $0x24] sm:$0xf0] }
  0x8d   : > { %v744_v9 = vmul.f32 128.0, %v2985_v8  ;;  %vm748_vm0 = vweird.f32 %v2985_v8  ;;  %882 = vmatpush.bf16.msra.mxu0 %v2424_v21  ;;  %v2404_v41 = vor.u32 %v2753_v38, %v2401_v40  ;;  %v2751_v44 = vld [vmem:[#allocation10 + $0x24] sm:$0xf]  ;;  %v2392_v45 = vor.u32 %v2752_v43, %v2391_v42  ;;  %v2393_v46 = vld [vmem:[#allocation10 + $0x28] sm:$0xf0]  ;;  %s3413_s20 = smov 64  }
  0x8e   : > { %895 = vmatpush.bf16.msra.mxu1 %v2428_v23  ;;  %v2396_v47 = vor.u32 %v2751_v44, %v2393_v46  ;;  %v2383_v48 = vld [vmem:[#allocation10 + $0x10] sm:$0xf]  ;;  %v2750_v49 = vld [vmem:[#allocation10 + $0x14] sm:$0xf0]  ;;  %v2749_v50 = vld [vmem:[#allocation10 + $0x14] sm:$0xf] }
  0x8f   : > { %v745_v10 = vsub.f32 1.0, %v744_v9  ;;  %v2384_v51 = vor.u32 %v2750_v49, %v2383_v48  ;;  %v2385_v52 = vld [vmem:[#allocation10 + $0x18] sm:$0xf0]  ;;  %v2375_v53 = vld [vmem:[#allocation10] sm:$0xf]  ;;  %vm948_vm4 = vcmask 261120  }
  0x90   : > { %v2748_v54 = vld [vmem:[#allocation10 + $0x4] sm:$0xf0]  ;;  %v2388_v55 = vor.u32 %v2749_v50, %v2385_v52  ;;  %v2747_v56 = vld [vmem:[#allocation10 + $0x4] sm:$0xf]  ;;  %v2377_v57 = vld [vmem:[#allocation10 + $0x8] sm:$0xf0] }
  0x91   : > { %v746_v11 = vmul.f32 %v2985_v8, %v745_v10  ;;  %883 = vmatpush.bf16.msra.mxu0 %v2416_v27  ;;  %v2376_v58 = vor.u32 %v2748_v54, %v2375_v53  ;;  %v2380_v59 = vor.u32 %v2747_v56, %v2377_v57  ;;  %v2978_v6 = vld [vmem:[%s3958_s4] ss:$0 sm:$0xff]  ;;  %v2979_v9 = vld [vmem:[#allocation8] ss:$0 sm:$0xff]  ;;  %s3414_s9 = smov 96   ;;  %s3415_s23 = smov 32  }
  0x92   : > { %896 = vmatpush.bf16.msra.mxu1 %v2420_v29  ;;  %v732_v25 = vld [vmem:[%s3701_s18 + $0x4] sm:$0xf]  ;;  %v733_v38 = vld [vmem:[%s3701_s18 + $0x8] sm:$0xf]  ;;  %p726_p13 = scmp.lt.s32.totalorder %s3526_s28, 1  ;;  %vm1055_vm7 = vcmask 64512  }
  0x93   : > { %v747_v12 = vadd.f32 %v2985_v8, %v746_v11  ;;  %v1101_v28 = vunpack.c.l.bf16 %v732_v25  ;;  %v978_v36 = vsel %vm948_vm4, %v732_v25, 0  ;;  %s4029_s11 = sld [smem:[#allocation36_spill]]  ;;  %s725_s30 = scalar_lea.vmem [#allocation17], %s2363_s8 }
  0x94   : > { %s727_s12 = scalar_select %p726_p13, %s3526_s28, 1 }
  0x95   : > { %v3724_v13 = vsel %vm748_vm0, %v2985_v8, %v747_v12  ;;  %884 = vmatpush.bf16.msra.mxu0 %v2408_v33  ;;  %s4030_s17 = sld [smem:[#allocation37_spill]]  ;;  %s2163_s1 = sshll.u32 %s725_s30, 4  ;;  %s2164_s1 = int_to_ptr.vmem [resolvable:$true] %s2163_s1 }
  0x96   : > { %897 = vmatpush.bf16.msra.mxu1 %v2412_v35  ;;  %s728_s19 = scalar_lea.vmem %s3957_s3, %s727_s12  ;;  %s4031_s21 = sld [smem:[#allocation38_spill]] }
  0x97   : > { %s4034_s0 = sld [smem:[#allocation42_spill]] }
  0x99   : > { %885 = vmatpush.bf16.msra.mxu0 %v2400_v39  ;;  %v734_v39 = vld [vmem:[%s3701_s18 + $0xc] sm:$0xf] }
  0x9a   : > { %898 = vmatpush.bf16.msra.mxu1 %v2404_v41  ;;  %v1102_v41 = vunpack.c.l.bf16 %v733_v38  ;;  %v1103_v42 = vunpack.c.l.bf16 %v734_v39 }
  0x9c   : > { %v2973_v43 = vpack.i.bf16 %v1103_v42, %v1102_v41 }
  0x9d   : > { %886 = vmatpush.bf16.msra.mxu0 %v2392_v45  ;;  %s3336_s25 = scalar_lea.hbm %s4034_s0, 16 }
  0x9e   : > { %899 = vmatpush.bf16.msra.mxu1 %v2396_v47 }
  0xa1   : > { %887 = vmatpush.bf16.msra.mxu0 %v2384_v51 }
  0xa2   : > { %900 = vmatpush.bf16.msra.mxu1 %v2388_v55  ;;  %v1028_v55 = vsel %vm948_vm4, %v734_v39, 0 }
  0xa5   : > { %888 = vmatpush.bf16.msra.mxu0 %v2376_v58 }
  0xa6   : > { %901 = vmatpush.bf16.msra.mxu1 %v2380_v59 }
  0xf9   : > { %v742_v14 = vpop.xlane.xlu0 %741 }
  0xfa   : > { %v750_v15 = vmul.f32 %v3724_v13, %v742_v14  ;;  %v731_v14 = vld [vmem:[%s3701_s18] sm:$0xf] }
  0xfb   : > { %v1100_v27 = vunpack.c.l.bf16 %v731_v14 }
  0xfc   : > { %v3728_v16 = vsub.f32 %v3721_v0, %v750_v15  ;;  %v953_v15 = vsel %vm948_vm4, %v731_v14, 0 }
  0xfd   : > { %962 = vmatpush.bf16.xpose.msra.mxu3 %v953_v15  ;;  %v2968_v29 = vpack.i.bf16 %v1101_v28, %v1100_v27 }
  0xfe   : > { %v752_v17 = vmul.f32 %v3728_v16, %v3728_v16 }
 0x100   : > { %753 = vadd.xlane.f32.xlu0 %v752_v17  ;;  %v795_v17 = vld [vmem:[#allocation11] sm:$0x3] }
 0x101   : > { %v797_v18 = vperm.slane %v795_v17, 0  ;;  %v798_v22 = vperm.slane %v795_v17, 1 }
 0x105   : > { %987 = vmatpush.bf16.xpose.msrb.mxu3 %v978_v36 }
 0x173   : > { %v754_v60 = vpop.xlane.xlu0 %753 }
 0x174   : > { %v755_v61 = vmul.f32 %v754_v60, %v3724_v13 }
 0x176   : > { %v756_v62 = vadd.f32 1e-05, %v755_v61  ;;  %v1003_v61 = vsel %vm948_vm4, %v733_v38, 0 }
 0x177   : > { %1012 = vmatpush.bf16.xpose.msra.mxu2 %v1003_v61 }
 0x178   : > { %2986 = vrsqrt.f32 %v756_v62  ;;  %vm763_vm2 = vweird.f32 %v756_v62 }
 0x17e   : > { %v2987_v63 = vpop.eup %2986 }
 0x17f   : > { %v758_v1 = vmul.f32 %v2987_v63, %v756_v62  ;;  %vm764_vm1 = vweird.f32 %v2987_v63 }
 0x180   : > { %vm765_vm3 = vmor %vm763_vm2, %vm764_vm1 }
 0x181   : > { %v759_v2 = vmul.f32 %v2987_v63, %v758_v1 }
 0x183   : > { %v760_v3 = vmul.f32 0.5, %v759_v2 }
 0x185   : > { %v761_v4 = vsub.f32 1.5, %v760_v3 }
 0x187   : > { %v762_v5 = vmul.f32 %v2987_v63, %v761_v4 }
 0x189   : > { %v766_v7 = vsel %vm765_vm3, %v2987_v63, %v762_v5 }
 0x18a   : > { %v767_v8 = vmul.f32 %v766_v7, %v3728_v16 }
 0x18c   : > { %v772_v10 = vmul.f32 %v2978_v6, %v767_v8 }
 0x18e   : > { %v777_v11 = vadd.f32 %v2979_v9, %v772_v10 }
 0x190   : > { %v778_v12 = vpack.c.bf16 %v777_v11, %v777_v11 }
 0x192   : > { %889 = vmatmul.bf16.vlgmr.msra.gmra.mxu0 %v778_v12  ;;  %902 = vmatmul.bf16.vlgmr.msra.gmra.mxu1 %v778_v12 }
 0x20f   : > { %v890_v19 = vpop.f32.mrf.mxu0  ;;  %v903_v20 = vpop.f32.mrf.mxu1 }
 0x210   : > { %v891_v21 = vadd.f32 %v890_v19, %v797_v18  ;;  %v3742_v26 = vadd.f32 %v903_v20, %v798_v22  ;;  %v739_v22 = vld [vmem:[%s728_s19] sm:$0x1] }
 0x211   : > { %vm740_vm5 = vcmp.gt.f32.partialorder %v739_v22, 0.5 }
 0x212   : > { %908 = vrot.lane.b32.xlu1 %v891_v21, %s3413_s20  ;;  %v915_v16 = vmul.f32 0.17677669, %v891_v21  ;;  %v935_v30 = vpack.c.bf16 %v891_v21, %v891_v21  ;;  %v917_v46 = vmul.f32 0.17677669, %v3742_v26  ;;  %v939_v11 = vpack.c.bf16 %v3742_v26, %v3742_v26 }
 0x214   : > { %923 = vrot.lane.b32.xlu2 %v915_v16, %s3414_s9  ;;  %v945_v33 = vunpack.c.l.b16 %v935_v30  ;;  %v996_v19 = vunpack.c.l.b16 %v939_v11 }
 0x217   : > { %v892_v23 = vpop.f32.mrf.mxu0  ;;  %v905_v24 = vpop.f32.mrf.mxu1 }
 0x218   : > { %v3416_v24 = vmov 0  }
 0x219   : > { %v1048_v25 = vsel %vm740_vm5, 1, %v3416_v24  ;;  %vm1289_vm5 = vcmask 1043456  }
 0x21a   : > { %912 = vrot.lane.b32.xlu1 %v3742_v26, %s3413_s20 }
 0x222   : > { %2969 = vrot.lane.b32.xlu1 %v2968_v29, %s3415_s23 }
 0x26e   : > { %v924_v31 = vpop.permute.xlu2 %923 }
 0x26f   : > { %v936_v32 = vpack.c.bf16 %v924_v31, %v924_v31 }
 0x271   : > { %v946_v34 = vunpack.c.l.b16 %v936_v32 }
 0x273   : > { %v947_v35 = vpack.c.b16 %v946_v34, %v945_v33 }
 0x275   : > { %2437 = vmatmul.msk.bf16.vlgmr.msra.gmra.mxu3 %vm948_vm4, %v947_v35 }
 0x276   : > { %1037 = vmatpush.bf16.xpose.msra.mxu3 %v1028_v55 }
 0x284   : > { %v909_v37 = vpop.permute.xlu1 %908 }
 0x285   : > { %v916_v40 = vmul.f32 0.17677669, %v909_v37  ;;  %v937_v56 = vpack.c.bf16 %v909_v37, %v909_v37 }
 0x287   : > { %925 = vrot.lane.b32.xlu2 %v916_v40, %s3414_s9  ;;  %v971_v59 = vunpack.c.l.b16 %v937_v56 }
 0x28c   : > { %v913_v44 = vpop.permute.xlu1 %912 }
 0x28d   : > { %v918_v45 = vmul.f32 0.17677669, %v913_v44  ;;  %v941_v8 = vpack.c.bf16 %v913_v44, %v913_v44 }
 0x28f   : > { %2974 = vrot.lane.b32.xlu2 %v2973_v43, %s3415_s23  ;;  %v2963_v47 = vpack.i.bf16 %v918_v45, %v917_v46  ;;  %v1021_v15 = vunpack.c.l.b16 %v941_v8 }
 0x291   : > { %2964 = vrot.lane.b32.xlu0 %v2963_v47, %s3414_s9 }
 0x294   : > { %v2970_v48 = vpop.permute.xlu1 %2969 }
 0x295   : > { %v2972_v49 = vunpack.i.h.bf16 %v2970_v48  ;;  %v2971_v50 = vunpack.i.l.bf16 %v2970_v48 }
 0x297   : > { %v1121_v51 = vsub.f32 %v909_v37, %v2972_v49  ;;  %v1120_v52 = vsub.f32 %v891_v21, %v2971_v50 }
 0x299   : > { %v1124_v53 = vand.u32 2147483647, %v1120_v52  ;;  %v1125_v54 = vand.u32 2147483647, %v1121_v51 }
 0x29b   : > { %1132 = vrot.lane.b32.xlu1 %v1124_v53, %s3414_s9  ;;  %1134 = vrot.lane.b32.xlu2 %v1125_v54, %s3414_s9 }
 0x2e1   : > { %v926_v57 = vpop.permute.xlu2 %925 }
 0x2e2   : > { %v938_v58 = vpack.c.bf16 %v926_v57, %v926_v57 }
 0x2e4   : > { %v972_v60 = vunpack.c.l.b16 %v938_v58 }
 0x2e6   : > { %v973_v62 = vpack.c.b16 %v972_v60, %v971_v59 }
 0x2e8   : > { %2438 = vmatmul.msk.bf16.vlgmr.msrb.gmra.mxu3 %vm948_vm4, %v973_v62 }
 0x2e9   : > { %v2975_v63 = vpop.permute.xlu2 %2974 }
 0x2ea   : > { %v2977_v1 = vunpack.i.h.bf16 %v2975_v63  ;;  %v2976_v2 = vunpack.i.l.bf16 %v2975_v63 }
 0x2ec   : > { %v1123_v3 = vsub.f32 %v913_v44, %v2977_v1  ;;  %v1122_v4 = vsub.f32 %v3742_v26, %v2976_v2  ;;  %v1049_v26 = vperm.slane %v1048_v25, 0 }
 0x2ee   : > { %v1127_v5 = vand.u32 2147483647, %v1123_v3  ;;  %v1126_v6 = vand.u32 2147483647, %v1122_v4  ;;  %vm3774_vm6 = vcmp.eq.s32.totalorder %v1049_v26, 1 }
 0x2f0   : > { %1138 = vrot.lane.b32.xlu2 %v1127_v5, %s3414_s9  ;;  %1136 = vrot.lane.b32.xlu1 %v1126_v6, %s3414_s9 }
 0x2f5   : > { %v1135_v31 = vpop.permute.xlu2 %1134 }
 0x2f6   : > { %v1147_v44 = vsel %vm948_vm4, %v1135_v31, 0.0 }
 0x2f8   : > { %v964_v16 = vpop.f32.mrf.mxu3 }
 0x2f9   : > { %v1051_v46 = vsel %vm3774_vm6, %v964_v16, -1e+30 }
 0x2fa   : > { %v1056_v47 = vsel %vm1055_vm7, %v1051_v46, -inf }
 0x300   : > { %v3772_v23 = vpop.f32.mrf.mxu3 }
 0x303   : > { %v2965_v7 = vpop.permute.xlu0 %2964 }
 0x304   : > { %v2967_v9 = vunpack.i.h.bf16 %v2965_v7  ;;  %v2966_v10 = vunpack.i.l.bf16 %v2965_v7 }
 0x306   : > { %v942_v12 = vpack.c.bf16 %v2967_v9, %v2967_v9  ;;  %v940_v14 = vpack.c.bf16 %v2966_v10, %v2966_v10 }
 0x308   : > { %v1022_v17 = vunpack.c.l.b16 %v942_v12  ;;  %v997_v18 = vunpack.c.l.b16 %v940_v14 }
 0x30a   : > { %v1023_v20 = vpack.c.b16 %v1022_v17, %v1021_v15  ;;  %v998_v21 = vpack.c.b16 %v997_v18, %v996_v19 }
 0x30c   : > { %2439 = vmatmul.msk.bf16.vlgmr.msra.gmra.mxu2 %vm948_vm4, %v998_v21  ;;  %2440 = vmatmul.msk.bf16.vlgmr.msra.gmra.mxu3 %vm948_vm4, %v1023_v20 }
 0x30d   : > { %v1133_v32 = vpop.permute.xlu1 %1132 }
 0x30e   : > { %v1144_v33 = vsel %vm948_vm4, %v1133_v32, 0.0 }
 0x34a   : > { %v1139_v34 = vpop.permute.xlu2 %1138 }
 0x34b   : > { %v1153_v35 = vsel %vm948_vm4, %v1139_v34, 0.0 }
 0x362   : > { %v1137_v43 = vpop.permute.xlu1 %1136 }
 0x363   : > { %v1150_v45 = vsel %vm948_vm4, %v1137_v43, 0.0 }
 0x36b   : > { %v989_v28 = vpop.f32.mrf.mxu3 }
 0x36c   : > { %v1052_v29 = vsel %vm3774_vm6, %v989_v28, -1e+30 }
 0x36d   : > { %v1059_v30 = vsel %vm1055_vm7, %v1052_v29, -inf }
 0x36e   : > { %1060 = vmax.xlane.f32.xlu0 %v1059_v30 }
 0x373   : > { %v3783_v36 = vpop.f32.mrf.mxu3 }
 0x376   : > { %1145 = vadd.xlane.f32.xlu0 %v1144_v33 }
 0x37e   : > { %1154 = vadd.xlane.f32.xlu0 %v1153_v35 }
 0x38f   : > { %v1014_v37 = vpop.f32.mrf.mxu2  ;;  %v1039_v38 = vpop.f32.mrf.mxu3 }
 0x390   : > { %v1053_v39 = vsel %vm3774_vm6, %v1014_v37, -1e+30  ;;  %v1054_v40 = vsel %vm3774_vm6, %v1039_v38, -1e+30 }
 0x391   : > { %v1065_v41 = vsel %vm1055_vm7, %v1054_v40, -inf  ;;  %v1062_v42 = vsel %vm1055_vm7, %v1053_v39, -inf }
 0x392   : > { %1066 = vmax.xlane.f32.xlu2 %v1065_v41  ;;  %1063 = vmax.xlane.f32.xlu1 %v1062_v42 }
 0x39a   : > { %1148 = vadd.xlane.f32.xlu2 %v1147_v44  ;;  %1151 = vadd.xlane.f32.xlu1 %v1150_v45 }
 0x3a2   : > { %1057 = vmax.xlane.f32.xlu2 %v1056_v47 }
 0x3e1   : > { %v1061_v48 = vpop.xlane.xlu0 %1060 }
 0x3e2   : > { %v1069_v49 = vsub.f32 %v1052_v29, %v1061_v48 }
 0x3e4   : > { %v1074_v50 = vmul.f32 1.442695, %v1069_v49 }
 0x3e6   : > { %2988 = vpow2.f32 %v1074_v50 }
 0x3e9   : > { %v1146_v61 = vpop.xlane.xlu0 %1145 }
 0x3ea   : > { %v1156_v6 = vsub.f32 0.0, %v1146_v61 }
 0x3ec   : > { %v3796_v51 = vpop.eup %2988  ;;  %v2441_v11 = vmul.f32 -0.17677669, %v1156_v6 }
 0x3ed   : > { %v1083_v52 = vsel %vm1055_vm7, %v3796_v51, 0.0 }
 0x3ee   : > { %1084 = vadd.xlane.f32.xlu1 %v1083_v52  ;;  %v1168_v17 = vmul.f32 1.442695, %v2441_v11 }
 0x3f1   : > { %v1155_v10 = vpop.xlane.xlu0 %1154 }
 0x3f2   : > { %v1159_v14 = vsub.f32 0.0, %v1155_v10  ;;  %v736_v10 = vld [vmem:[%s3707_s27 + $0x4] sm:$0xf] }
 0x3f4   : > { %v2444_v20 = vmul.f32 -0.17677669, %v1159_v14  ;;  %v1310_v14 = vsel %vm1289_vm5, %v736_v10, 0 }
 0x3f5   : > { %1319 = vmatpush.bf16.msrb.mxu3 %v1310_v14 }
 0x3f6   : > { %v1174_v16 = vmul.f32 1.442695, %v2444_v20 }
 0x405   : > { %v1067_v53 = vpop.xlane.xlu2 %1066  ;;  %v1064_v54 = vpop.xlane.xlu1 %1063 }
 0x406   : > { %v1071_v55 = vsub.f32 %v1054_v40, %v1067_v53  ;;  %v1070_v56 = vsub.f32 %v1053_v39, %v1064_v54 }
 0x408   : > { %v1078_v57 = vmul.f32 1.442695, %v1071_v55  ;;  %v1076_v58 = vmul.f32 1.442695, %v1070_v56 }
 0x40a   : > { %2990 = vpow2.f32 %v1078_v57 }
 0x40b   : > { %2992 = vpow2.f32 %v1076_v58 }
 0x40d   : > { %v1149_v59 = vpop.xlane.xlu2 %1148  ;;  %v1152_v3 = vpop.xlane.xlu1 %1151 }
 0x40e   : > { %v1157_v2 = vsub.f32 0.0, %v1149_v59  ;;  %v1158_v7 = vsub.f32 0.0, %v1152_v3 }
 0x410   : > { %v3800_v60 = vpop.eup %2990  ;;  %v2442_v9 = vmul.f32 -0.17677669, %v1157_v2  ;;  %v2443_v12 = vmul.f32 -0.17677669, %v1158_v7  ;;  %v1248_v2 = vlaneseq }
 0x411   : > { %v3802_v62 = vpop.eup %2992  ;;  %v1089_v63 = vsel %vm1055_vm7, %v3800_v60, 0.0 }
 0x412   : > { %1090 = vadd.xlane.f32.xlu2 %v1089_v63  ;;  %v1086_v1 = vsel %vm1055_vm7, %v3802_v62, 0.0  ;;  %v1170_v15 = vmul.f32 1.442695, %v2442_v9  ;;  %v1172_v19 = vmul.f32 1.442695, %v2443_v12  ;;  %v1249_v20 = vand.u32 127, %v1248_v2 }
 0x413   : > { %1087 = vadd.xlane.f32.xlu0 %v1086_v1 }
 0x415   : > { %v1058_v4 = vpop.xlane.xlu2 %1057 }
 0x416   : > { %v1068_v5 = vsub.f32 %v1051_v46, %v1058_v4 }
 0x418   : > { %v1072_v8 = vmul.f32 1.442695, %v1068_v5 }
 0x41a   : > { %2994 = vpow2.f32 %v1072_v8 }
 0x41b   : > { %2996 = vpow2.f32 %v1170_v15 }
 0x41c   : > { %2998 = vpow2.f32 %v1168_v17 }
 0x41d   : > { %3000 = vpow2.f32 %v1172_v19 }
 0x41e   : > { %3002 = vpow2.f32 %v1174_v16 }
 0x420   : > { %v3808_v18 = vpop.eup %2994 }
 0x421   : > { %v1080_v21 = vsel %vm1055_vm7, %v3808_v18, 0.0  ;;  %v2997_v22 = vpop.eup %2996 }
 0x422   : > { %1081 = vadd.xlane.f32.xlu1 %v1080_v21  ;;  %v2999_v24 = vpop.eup %2998  ;;  %v1177_v26 = vadd.f32 1.0, %v2997_v22  ;;  %v738_v22 = vld [vmem:[%s3707_s27 + $0xc] sm:$0xf] }
 0x423   : > { %v3001_v25 = vpop.eup %3000  ;;  %v1176_v28 = vadd.f32 1.0, %v2999_v24 }
 0x424   : > { %v1178_v29 = vadd.f32 1.0, %v3001_v25  ;;  %3004 = vrcp.f32 %v1177_v26  ;;  %v3003_v30 = vpop.eup %3002  ;;  %v1206_v49 = vand.u32 2147483648, %v1177_v26  ;;  %vm1200_vm10 = vweird.f32 %v1177_v26 }
 0x425   : > { %3006 = vrcp.f32 %v1176_v28  ;;  %v3812_v31 = vadd.f32 1.0, %v3003_v30  ;;  %v1204_v52 = vand.u32 2147483647, %v1177_v26  ;;  %v1189_v53 = vand.u32 2147483647, %v1176_v28 }
 0x426   : > { %3008 = vrcp.f32 %v1178_v29  ;;  %v1191_v54 = vand.u32 2147483648, %v1176_v28  ;;  %vm1185_vm13 = vweird.f32 %v1176_v28  ;;  %v1221_v59 = vand.u32 2147483648, %v1178_v29 }
 0x427   : > { %3010 = vrcp.f32 %v3812_v31  ;;  %v1207_v63 = vor.u32 1.1754944e-38, %v1206_v49  ;;  %vm1215_vm15 = vweird.f32 %v1178_v29  ;;  %v1219_v1 = vand.u32 2147483647, %v1178_v29  ;;  %v735_v49 = vld [vmem:[%s3707_s27] sm:$0xf] }
 0x428   : > { %vm1205_vm0 = vcmp.eq.f32.partialorder %v1204_v52, 8.507059e+37  ;;  %vm1190_vm2 = vcmp.eq.f32.partialorder %v1189_v53, 8.507059e+37  ;;  %v1192_v5 = vor.u32 1.1754944e-38, %v1191_v54  ;;  %v1222_v9 = vor.u32 1.1754944e-38, %v1221_v59  ;;  %v1041_v52 = vpop.f32.mrf.mxu3 }
 0x429   : > { %v1236_v12 = vand.u32 2147483648, %v3812_v31  ;;  %v1234_v15 = vand.u32 2147483647, %v3812_v31  ;;  %3012 = vtanh.f32 %v3783_v36  ;;  %v1291_v36 = vsel %vm1289_vm5, %v735_v49, 0  ;;  %v2597_v49 = vld [vmem:[#allocation14 + $0xf0] sm:$0xf0] }
 0x42a   : > { %v3005_v32 = vpop.eup %3004  ;;  %1300 = vmatpush.bf16.msrb.mxu2 %v1291_v36  ;;  %v2603_v36 = vld [vmem:[#allocation14 + $0xe8] sm:$0xf] }
 0x42b   : > { %v3007_v33 = vpop.eup %3006  ;;  %v1196_v35 = vmul.f32 %v3005_v32, %v1177_v26  ;;  %vm1201_vm8 = vweird.f32 %v3005_v32  ;;  %v1237_v24 = vor.u32 1.1754944e-38, %v1236_v12  ;;  %v1348_v26 = vsel %vm1289_vm5, %v738_v22, 0 }
 0x42c   : > { %v3009_v34 = vpop.eup %3008  ;;  %v1181_v37 = vmul.f32 %v3007_v33, %v1176_v28  ;;  %vm1186_vm9 = vweird.f32 %v3007_v33  ;;  %vm3819_vm11 = vmor %vm1200_vm10, %vm1201_vm8  ;;  %vm1220_vm8 = vcmp.eq.f32.partialorder %v1219_v1, 8.507059e+37  ;;  %1357 = vmatpush.bf16.msrb.mxu1 %v1348_v26  ;;  %v2768_v26 = vld [vmem:[#allocation13 + $0x28] sm:$0xff] }
 0x42d   : > { %v1211_v38 = vmul.f32 %v3009_v34, %v1178_v29  ;;  %v1197_v39 = vsub.f32 1.0, %v1196_v35  ;;  %v3815_v40 = vpop.eup %3010  ;;  %vm1216_vm12 = vweird.f32 %v3009_v34  ;;  %vm3826_vm14 = vmor %vm1185_vm13, %vm1186_vm9  ;;  %vm1230_vm9 = vweird.f32 %v3812_v31 }
 0x42e   : > { %v1182_v41 = vsub.f32 1.0, %v1181_v37  ;;  %v1226_v43 = vmul.f32 %v3815_v40, %v3812_v31  ;;  %vm3832_vm1 = vmor %vm1215_vm15, %vm1216_vm12  ;;  %vm1231_vm3 = vweird.f32 %v3815_v40  ;;  %vm1254_vm12 = vcmask 1041409  }
 0x42f   : > { %v1212_v42 = vsub.f32 1.0, %v1211_v38  ;;  %v1198_v44 = vmul.f32 %v3005_v32, %v1197_v39  ;;  %vm1232_vm10 = vmor %vm1230_vm9, %vm1231_vm3  ;;  %vm1256_vm13 = vcmask 1042434  }
 0x430   : > { %v1183_v45 = vmul.f32 %v3007_v33, %v1182_v41  ;;  %v1227_v47 = vsub.f32 1.0, %v1226_v43 }
 0x431   : > { %v1213_v46 = vmul.f32 %v3009_v34, %v1212_v42  ;;  %v1199_v48 = vadd.f32 %v3005_v32, %v1198_v44  ;;  %v3013_v42 = vpop.eup %3012 }
 0x432   : > { %v1184_v50 = vadd.f32 %v3007_v33, %v1183_v45  ;;  %v1228_v57 = vmul.f32 %v3815_v40, %v1227_v47 }
 0x433   : > { %v1214_v56 = vadd.f32 %v3009_v34, %v1213_v46  ;;  %v1203_v58 = vsel %vm3819_vm11, %v3005_v32, %v1199_v48  ;;  %vm1235_vm11 = vcmp.eq.f32.partialorder %v1234_v15, 8.507059e+37  ;;  %v737_v48 = vld [vmem:[%s3707_s27 + $0x8] sm:$0xf]  ;;  %s4032_s27 = sld [smem:[#allocation40_spill]] }
 0x434   : > { %v1188_v3 = vsel %vm3826_vm14, %v3007_v33, %v1184_v50  ;;  %v1208_v6 = vsel %vm1205_vm0, %v1207_v63, %v1203_v58  ;;  %v1229_v8 = vadd.f32 %v3815_v40, %v1228_v57  ;;  %vm1258_vm14 = vcmask 1043459   ;;  %v1016_v50 = vpop.f32.mrf.mxu2 }
 0x435   : > { %v1218_v7 = vsel %vm3832_vm1, %v3009_v34, %v1214_v56  ;;  %v1193_v11 = vsel %vm1190_vm2, %v1192_v5, %v1188_v3  ;;  %v1241_v17 = vmul.f32 2.0, %v1208_v6  ;;  %v1329_v27 = vsel %vm1289_vm5, %v737_v48, 0  ;;  %v2799_v48 = vld [vmem:[#allocation14 + $0xe4] sm:$0xf] }
 0x436   : > { %v1223_v19 = vsel %vm1220_vm8, %v1222_v9, %v1218_v7  ;;  %v1240_v21 = vmul.f32 2.0, %v1193_v11  ;;  %v1233_v16 = vsel %vm1232_vm10, %v3815_v40, %v1229_v8  ;;  %1338 = vmatpush.bf16.msrb.mxu0 %v1329_v27 }
 0x437   : > { %v1242_v25 = vmul.f32 2.0, %v1223_v19  ;;  %v1251_v28 = vperm.slane %v1241_v17, %v1249_v20  ;;  %v1238_v29 = vsel %vm1235_vm11, %v1237_v24, %v1233_v16 }
 0x438   : > { %v1250_v30 = vperm.slane %v1240_v21, %v1249_v20  ;;  %v1243_v32 = vmul.f32 2.0, %v1238_v29  ;;  %v2766_v29 = vld [vmem:[#allocation13 + $0x18] sm:$0xff] }
 0x439   : > { %v1252_v31 = vperm.slane %v1242_v25, %v1249_v20  ;;  %v2769_v25 = vld [vmem:[#allocation13 + $0x30] sm:$0xff] }
 0x43a   : > { %v1255_v33 = vsel %vm1254_vm12, %v1251_v28, %v1250_v30  ;;  %v1253_v35 = vperm.slane %v1243_v32, %v1249_v20  ;;  %v2767_v28 = vld [vmem:[#allocation13 + $0x20] sm:$0xff]  ;;  %v2765_v30 = vld [vmem:[#allocation13 + $0x10] sm:$0xff] }
 0x43b   : > { %v1257_v34 = vsel %vm1256_vm13, %v1252_v31, %v1255_v33  ;;  %v2764_v31 = vld [vmem:[#allocation13 + $0x8] sm:$0xff]  ;;  %v2763_v32 = vld [vmem:[#allocation13] sm:$0xff] }
 0x43c   : > { %v1259_v37 = vsel %vm1258_vm14, %v1253_v35, %v1257_v34 }
 0x43d   : > { %v1261_v38 = vsel %vm3774_vm6, %v1259_v37, 0.0  ;;  %vm1376_vm6 = vcmask 523264  }
 0x43e   : > { %v1263_v39 = vrot.slane %v1261_v38, 1  ;;  %v1265_v54 = vrot.slane %v1261_v38, 3  ;;  %v1264_v55 = vrot.slane %v1261_v38, 2  ;;  %v1266_v10 = vperm.slane %v1261_v38, 0 }
 0x440   : > { %v1267_v41 = vperm.slane %v1263_v39, 0  ;;  %v1269_v56 = vperm.slane %v1265_v54, 0  ;;  %v1268_v58 = vperm.slane %v1264_v55, 0  ;;  %v2800_v54 = vld [vmem:[#allocation14 + $0xec] sm:$0xf] }
 0x442   : > { %v1275_v44 = vmul.f32 %v3013_v42, %v1267_v41  ;;  %v2980_v41 = vld [vmem:[%s4029_s11] ss:$0 sm:$0xff] }
 0x461   : > { %v1085_v40 = vpop.xlane.xlu1 %1084 }
 0x462   : > { %3014 = vrcp.f32 %v1085_v40 }
 0x463   : > { %3016 = vtanh.f32 %v1016_v50  ;;  %v2802_v50 = vld [vmem:[#allocation14 + $0xf4] sm:$0xf0] }
 0x464   : > { %3018 = vtanh.f32 %v1041_v52  ;;  %v2600_v52 = vor.u32 %v2799_v48, %v2597_v49  ;;  %v2515_v48 = vld [vmem:[#allocation14 + $0x40] sm:$0xf]  ;;  %v2779_v49 = vld [vmem:[#allocation14 + $0x44] sm:$0xf] }
 0x466   : > { %1709 = vmatpush.bf16.msra.mxu0 %v2600_v52  ;;  %v2523_v52 = vld [vmem:[#allocation14 + $0x48] sm:$0xf] }
 0x468   : > { %v3015_v43 = vpop.eup %3014 }
 0x469   : > { %v1097_v45 = vmul.f32 %v3015_v43, %v3796_v51  ;;  %v3017_v57 = vpop.eup %3016 }
 0x46a   : > { %v3019_v59 = vpop.eup %3018  ;;  %v1276_v4 = vmul.f32 %v3017_v57, %v1268_v58 }
 0x46b   : > { %v1279_v46 = vadd.f32 %v1275_v44, %v1097_v45  ;;  %v1277_v2 = vmul.f32 %v3019_v59, %v1269_v56  ;;  %v2579_v59 = vld [vmem:[#allocation14 + $0xc0] sm:$0xf] }
 0x46d   : > { %v1283_v47 = vpack.c.bf16 %v1279_v46, %v1279_v46  ;;  %v2595_v46 = vld [vmem:[#allocation14 + $0xe0] sm:$0xf] }
 0x46f   : > { %2446 = vmatmul.msk.bf16.vlgmr.msrb.gmra.mxu3 %vm1055_vm7, %v1283_v47  ;;  %v2801_v47 = vld [vmem:[#allocation14 + $0xec] sm:$0xf0] }
 0x470   : > { %v2596_v27 = vor.u32 %v2801_v47, %v2595_v46  ;;  %v2541_v46 = vld [vmem:[#allocation14 + $0x78] sm:$0xf0] }
 0x472   : > { %1696 = vmatpush.bf16.msra.mxu3 %v2596_v27  ;;  %v2781_v27 = vld [vmem:[#allocation14 + $0x4c] sm:$0xf0] }
 0x485   : > { %v1091_v53 = vpop.xlane.xlu2 %1090 }
 0x486   : > { %3020 = vrcp.f32 %v1091_v53  ;;  %v1088_v51 = vpop.xlane.xlu0 %1087  ;;  %v2604_v53 = vor.u32 %v2802_v50, %v2603_v36  ;;  %v2516_v36 = vor.u32 %v2781_v27, %v2515_v48  ;;  %v2517_v50 = vld [vmem:[#allocation14 + $0x50] sm:$0xf0]  ;;  %v2823_v48 = vld [vmem:[#allocation16 + $0xa0] sm:$0xff]  ;;  %v2808_v27 = vld [vmem:[#allocation16 + $0x28] sm:$0xff] }
 0x487   : > { %3022 = vrcp.f32 %v1088_v51  ;;  %v2605_v51 = vld [vmem:[#allocation14 + $0xf8] sm:$0xf0] }
 0x488   : > { %3024 = vtanh.f32 %v3772_v23  ;;  %v2608_v55 = vor.u32 %v2800_v54, %v2605_v51  ;;  %1722 = vmatpush.bf16.msra.mxu1 %v2604_v53  ;;  %v2782_v53 = vld [vmem:[#allocation14 + $0x54] sm:$0xf0]  ;;  %v2520_v54 = vor.u32 %v2779_v49, %v2517_v50  ;;  %v2832_v49 = vld [vmem:[#allocation16 + $0xe8] sm:$0xff] }
 0x489   : > { %v2524_v51 = vor.u32 %v2782_v53, %v2523_v52  ;;  %v2822_v50 = vld [vmem:[#allocation16 + $0x98] sm:$0xff]  ;;  %v2807_v52 = vld [vmem:[#allocation16 + $0x20] sm:$0xff] }
 0x48a   : > { %v2831_v53 = vld [vmem:[#allocation16 + $0xe0] sm:$0xff] }
 0x48c   : > { %v3021_v61 = vpop.eup %3020 }
 0x48d   : > { %v3023_v63 = vpop.eup %3022  ;;  %v1099_v1 = vmul.f32 %v3021_v61, %v3800_v60  ;;  %v2797_v61 = vld [vmem:[#allocation14 + $0xcc] sm:$0xf0] }
 0x48e   : > { %v1098_v3 = vmul.f32 %v3023_v63, %v3802_v62  ;;  %v3025_v11 = vpop.eup %3024  ;;  %v2795_v63 = vld [vmem:[#allocation14 + $0xc4] sm:$0xf] }
 0x48f   : > { %v1281_v5 = vadd.f32 %v1277_v2, %v1099_v1  ;;  %v1274_v14 = vmul.f32 %v3025_v11, %v1266_v10  ;;  %v2580_v1 = vor.u32 %v2797_v61, %v2579_v59  ;;  %v2581_v2 = vld [vmem:[#allocation14 + $0xd0] sm:$0xf0]  ;;  %v2563_v10 = vld [vmem:[#allocation14 + $0xa0] sm:$0xf]  ;;  %v2793_v11 = vld [vmem:[#allocation14 + $0xac] sm:$0xf0] }
 0x490   : > { %v1280_v6 = vadd.f32 %v1276_v4, %v1098_v3  ;;  %v2587_v3 = vld [vmem:[#allocation14 + $0xc8] sm:$0xf]  ;;  %v2798_v4 = vld [vmem:[#allocation14 + $0xd4] sm:$0xf0]  ;;  %v2777_v59 = vld [vmem:[#allocation14 + $0x2c] sm:$0xf0] }
 0x491   : > { %v1285_v7 = vpack.c.bf16 %v1281_v5, %v1281_v5  ;;  %v2584_v5 = vor.u32 %v2795_v63, %v2581_v2  ;;  %1697 = vmatpush.bf16.msra.mxu3 %v2580_v1  ;;  %v2775_v61 = vld [vmem:[#allocation14 + $0x24] sm:$0xf]  ;;  %v2501_v1 = vld [vmem:[#allocation14 + $0x30] sm:$0xf0]  ;;  %v2507_v2 = vld [vmem:[#allocation14 + $0x28] sm:$0xf] }
 0x492   : > { %v1284_v8 = vpack.c.bf16 %v1280_v6, %v1280_v6  ;;  %v2588_v6 = vor.u32 %v2798_v4, %v2587_v3  ;;  %v2778_v3 = vld [vmem:[#allocation14 + $0x34] sm:$0xf0]  ;;  %v2504_v4 = vor.u32 %v2775_v61, %v2501_v1  ;;  %v2812_v61 = vld [vmem:[#allocation16 + $0x48] sm:$0xff] }
 0x493   : > { %2448 = vmatmul.msk.bf16.vlgmr.msrb.gmra.mxu1 %vm1055_vm7, %v1285_v7  ;;  %v2796_v7 = vld [vmem:[#allocation14 + $0xcc] sm:$0xf]  ;;  %1710 = vmatpush.bf16.msra.mxu0 %v2584_v5  ;;  %v2508_v5 = vor.u32 %v2778_v3, %v2507_v2 }
 0x494   : > { %2447 = vmatmul.msk.bf16.vlgmr.msrb.gmra.mxu0 %vm1055_vm7, %v1284_v8  ;;  %v2589_v8 = vld [vmem:[#allocation14 + $0xd8] sm:$0xf0]  ;;  %1723 = vmatpush.bf16.msra.mxu1 %v2588_v6  ;;  %v2776_v6 = vld [vmem:[#allocation14 + $0x2c] sm:$0xf] }
 0x495   : > { %v1082_v9 = vpop.xlane.xlu1 %1081 }
 0x496   : > { %3026 = vrcp.f32 %v1082_v9  ;;  %v2592_v9 = vor.u32 %v2796_v7, %v2589_v8  ;;  %v2509_v7 = vld [vmem:[#allocation14 + $0x38] sm:$0xf0]  ;;  %v2483_v8 = vld [vmem:[#allocation14] sm:$0xf] }
 0x49c   : > { %v3027_v12 = vpop.eup %3026 }
 0x49d   : > { %v1096_v60 = vmul.f32 %v3027_v12, %v3808_v18  ;;  %v2770_v18 = vld [vmem:[#allocation13 + $0x38] sm:$0xff]  ;;  %v2791_v12 = vld [vmem:[#allocation14 + $0xa4] sm:$0xf] }
 0x49e   : > { %1449 = vmatpush.bf16.msra.mxu2 %v2770_v18 }
 0x49f   : > { %v1278_v62 = vadd.f32 %v1274_v14, %v1096_v60  ;;  %v2564_v60 = vor.u32 %v2793_v11, %v2563_v10  ;;  %v2565_v14 = vld [vmem:[#allocation14 + $0xb0] sm:$0xf0]  ;;  %v2773_v10 = vld [vmem:[#allocation14 + $0xc] sm:$0xf0]  ;;  %v2771_v11 = vld [vmem:[#allocation14 + $0x4] sm:$0xf] }
 0x4a1   : > { %v1282_v15 = vpack.c.bf16 %v1278_v62, %v1278_v62  ;;  %v2571_v62 = vld [vmem:[#allocation14 + $0xa8] sm:$0xf]  ;;  %1698 = vmatpush.bf16.msra.mxu3 %v2564_v60  ;;  %v2484_v60 = vor.u32 %v2773_v10, %v2483_v8  ;;  %v2819_v10 = vld [vmem:[#allocation16 + $0x80] sm:$0xff] }
 0x4a2   : > { %1450 = vmatpush.bf16.msra.mxu2 %v2769_v25  ;;  %v2549_v25 = vld [vmem:[#allocation14 + $0x90] sm:$0xf0] }
 0x4a3   : > { %2445 = vmatmul.msk.bf16.vlgmr.msrb.gmra.mxu2 %vm1055_vm7, %v1282_v15  ;;  %vm1378_vm7 = vcmask 785408   ;;  %v2794_v15 = vld [vmem:[#allocation14 + $0xb4] sm:$0xf0] }
 0x4a6   : > { %1451 = vmatpush.bf16.msra.mxu2 %v2768_v26  ;;  %v2555_v26 = vld [vmem:[#allocation14 + $0x88] sm:$0xf] }
 0x4aa   : > { %1452 = vmatpush.bf16.msra.mxu2 %v2767_v28  ;;  %v2790_v28 = vld [vmem:[#allocation14 + $0x94] sm:$0xf0] }
 0x4ae   : > { %1453 = vmatpush.bf16.msra.mxu2 %v2766_v29 }
 0x4b2   : > { %1454 = vmatpush.bf16.msra.mxu2 %v2765_v30  ;;  %v2556_v30 = vor.u32 %v2790_v28, %v2555_v26 }
 0x4b6   : > { %1455 = vmatpush.bf16.msra.mxu2 %v2764_v31  ;;  %v2788_v31 = vld [vmem:[#allocation14 + $0x8c] sm:$0xf] }
 0x4ba   : > { %1456 = vmatpush.bf16.msra.mxu2 %v2763_v32  ;;  %v2557_v32 = vld [vmem:[#allocation14 + $0x98] sm:$0xf0] }
 0x4be   : > { %1735 = vmatpush.bf16.msrb.mxu2 %v2608_v55  ;;  %v2780_v55 = vld [vmem:[#allocation14 + $0x4c] sm:$0xf] }
 0x4c2   : > { %1736 = vmatpush.bf16.msrb.mxu2 %v2592_v9  ;;  %v2512_v9 = vor.u32 %v2776_v6, %v2509_v7 }
 0x4f2   : > { %v1321_v17 = vpop.f32.mrf.mxu3 }
 0x4f3   : > { %1364 = vrot.lane.b32.xlu0 %v1321_v17, %s3415_s23  ;;  %v2568_v17 = vor.u32 %v2791_v12, %v2565_v14  ;;  %v2485_v12 = vld [vmem:[#allocation14 + $0x10] sm:$0xf0] }
 0x4f4   : > { %v2488_v14 = vor.u32 %v2771_v11, %v2485_v12 }
 0x4f5   : > { %1711 = vmatpush.bf16.msra.mxu0 %v2568_v17  ;;  %v2772_v17 = vld [vmem:[#allocation14 + $0xc] sm:$0xf] }
 0x4fa   : > { %v1323_v19 = vpop.f32.mrf.mxu3 }
 0x4fb   : > { %v2572_v19 = vor.u32 %v2794_v15, %v2571_v62  ;;  %v2491_v62 = vld [vmem:[#allocation14 + $0x8] sm:$0xf]  ;;  %v2774_v15 = vld [vmem:[#allocation14 + $0x14] sm:$0xf0] }
 0x4fd   : > { %1724 = vmatpush.bf16.msra.mxu1 %v2572_v19  ;;  %v2492_v19 = vor.u32 %v2774_v15, %v2491_v62  ;;  %v2828_v62 = vld [vmem:[#allocation16 + $0xc8] sm:$0xff] }
 0x501   : > { %1725 = vmatpush.bf16.msra.mxu1 %v2556_v30  ;;  %v2981_v30 = vld [vmem:[%s4030_s17] ss:$0 sm:$0xff] }
 0x510   : > { %v1359_v20 = vpop.f32.mrf.mxu1 }
 0x511   : > { %v1340_v21 = vpop.f32.mrf.mxu0  ;;  %1372 = vrot.lane.b32.xlu1 %v1359_v20, %s3414_s9  ;;  %v2792_v20 = vld [vmem:[#allocation14 + $0xac] sm:$0xf]  ;;  %s2742_s9 = sshll.u32 %s3526_s28, 3  ;;  %s2151_s28 = scalar_lea.sflag [#allocation4], %s3689_s6 }
 0x512   : > { %1368 = vrot.lane.b32.xlu2 %v1340_v21, %s3413_s20  ;;  %v2573_v21 = vld [vmem:[#allocation14 + $0xb8] sm:$0xf0]  ;;  %s4033_s20 = sld [smem:[#allocation41_spill]]  ;;  %s2161_s26 = scalar_lea.hbm %s4034_s0, %s2742_s9 }
 0x513   : > { %s2165_s11 = sshll.u32 %s2161_s26, 4  ;;  %s2166_s11 = int_to_ptr.hbm [resolvable:$true] %s2165_s11 }
 0x514   : > { %s3330_s15 = sshra.s32 %s2166_s11, 4  ;;  %s3331_s15 = int_to_ptr.hbm [resolvable:$true] %s3330_s15 }
 0x515   : > { %s3332_s10 = scalar_lea.hbm %s3331_s15, 8  ;;  %p3337_p10 = scmp.lt.s32.totalorder %s3331_s15, %s4034_s0 }
 0x516   : > { %p3333_p4 = scmp.ne.s32.totalorder %s3331_s15, %s3332_s10  ;;  %p3338_p11 = scmp.lt.s32.totalorder %s3336_s25, %s3332_s10 }
 0x518   : > { %v1361_v23 = vpop.f32.mrf.mxu1  ;;  %p3334_p9 = pnand %p3333_p4, %p3578_p0  ;;  %p3339_p3 = por %p3338_p11, %p3337_p10 }
 0x519   : > { %v1342_v16 = vpop.f32.mrf.mxu0  ;;  %v2576_v23 = vor.u32 %v2792_v20, %v2573_v21  ;;  %v2493_v20 = vld [vmem:[#allocation14 + $0x18] sm:$0xf0] }
 0x51a   : > { %v2547_v16 = vld [vmem:[#allocation14 + $0x80] sm:$0xf]  ;;  %v2496_v21 = vor.u32 %v2772_v17, %v2493_v20  ;;  %p3335_p6 = pneg %p3334_p9 }
 0x51b   : > { %1737 = vmatpush.bf16.msrb.mxu2 %v2576_v23 }
 0x51c   : > { %p3340_p8 = pnand %p3339_p3, %p3335_p6 }
 0x526   : > { %v1302_v22 = vpop.f32.mrf.mxu2 }
 0x52e   : > { %v1304_v24 = vpop.f32.mrf.mxu2 }
 0x52f   : > { %v2787_v24 = vld [vmem:[#allocation14 + $0x84] sm:$0xf] }
 0x530   : > { %v2552_v29 = vor.u32 %v2787_v24, %v2549_v25 }
 0x532   : > { %1712 = vmatpush.bf16.msra.mxu0 %v2552_v29 }
 0x565   : > { %v1365_v33 = vpop.permute.xlu0 %1364 }
 0x566   : > { %v1375_v35 = vsel %vm948_vm4, %v1302_v22, %v1365_v33  ;;  %v2789_v22 = vld [vmem:[#allocation14 + $0x8c] sm:$0xf0]  ;;  %v2560_v33 = vor.u32 %v2788_v31, %v2557_v32 }
 0x567   : > { %v2548_v18 = vor.u32 %v2789_v22, %v2547_v16 }
 0x568   : > { %1738 = vmatpush.bf16.msrb.mxu2 %v2560_v33 }
 0x569   : > { %1699 = vmatpush.bf16.msra.mxu3 %v2548_v18 }
 0x56c   : > { %v1369_v34 = vpop.permute.xlu2 %1368 }
 0x56d   : > { %v1377_v37 = vsel %vm1376_vm6, %v1375_v35, %v1369_v34  ;;  %v2531_v34 = vld [vmem:[#allocation14 + $0x60] sm:$0xf]  ;;  %v2785_v35 = vld [vmem:[#allocation14 + $0x6c] sm:$0xf0] }
 0x583   : > { %v1373_v38 = vpop.permute.xlu1 %1372 }
 0x584   : > { %v1379_v39 = vsel %vm1378_vm7, %v1377_v37, %v1373_v38  ;;  %v2783_v37 = vld [vmem:[#allocation14 + $0x64] sm:$0xf]  ;;  %v2532_v38 = vor.u32 %v2785_v35, %v2531_v34 }
 0x585   : > { %v1380_v40 = vpack.c.bf16 %v1379_v39, %v1379_v39  ;;  %v2533_v39 = vld [vmem:[#allocation14 + $0x70] sm:$0xf0] }
 0x586   : > { %1700 = vmatpush.bf16.msra.mxu3 %v2532_v38  ;;  %v2826_v38 = vld [vmem:[#allocation16 + $0xb8] sm:$0xff] }
 0x587   : > { %1457 = vmatmul.bf16.vlgmr.msra.gmra.mxu2 %v1380_v40  ;;  %v2539_v40 = vld [vmem:[#allocation14 + $0x68] sm:$0xf] }
 0x58a   : > { %1701 = vmatpush.bf16.msra.mxu3 %v2516_v36  ;;  %v2814_v36 = vld [vmem:[#allocation16 + $0x58] sm:$0xff] }
 0x60a   : > { %v1458_v42 = vpop.f32.mrf.mxu2 }
 0x60b   : > { %v1459_v43 = vadd.f32 %v2980_v41, %v1458_v42  ;;  %v2786_v41 = vld [vmem:[#allocation14 + $0x74] sm:$0xf0]  ;;  %v2536_v42 = vor.u32 %v2783_v37, %v2533_v39  ;;  %v2817_v39 = vld [vmem:[#allocation16 + $0x70] sm:$0xff] }
 0x60c   : > { %v2818_v37 = vld [vmem:[#allocation16 + $0x78] sm:$0xff] }
 0x60d   : > { %v3872_v44 = vadd.f32 %v1459_v43, %v3721_v0  ;;  %v2540_v43 = vor.u32 %v2786_v41, %v2539_v40  ;;  %1713 = vmatpush.bf16.msra.mxu0 %v2536_v42  ;;  %v2825_v40 = vld [vmem:[#allocation16 + $0xb0] sm:$0xff]  ;;  %v2834_v41 = vld [vmem:[#allocation16 + $0xf8] sm:$0xff]  ;;  %v2816_v42 = vld [vmem:[#allocation16 + $0x68] sm:$0xff] }
 0x60f   : > { %1463 = vadd.xlane.f32.xlu0 %v3872_v44  ;;  %1726 = vmatpush.bf16.msra.mxu1 %v2540_v43  ;;  %v2824_v43 = vld [vmem:[#allocation16 + $0xa8] sm:$0xff] }
 0x611   : > { %1714 = vmatpush.bf16.msra.mxu0 %v2520_v54  ;;  %v1526_v54 = vld [vmem:[%s4032_s27] sm:$0xf] }
 0x612   : > { %v1460_v45 = vpop.f32.mrf.mxu2  ;;  %v1528_v8 = vperm.slane %v1526_v54, 0  ;;  %v1531_v12 = vperm.slane %v1526_v54, 3 }
 0x613   : > { %v2784_v45 = vld [vmem:[#allocation14 + $0x6c] sm:$0xf]  ;;  %1727 = vmatpush.bf16.msra.mxu1 %v2524_v51  ;;  %v2813_v51 = vld [vmem:[#allocation16 + $0x50] sm:$0xff] }
 0x614   : > { %v2544_v47 = vor.u32 %v2784_v45, %v2541_v46  ;;  %v2809_v45 = vld [vmem:[#allocation16 + $0x30] sm:$0xff] }
 0x615   : > { %1715 = vmatpush.bf16.msra.mxu0 %v2504_v4  ;;  %v2833_v46 = vld [vmem:[#allocation16 + $0xf0] sm:$0xff] }
 0x616   : > { %1739 = vmatpush.bf16.msrb.mxu2 %v2544_v47  ;;  %v2815_v47 = vld [vmem:[#allocation16 + $0x60] sm:$0xff]  ;;  %v2805_v4 = vld [vmem:[#allocation16 + $0x10] sm:$0xff] }
 0x617   : > { %1728 = vmatpush.bf16.msra.mxu1 %v2508_v5  ;;  %v2829_v5 = vld [vmem:[#allocation16 + $0xd0] sm:$0xff] }
 0x619   : > { %1716 = vmatpush.bf16.msra.mxu0 %v2488_v14  ;;  %v2804_v14 = vld [vmem:[#allocation16 + $0x8] sm:$0xff] }
 0x61b   : > { %1729 = vmatpush.bf16.msra.mxu1 %v2492_v19 }
 0x61d   : > { %2109 = vmatpush.bf16.msrb.mxu0 %v2818_v37 }
 0x61f   : > { %2122 = vmatpush.bf16.msrb.mxu1 %v2826_v38 }
 0x621   : > { %2110 = vmatpush.bf16.msrb.mxu0 %v2817_v39 }
 0x623   : > { %2123 = vmatpush.bf16.msrb.mxu1 %v2825_v40 }
 0x625   : > { %2111 = vmatpush.bf16.msrb.mxu0 %v2816_v42 }
 0x627   : > { %2124 = vmatpush.bf16.msrb.mxu1 %v2824_v43 }
 0x629   : > { %2112 = vmatpush.bf16.msrb.mxu0 %v2815_v47 }
 0x62b   : > { %2125 = vmatpush.bf16.msrb.mxu1 %v2823_v48 }
 0x62d   : > { %2113 = vmatpush.bf16.msrb.mxu0 %v2814_v36 }
 0x62f   : > { %2126 = vmatpush.bf16.msrb.mxu1 %v2822_v50 }
 0x631   : > { %2114 = vmatpush.bf16.msrb.mxu0 %v2813_v51 }
 0x635   : > { %2115 = vmatpush.bf16.msrb.mxu0 %v2812_v61 }
 0x682   : > { %v1464_v0 = vpop.xlane.xlu0 %1463 }
 0x683   : > { %v1465_v56 = vmul.f32 %v1464_v0, %v3724_v13  ;;  %v2525_v0 = vld [vmem:[#allocation14 + $0x58] sm:$0xf0] }
 0x685   : > { %v3877_v57 = vsub.f32 %v3872_v44, %v1465_v56  ;;  %v2528_v56 = vor.u32 %v2780_v55, %v2525_v0  ;;  %v2821_v55 = vld [vmem:[#allocation16 + $0x90] sm:$0xff]  ;;  %v1529_v0 = vperm.slane %v1526_v54, 1 }
 0x686   : > { %2127 = vmatpush.bf16.msrb.mxu1 %v2821_v55 }
 0x687   : > { %v1467_v58 = vmul.f32 %v3877_v57, %v3877_v57  ;;  %1740 = vmatpush.bf16.msrb.mxu2 %v2528_v56  ;;  %v2806_v56 = vld [vmem:[#allocation16 + $0x18] sm:$0xff] }
 0x689   : > { %1468 = vadd.xlane.f32.xlu2 %v1467_v58  ;;  %v2499_v58 = vld [vmem:[#allocation14 + $0x20] sm:$0xf] }
 0x68a   : > { %v2500_v63 = vor.u32 %v2777_v59, %v2499_v58  ;;  %v2830_v58 = vld [vmem:[#allocation16 + $0xd8] sm:$0xff]  ;;  %v1530_v59 = vperm.slane %v1526_v54, 2 }
 0x68b   : > { %1741 = vmatpush.bf16.msrb.mxu2 %v2512_v9  ;;  %v2811_v9 = vld [vmem:[#allocation16 + $0x40] sm:$0xff] }
 0x68c   : > { %1702 = vmatpush.bf16.msra.mxu3 %v2500_v63  ;;  %v2820_v63 = vld [vmem:[#allocation16 + $0x88] sm:$0xff]  ;;  %2116 = vmatpush.bf16.msrb.mxu0 %v2811_v9 }
 0x68d   : > { %2128 = vmatpush.bf16.msrb.mxu1 %v2820_v63 }
 0x68f   : > { %1742 = vmatpush.bf16.msrb.mxu2 %v2496_v21 }
 0x690   : > { %1703 = vmatpush.bf16.msra.mxu3 %v2484_v60 }
 0x691   : > { %2129 = vmatpush.bf16.msrb.mxu1 %v2819_v10 }
 0x693   : > { %2135 = vmatpush.bf16.msra.mxu2 %v2834_v41 }
 0x697   : > { %2136 = vmatpush.bf16.msra.mxu2 %v2833_v46 }
 0x69b   : > { %2137 = vmatpush.bf16.msra.mxu2 %v2832_v49 }
 0x69f   : > { %2138 = vmatpush.bf16.msra.mxu2 %v2831_v53 }
 0x6a3   : > { %2139 = vmatpush.bf16.msra.mxu2 %v2830_v58 }
 0x6a7   : > { %2140 = vmatpush.bf16.msra.mxu2 %v2829_v5 }
 0x6ab   : > { %2141 = vmatpush.bf16.msra.mxu2 %v2828_v62 }
 0x6fc   : > { %v1469_v23 = vpop.xlane.xlu2 %1468 }
 0x6fd   : > { %v1470_v16 = vmul.f32 %v1469_v23, %v3724_v13  ;;  %v2982_v13 = vld [vmem:[%s4031_s21] ss:$0 sm:$0xff] }
 0x6ff   : > { %v1471_v22 = vadd.f32 1e-05, %v1470_v16 }
 0x701   : > { %3028 = vrsqrt.f32 %v1471_v22  ;;  %vm1478_vm15 = vweird.f32 %v1471_v22 }
 0x707   : > { %v3029_v24 = vpop.eup %3028 }
 0x708   : > { %v1473_v18 = vmul.f32 %v3029_v24, %v1471_v22  ;;  %vm1479_vm4 = vweird.f32 %v3029_v24 }
 0x709   : > { %vm1480_vm0 = vmor %vm1478_vm15, %vm1479_vm4 }
 0x70a   : > { %v1474_v25 = vmul.f32 %v3029_v24, %v1473_v18  ;;  %v2827_v18 = vld [vmem:[#allocation16 + $0xc0] sm:$0xff] }
 0x70b   : > { %2142 = vmatpush.bf16.msra.mxu2 %v2827_v18 }
 0x70c   : > { %v1475_v26 = vmul.f32 0.5, %v1474_v25 }
 0x70e   : > { %v1476_v28 = vsub.f32 1.5, %v1475_v26 }
 0x710   : > { %v1477_v29 = vmul.f32 %v3029_v24, %v1476_v28 }
 0x712   : > { %v1481_v31 = vsel %vm1480_vm0, %v3029_v24, %v1477_v29  ;;  %v2803_v24 = vld [vmem:[#allocation16] sm:$0xff] }
 0x713   : > { %v1482_v32 = vmul.f32 %v1481_v31, %v3877_v57  ;;  %v2810_v57 = vld [vmem:[#allocation16 + $0x38] sm:$0xff] }
 0x714   : > { %2096 = vmatpush.bf16.msrb.mxu3 %v2810_v57 }
 0x715   : > { %v1487_v33 = vmul.f32 %v2981_v30, %v1482_v32 }
 0x717   : > { %v1492_v34 = vadd.f32 %v2982_v13, %v1487_v33 }
 0x718   : > { %2097 = vmatpush.bf16.msrb.mxu3 %v2809_v45 }
 0x719   : > { %v1493_v35 = vpack.c.bf16 %v1492_v34, %v1492_v34 }
 0x71b   : > { %1704 = vmatmul.bf16.vlgmr.msra.gmra.mxu3 %v1493_v35  ;;  %1717 = vmatmul.bf16.vlgmr.msra.gmra.mxu0 %v1493_v35 }
 0x71c   : > { %1730 = vmatmul.bf16.vlgmr.msra.gmra.mxu1 %v1493_v35  ;;  %1743 = vmatmul.bf16.vlgmr.msrb.gmra.mxu2 %v1493_v35 }
 0x71d   : > { %2098 = vmatpush.bf16.msrb.mxu3 %v2808_v27 }
 0x721   : > { %2099 = vmatpush.bf16.msrb.mxu3 %v2807_v52 }
 0x725   : > { %2100 = vmatpush.bf16.msrb.mxu3 %v2806_v56 }
 0x729   : > { %2101 = vmatpush.bf16.msrb.mxu3 %v2805_v4 }
 0x72d   : > { %2102 = vmatpush.bf16.msrb.mxu3 %v2804_v14 }
 0x731   : > { %2103 = vmatpush.bf16.msrb.mxu3 %v2803_v24 }
 0x798   : > { %v1718_v1 = vpop.f32.mrf.mxu0 }
 0x799   : > { %v3892_v2 = vadd.f32 %v1718_v1, %v1529_v0  ;;  %v1731_v3 = vpop.f32.mrf.mxu1 }
 0x79a   : > { %v3894_v6 = vadd.f32 %v1731_v3, %v1530_v59 }
 0x79b   : > { %v2610_v7 = vmul.f32 -1.702, %v3892_v2 }
 0x79c   : > { %v2611_v11 = vmul.f32 -1.702, %v3894_v6 }
 0x79d   : > { %v1758_v60 = vmul.f32 1.442695, %v2610_v7 }
 0x79e   : > { %v1760_v15 = vmul.f32 1.442695, %v2611_v11  ;;  %v1705_v17 = vpop.f32.mrf.mxu3 }
 0x79f   : > { %3030 = vpow2.f32 %v1758_v60  ;;  %v3898_v19 = vadd.f32 %v1705_v17, %v1528_v8  ;;  %v1744_v20 = vpop.f32.mrf.mxu2 }
 0x7a0   : > { %3032 = vpow2.f32 %v1760_v15  ;;  %v3900_v21 = vadd.f32 %v1744_v20, %v1531_v12  ;;  %v1720_v23 = vpop.f32.mrf.mxu0 }
 0x7a1   : > { %v2609_v16 = vmul.f32 -1.702, %v3898_v19  ;;  %v1733_v22 = vpop.f32.mrf.mxu1 }
 0x7a2   : > { %v2612_v25 = vmul.f32 -1.702, %v3900_v21 }
 0x7a3   : > { %v1756_v26 = vmul.f32 1.442695, %v2609_v16 }
 0x7a4   : > { %v1762_v28 = vmul.f32 1.442695, %v2612_v25 }
 0x7a5   : > { %v3031_v29 = vpop.eup %3030  ;;  %3034 = vpow2.f32 %v1756_v26 }
 0x7a6   : > { %v3033_v30 = vpop.eup %3032  ;;  %v1765_v31 = vadd.f32 1.0, %v3031_v29  ;;  %3036 = vpow2.f32 %v1762_v28  ;;  %v1707_v32 = vpop.f32.mrf.mxu3 }
 0x7a7   : > { %v1766_v13 = vadd.f32 1.0, %v3033_v30  ;;  %v1746_v33 = vpop.f32.mrf.mxu2  ;;  %v2983_v30 = vld [vmem:[%s4033_s20] ss:$0 sm:$0xff] }
 0x7a8   : > { %3038 = vrcp.f32 %v1765_v31  ;;  %v1792_v43 = vand.u32 2147483647, %v1765_v31  ;;  %v1794_v45 = vand.u32 2147483648, %v1765_v31  ;;  %vm1788_vm2 = vweird.f32 %v1765_v31 }
 0x7a9   : > { %3040 = vrcp.f32 %v1766_v13  ;;  %v1807_v47 = vand.u32 2147483647, %v1766_v13  ;;  %v1809_v48 = vand.u32 2147483648, %v1766_v13  ;;  %vm1803_vm3 = vweird.f32 %v1766_v13 }
 0x7aa   : > { %vm1793_vm8 = vcmp.eq.f32.partialorder %v1792_v43, 8.507059e+37  ;;  %v1795_v53 = vor.u32 1.1754944e-38, %v1794_v45 }
 0x7ab   : > { %v3035_v34 = vpop.eup %3034  ;;  %vm1808_vm10 = vcmp.eq.f32.partialorder %v1807_v47, 8.507059e+37  ;;  %v1810_v55 = vor.u32 1.1754944e-38, %v1809_v48 }
 0x7ac   : > { %v3037_v35 = vpop.eup %3036  ;;  %v1764_v37 = vadd.f32 1.0, %v3035_v34 }
 0x7ad   : > { %v3904_v38 = vadd.f32 1.0, %v3037_v35 }
 0x7ae   : > { %v3039_v39 = vpop.eup %3038  ;;  %3042 = vrcp.f32 %v1764_v37  ;;  %v1777_v59 = vand.u32 2147483647, %v1764_v37  ;;  %v1779_v61 = vand.u32 2147483648, %v1764_v37  ;;  %vm1773_vm14 = vweird.f32 %v1764_v37 }
 0x7af   : > { %v3041_v40 = vpop.eup %3040  ;;  %v1784_v57 = vmul.f32 %v3039_v39, %v1765_v31  ;;  %3044 = vrcp.f32 %v3904_v38  ;;  %vm1789_vm1 = vweird.f32 %v3039_v39  ;;  %v1824_v4 = vand.u32 2147483648, %v3904_v38 }
 0x7b0   : > { %v1799_v41 = vmul.f32 %v3041_v40, %v1766_v13  ;;  %vm1804_vm5 = vweird.f32 %v3041_v40  ;;  %vm1790_vm9 = vmor %vm1788_vm2, %vm1789_vm1  ;;  %v1822_v11 = vand.u32 2147483647, %v3904_v38  ;;  %v1780_v62 = vor.u32 1.1754944e-38, %v1779_v61 }
 0x7b1   : > { %v1785_v42 = vsub.f32 1.0, %v1784_v57  ;;  %vm1805_vm11 = vmor %vm1803_vm3, %vm1804_vm5  ;;  %vm1818_vm7 = vweird.f32 %v3904_v38  ;;  %vm1778_vm4 = vcmp.eq.f32.partialorder %v1777_v59, 8.507059e+37 }
 0x7b2   : > { %v1800_v46 = vsub.f32 1.0, %v1799_v41  ;;  %vm1823_vm0 = vcmp.eq.f32.partialorder %v1822_v11, 8.507059e+37 }
 0x7b3   : > { %v1786_v27 = vmul.f32 %v3039_v39, %v1785_v42 }
 0x7b4   : > { %v3043_v49 = vpop.eup %3042  ;;  %v1801_v36 = vmul.f32 %v3041_v40, %v1800_v46 }
 0x7b5   : > { %v3045_v50 = vpop.eup %3044  ;;  %v1787_v52 = vadd.f32 %v3039_v39, %v1786_v27  ;;  %v1769_v54 = vmul.f32 %v3043_v49, %v1764_v37  ;;  %vm1774_vm12 = vweird.f32 %v3043_v49 }
 0x7b6   : > { %v1802_v51 = vadd.f32 %v3041_v40, %v1801_v36  ;;  %v1814_v0 = vmul.f32 %v3045_v50, %v3904_v38  ;;  %vm1819_vm13 = vweird.f32 %v3045_v50  ;;  %vm1775_vm6 = vmor %vm1773_vm14, %vm1774_vm12 }
 0x7b7   : > { %v1791_v56 = vsel %vm1790_vm9, %v3039_v39, %v1787_v52  ;;  %v1770_v58 = vsub.f32 1.0, %v1769_v54  ;;  %vm1820_vm15 = vmor %vm1818_vm7, %vm1819_vm13 }
 0x7b8   : > { %v1796_v63 = vsel %vm1793_vm8, %v1795_v53, %v1791_v56  ;;  %v1806_v1 = vsel %vm1805_vm11, %v3041_v40, %v1802_v51  ;;  %v1815_v3 = vsub.f32 1.0, %v1814_v0 }
 0x7b9   : > { %v1829_v5 = vmul.f32 %v1796_v63, %v3892_v2  ;;  %v1811_v7 = vsel %vm1808_vm10, %v1810_v55, %v1806_v1  ;;  %v1771_v8 = vmul.f32 %v3043_v49, %v1770_v58  ;;  %v1825_v2 = vor.u32 1.1754944e-38, %v1824_v4 }
 0x7ba   : > { %v1830_v9 = vmul.f32 %v1811_v7, %v3894_v6  ;;  %v1816_v10 = vmul.f32 %v3045_v50, %v1815_v3 }
 0x7bb   : > { %v1833_v12 = vpack.c.bf16 %v1829_v5, %v1829_v5  ;;  %v1772_v60 = vadd.f32 %v3043_v49, %v1771_v8 }
 0x7bc   : > { %v1834_v14 = vpack.c.bf16 %v1830_v9, %v1830_v9  ;;  %v1817_v15 = vadd.f32 %v3045_v50, %v1816_v10 }
 0x7bd   : > { %v1776_v17 = vsel %vm1775_vm6, %v3043_v49, %v1772_v60  ;;  %2117 = vmatmul.bf16.vlgmr.msrb.gmra.mxu0 %v1833_v12 }
 0x7be   : > { %v1781_v20 = vsel %vm1778_vm4, %v1780_v62, %v1776_v17  ;;  %v1821_v6 = vsel %vm1820_vm15, %v3045_v50, %v1817_v15  ;;  %2130 = vmatmul.bf16.vlgmr.msrb.gmra.mxu1 %v1834_v14 }
 0x7bf   : > { %v1828_v23 = vmul.f32 %v1781_v20, %v3898_v19  ;;  %v1826_v16 = vsel %vm1823_vm0, %v1825_v2, %v1821_v6 }
 0x7c0   : > { %v1831_v22 = vmul.f32 %v1826_v16, %v3900_v21 }
 0x7c1   : > { %v1832_v24 = vpack.c.bf16 %v1828_v23, %v1828_v23 }
 0x7c2   : > { %v1835_v18 = vpack.c.bf16 %v1831_v22, %v1831_v22 }
 0x7c3   : > { %2104 = vmatmul.bf16.vlgmr.msrb.gmra.mxu3 %v1832_v24 }
 0x7c4   : > { %2143 = vmatmul.bf16.vlgmr.msra.gmra.mxu2 %v1835_v18 }
 0x83a   : > { %v2118_v25 = vpop.f32.mrf.mxu0 }
 0x83b   : > { %v2131_v26 = vpop.f32.mrf.mxu1 }
 0x842   : > { %v2120_v28 = vpop.f32.mrf.mxu0 }
 0x843   : > { %v2133_v29 = vpop.f32.mrf.mxu1 }
 0x846   : > { %v2105_v31 = vpop.f32.mrf.mxu3 }
 0x847   : > { %v2106_v19 = vadd.f32 %v2983_v30, %v2105_v31  ;;  %v2144_v32 = vpop.f32.mrf.mxu2 }
 0x849   : > { %v2119_v13 = vadd.f32 %v2118_v25, %v2106_v19 }
 0x84b   : > { %v2132_v21 = vadd.f32 %v2131_v26, %v2119_v13 }
 0x84d   : > { %v2145_v33 = vadd.f32 %v2144_v32, %v2132_v21 }
 0x84e   : > { %v2107_v34 = vpop.f32.mrf.mxu3 }
 0x84f   : > { %v2148_v35 = vadd.f32 %v2145_v33, %v3872_v44  ;;  %v2146_v37 = vpop.f32.mrf.mxu2 }
 0x851   : > { %2149 = vst [vmem:[%s725_s30] sm:$0xff] %v2148_v35 }
 0x852   : > { %3343 = shalt.err (!%p3340_p8)
}
 0x853   : > { %2865 = dma.vmem_to_hbm [thread:$0]  (%p3578_p0), %s2164_s1, 128, %s2166_s11, %s2151_s28  }
 0x854 PF: > { %s4036_s6 = sld [smem:[#allocation24_spill]]  ;;  %p4038_p7 = scmp.ge.s32.totalorder %s3398_s24, 2 }
 0x856   : > { %p2897_p12 = pnand %p4038_p7, %p3582_p5 }
 0x858   : > { %p2898_p2 = pneg %p2897_p12 }
 0x85a   : > { %s2177_s18 = sand.u32 1, %s4036_s6  }
 0x85b   : > { %s2178_s27 = scalar_lea.sflag [#allocation4], %s2177_s18 }
 0x85c   : > { %3381 = dma.done.wait (%p2898_p2), %s2178_s27, 128  }
 0x85d   : > { %3383 = vsyncadd (%p2898_p2), %s2178_s27, 4294967168  ;;  %s4039_s24 = sld [smem:[#allocation26_spill]]  ;;  %s4042_s21 = smov %s3390_s22 }
 0x85e   : > { %s4040_s7 = sld [smem:[#allocation25_spill]] }
 0x85f   : > { %s4041_s23 = sld [smem:[#allocation27_spill]] }
 0x863   : > { %p35_p1 = scmp.ge.s32.totalorder %s4039_s24, 4  }
 0x864   : > { %s4043_s22 = smov %s4040_s7 }
 0x865   :  { %37 = sbr.rel (!%p35_p1) target bundleno = 24 (0x18), region = 180 }
 0x86a   :  { %2184 = vsyncpa [#allocation3], 1 }
 0x86b   :  { %2186 = vsyncpa [#allocation3 + $0x1], 1 }
 0x86c   :  { %2187 = vsyncpa [#allocation6], 1 }
 0x86d   :  { %2189 = vsyncpa [#allocation6 + $0x1], 1 }
 0x86e   :  { %2190 = vsyncpa [#allocation9], 1 }
 0x86f   :  { %2191 = vsyncpa [#allocation12], 1 }
 0x870   :  { %2192 = vsyncpa [#allocation15], 1 }
 0x871   :  { %2193 = vsyncpa [#allocation4], 1 }
 0x872   :  { %2195 = vsyncpa [#allocation4 + $0x1], 1 }

</bundles_post_ra>
